<compile_context>
chip_gen: v5e
topology: v5e:2x2
jax: 0.10.0
libtpu: 0.0.40
codegen_flags: <defaults>
</compile_context>

<pallas_src>
import functools

import jax
import jax.numpy as jnp
import numpy as np
from jax.experimental import pallas as pl
from jax.experimental.pallas import tpu as pltpu


# ----------------- hoisted input projection (tiled Pallas matmul) -------------


def _proj_kernel(x_ref, w_ref, b_ref, o_ref):
    o_ref[...] = (jnp.dot(x_ref[...], w_ref[...],
                          preferred_element_type=jnp.float32) + b_ref[...])


def input_projection(x_flat, w, b, tm=256):
    """(M, E) @ (E, N) + (1, N) -> (M, N), tiled along M (rows)."""
    M, E = x_flat.shape
    N = w.shape[1]
    if M <= tm:
        tm_eff, Mp = M, M
    else:
        tm_eff = tm
        Mp = -(-M // tm) * tm
        if Mp != M:
            x_flat = jnp.pad(x_flat, ((0, Mp - M), (0, 0)))
    out = pl.pallas_call(
        _proj_kernel,
        grid=(Mp // tm_eff,),
        in_specs=[pl.BlockSpec((tm_eff, E), lambda i: (i, 0)),
                  pl.BlockSpec((E, N), lambda i: (0, 0)),
                  pl.BlockSpec((1, N), lambda i: (0, 0))],
        out_specs=pl.BlockSpec((tm_eff, N), lambda i: (i, 0)),
        out_shape=jax.ShapeDtypeStruct((Mp, N), jnp.float32),
        compiler_params=pltpu.CompilerParams(
            dimension_semantics=("parallel",)),
    )(x_flat, w, b)
    return out[:M]


# ----------------- recurrent kernel (K timesteps per grid step) ---------------


def _bigru_kernel(T_pad, K,
                  len_ref, gi_f_ref, gi_b_ref,
                  wh_f_ref, wh_b_ref, bhn_f_ref, bhn_b_ref,
                  wo_f_ref, wo_b_ref, bo_ref,
                  logits_ref,
                  h_f_scr, h_b_scr):
    i = pl.program_id(0)

    @pl.when(i == 0)
    def _():
        h_f_scr[...] = jnp.zeros_like(h_f_scr)
        h_b_scr[...] = jnp.zeros_like(h_b_scr)

    lengths = len_ref[...]              # (B, 1) int32
    bhn_f = bhn_f_ref[...]              # (1, H)  (only the n-gate hidden bias)
    bhn_b = bhn_b_ref[...]

    def cell(gi, h, wh_ref, bhn, mask):
        # gi: (3, B, H) hoisted x@W_ih (+ bi, + bh for r/z) for gates [r, z, n].
        # PyTorch GRU cell:
        #   r = sigmoid(Wir x + bir + Whr h + bhr)
        #   z = sigmoid(Wiz x + biz + Whz h + bhz)
        #   n = tanh   (Win x + bin + r * (Whn h + bhn))
        #   h' = (1 - z) * n + z * h
        gh_r = jnp.dot(h, wh_ref[0], preferred_element_type=jnp.float32)
        gh_z = jnp.dot(h, wh_ref[1], preferred_element_type=jnp.float32)
        gh_n = jnp.dot(h, wh_ref[2], preferred_element_type=jnp.float32)
        r = jax.nn.sigmoid(gi[0] + gh_r)
        z = jax.nn.sigmoid(gi[1] + gh_z)
        n = jnp.tanh(gi[2] + r * (gh_n + bhn))
        h_new = (1.0 - z) * n + z * h
        # packed-sequence semantics: freeze h on padded / out-of-length steps
        return jnp.where(mask, h_new, h)

    def step(k, carry):
        h_f, h_b = carry
        s = i * K + k                    # stream position
        t_f = s                          # forward time index
        t_b = (T_pad - 1) - s            # backward stream is time-reversed
        h_f = cell(gi_f_ref[k], h_f, wh_f_ref, bhn_f, t_f < lengths)
        h_b = cell(gi_b_ref[k], h_b, wh_b_ref, bhn_b, t_b < lengths)
        return h_f, h_b

    h_f, h_b = jax.lax.fori_loop(0, K, step, (h_f_scr[...], h_b_scr[...]),
                                 unroll=True)
    h_f_scr[...] = h_f
    h_b_scr[...] = h_b

    # Fused output head: logits = concat([hn_f, hn_b]) @ W_out + b_out
    # (split into two H-wide matmuls to avoid a lane concat at a non-128 edge).
    @pl.when(i == pl.num_programs(0) - 1)
    def _():
        logits_ref[...] = (
            jnp.dot(h_f, wo_f_ref[...], preferred_element_type=jnp.float32)
            + jnp.dot(h_b, wo_b_ref[...], preferred_element_type=jnp.float32)
            + bo_ref[...])


# ----------------------------- Full forward -----------------------------------


def bigru_forward(token_ids, lengths, params, K=8):
    """token_ids: (B, T) int32, lengths: (B,) int32 -> logits (B, num_class)."""
    B, T = token_ids.shape
    E = params["embedding"].shape[1]
    H = params["wh_f"].shape[0]
    C = params["w_out"].shape[1]

    K = min(K, T)
    n_blocks = -(-T // K)
    T_pad = n_blocks * K

    # ---- glue (XLA): embedding gather, time-major layout, zero-pad T -> T_pad
    emb = jnp.take(params["embedding"], token_ids, axis=0)        # (B, T, E)
    x_tbe = jnp.transpose(emb, (1, 0, 2)).astype(jnp.float32)     # (T, B, E)
    if T_pad != T:
        x_tbe = jnp.pad(x_tbe, ((0, T_pad - T), (0, 0), (0, 0)))

    # ---- fold the r/z hidden biases into the hoisted input bias; keep b_hn
    def fold(bi, bh):
        return jnp.concatenate([bi[:, :2 * H] + bh[:, :2 * H], bi[:, 2 * H:]],
                               axis=1)
    w_cat = jnp.concatenate([params["wi_f"], params["wi_b"]], axis=1)   # (E, 6H)
    b_cat = jnp.concatenate([fold(params["bi_f"], params["bh_f"]),
                             fold(params["bi_b"], params["bh_b"])], axis=1)

    # ---- hoisted input projection for all timesteps / both directions
    gi_flat = input_projection(x_tbe.reshape(T_pad * B, E), w_cat, b_cat)
    gi = gi_flat.reshape(T_pad, B, 2, 3, H).transpose(2, 0, 3, 1, 4)  # (2,T,3,B,H)
    gi_f = gi[0]
    gi_b = jnp.flip(gi[1], axis=0)     # backward direction streamed in reverse

    # ---- repack hidden weights gate-major: (H, 3H) -> (3, H, H)
    def split3(w):
        return jnp.stack([w[:, :H], w[:, H:2 * H], w[:, 2 * H:]], axis=0)
    wh_f = split3(params["wh_f"])
    wh_b = split3(params["wh_b"])
    bhn_f = params["bh_f"][:, 2 * H:]
    bhn_b = params["bh_b"][:, 2 * H:]
    wo_f = params["w_out"][:H]
    wo_b = params["w_out"][H:]
    bo = params["b_out"].reshape(1, C)

    len_b1 = lengths.reshape(B, 1).astype(jnp.int32)

    kernel = functools.partial(_bigru_kernel, T_pad, K)
    logits = pl.pallas_call(
        kernel,
        grid=(n_blocks,),
        in_specs=[
            pl.BlockSpec((B, 1), lambda i: (0, 0)),               # lengths
            pl.BlockSpec((K, 3, B, H), lambda i: (i, 0, 0, 0)),   # GI forward
            pl.BlockSpec((K, 3, B, H), lambda i: (i, 0, 0, 0)),   # GI backward
            pl.BlockSpec((3, H, H), lambda i: (0, 0, 0)),         # W_hh fwd
            pl.BlockSpec((3, H, H), lambda i: (0, 0, 0)),         # W_hh bwd
            pl.BlockSpec((1, H), lambda i: (0, 0)),               # b_hn fwd
            pl.BlockSpec((1, H), lambda i: (0, 0)),               # b_hn bwd
            pl.BlockSpec((H, C), lambda i: (0, 0)),               # W_out fwd half
            pl.BlockSpec((H, C), lambda i: (0, 0)),               # W_out bwd half
            pl.BlockSpec((1, C), lambda i: (0, 0)),               # b_out
        ],
        out_specs=pl.BlockSpec((B, C), lambda i: (0, 0)),
        out_shape=jax.ShapeDtypeStruct((B, C), jnp.float32),
        scratch_shapes=[pltpu.VMEM((B, H), jnp.float32),
                        pltpu.VMEM((B, H), jnp.float32)],
        compiler_params=pltpu.CompilerParams(
            dimension_semantics=("arbitrary",)),   # serial recurrence over time
    )(len_b1, gi_f, gi_b, wh_f, wh_b, bhn_f, bhn_b, wo_f, wo_b, bo)
    # TODO(synk): nn.Dropout(0.5) is identity at inference; training-mode dropout
    # (Bernoulli mask + 1/(1-p) scaling on `hidden`) is not applied here.
    return logits


# ----------------------------- Reference (pure JAX) ---------------------------


def _ref_gru_dir(x_tbe, mask_tb1, wi, wh, bi, bh, H, reverse):
    T, B, _ = x_tbe.shape
    h = jnp.zeros((B, H), jnp.float32)
    order = range(T - 1, -1, -1) if reverse else range(T)
    for t in order:
        gi = x_tbe[t] @ wi + bi
        gh = h @ wh + bh
        r = jax.nn.sigmoid(gi[:, :H] + gh[:, :H])
        z = jax.nn.sigmoid(gi[:, H:2 * H] + gh[:, H:2 * H])
        n = jnp.tanh(gi[:, 2 * H:] + r * gh[:, 2 * H:])
        h_new = (1.0 - z) * n + z * h
        m = mask_tb1[t]
        h = m * h_new + (1.0 - m) * h
    return h


def bigru_reference(token_ids, lengths, p):
    B, T = token_ids.shape
    H = p["wh_f"].shape[0]
    emb = jnp.take(p["embedding"], token_ids, axis=0)
    x_tbe = jnp.transpose(emb, (1, 0, 2)).astype(jnp.float32)
    mask = (jnp.arange(T)[:, None] < lengths[None, :]).astype(jnp.float32)[:, :, None]
    hn_f = _ref_gru_dir(x_tbe, mask, p["wi_f"], p["wh_f"], p["bi_f"], p["bh_f"], H, False)
    hn_b = _ref_gru_dir(x_tbe, mask, p["wi_b"], p["wh_b"], p["bi_b"], p["bh_b"], H, True)
    hidden = jnp.concatenate([hn_f, hn_b], axis=1)
    return hidden @ p["w_out"] + p["b_out"]


# ----------------------------- Main --------------------------------------------


def init_params(key, vocab_size, embedding_dim, hidden_dim, num_class):
    H, E, C = hidden_dim, embedding_dim, num_class
    ks = jax.random.split(key, 12)
    s = 1.0 / np.sqrt(H)
    u = lambda k, shape, sc: jax.random.uniform(k, shape, jnp.float32, -sc, sc)
    return {
        "embedding": jax.random.normal(ks[0], (vocab_size, E), jnp.float32),
        # forward direction (W_ih^T as (E, 3H), W_hh^T as (H, 3H)), gate order [r, z, n]
        "wi_f": u(ks[1], (E, 3 * H), s), "wh_f": u(ks[2], (H, 3 * H), s),
        "bi_f": u(ks[3], (1, 3 * H), s), "bh_f": u(ks[4], (1, 3 * H), s),
        # backward direction
        "wi_b": u(ks[5], (E, 3 * H), s), "wh_b": u(ks[6], (H, 3 * H), s),
        "bi_b": u(ks[7], (1, 3 * H), s), "bh_b": u(ks[8], (1, 3 * H), s),
        # output linear: (2H, C) so we compute hidden @ w_out + b_out
        "w_out": u(ks[9], (2 * H, C), 1.0 / np.sqrt(2 * H)),
        "b_out": u(ks[10], (C,), 1.0 / np.sqrt(2 * H)),
    }


if __name__ == "__main__":
    vocab_size, embedding_dim, hidden_dim, num_class = 50, 16, 32, 4
    B, T = 2, 8

    key = jax.random.PRNGKey(0)
    k_par, k_tok = jax.random.split(key)
    params = init_params(k_par, vocab_size, embedding_dim, hidden_dim, num_class)

    token_ids = jax.random.randint(k_tok, (B, T), 0, vocab_size, dtype=jnp.int32)
    lengths = jnp.array([8, 5], dtype=jnp.int32)   # ragged lengths (packed-seq semantics)

    forward = jax.jit(bigru_forward)
    out = jax.block_until_ready(forward(token_ids, lengths, params))
    ref = jax.block_until_ready(bigru_reference(token_ids, lengths, params))

    assert out.shape == (B, num_class)
    np.testing.assert_allclose(np.asarray(out), np.asarray(ref), atol=1e-4, rtol=1e-4)
    print("KERNEL_OK")
</pallas_src>

<mosaic_0001>
module attributes {stable_mosaic.version = 11 : i64} {
  func.func @_proj_kernel(%arg0: i32, %arg1: memref<16x16xf32, #tpu.memory_space<vmem>>, %arg2: memref<16x192xf32, #tpu.memory_space<vmem>>, %arg3: memref<1x192xf32, #tpu.memory_space<vmem>>, %arg4: memref<16x192xf32, #tpu.memory_space<vmem>>) attributes {dimension_semantics = [#tpu.dimension_semantics<parallel>], iteration_bounds = array<i64: 1>, scalar_prefetch = 0 : i64, scratch_operands = 0 : i64, tpu.core_type = #tpu.core_type<tc>, window_params = [{transform_indices = @transform_0, window_bounds = array<i64: 16, 16>}, {pipeline_mode = #tpu.pipeline_mode<synchronous>, transform_indices = @transform_1, window_bounds = array<i64: 16, 192>}, {pipeline_mode = #tpu.pipeline_mode<synchronous>, transform_indices = @transform_2, window_bounds = array<i64: 1, 192>}, {transform_indices = @transform_3, window_bounds = array<i64: 16, 192>}]} {
    %c0 = arith.constant 0 : index
    %c0_0 = arith.constant 0 : index
    %0 = vector.load %arg1[%c0, %c0_0] : memref<16x16xf32, #tpu.memory_space<vmem>>, vector<16x16xf32>
    %c0_1 = arith.constant 0 : index
    %c0_2 = arith.constant 0 : index
    %1 = vector.load %arg2[%c0_1, %c0_2] : memref<16x192xf32, #tpu.memory_space<vmem>>, vector<16x192xf32>
    %cst = arith.constant dense<0.000000e+00> : vector<16x192xf32>
    %2 = tpu.matmul %0, %1, %cst {dimension_numbers = #tpu.dot_dimension_numbers<[1], [0], [0], [1], [0, 0, 1, 1], [], []>} : vector<16x16xf32>, vector<16x192xf32>, vector<16x192xf32> -> vector<16x192xf32>
    %c0_3 = arith.constant 0 : index
    %c0_4 = arith.constant 0 : index
    %3 = vector.load %arg3[%c0_3, %c0_4] : memref<1x192xf32, #tpu.memory_space<vmem>>, vector<1x192xf32>
    %4 = vector.broadcast %3 : vector<1x192xf32> to vector<16x192xf32>
    %5 = arith.addf %2, %4 : vector<16x192xf32>
    %c0_5 = arith.constant 0 : index
    %c0_6 = arith.constant 0 : index
    %6 = vector.load %arg4[%c0_5, %c0_6] : memref<16x192xf32, #tpu.memory_space<vmem>>, vector<16x192xf32>
    tpu.vector_store %arg4[%c0_5, %c0_6], %5 {strides = array<i32>} : memref<16x192xf32, #tpu.memory_space<vmem>>, vector<16x192xf32>,
    return
  }
  func.func @transform_0(%arg0: i32) -> (i32, i32) {
    %c0_i32 = arith.constant 0 : i32
    %c0_i32_0 = arith.constant 0 : i32
    return %arg0, %c0_i32 : i32, i32
  }
  func.func @transform_1(%arg0: i32) -> (i32, i32) {
    %c0_i32 = arith.constant 0 : i32
    %c0_i32_0 = arith.constant 0 : i32
    %c0_i32_1 = arith.constant 0 : i32
    return %c0_i32, %c0_i32_0 : i32, i32
  }
  func.func @transform_2(%arg0: i32) -> (i32, i32) {
    %c0_i32 = arith.constant 0 : i32
    %c0_i32_0 = arith.constant 0 : i32
    %c0_i32_1 = arith.constant 0 : i32
    return %c0_i32, %c0_i32_0 : i32, i32
  }
  func.func @transform_3(%arg0: i32) -> (i32, i32) {
    %c0_i32 = arith.constant 0 : i32
    %c0_i32_0 = arith.constant 0 : i32
    return %arg0, %c0_i32 : i32, i32
  }
}

module attributes {stable_mosaic.version = 11 : i64} {
  func.func @_bigru_kernel(%arg0: i32, %arg1: memref<2x1xi32, #tpu.memory_space<vmem>>, %arg2: memref<8x3x2x32xf32, #tpu.memory_space<vmem>>, %arg3: memref<8x3x2x32xf32, #tpu.memory_space<vmem>>, %arg4: memref<3x32x32xf32, #tpu.memory_space<vmem>>, %arg5: memref<3x32x32xf32, #tpu.memory_space<vmem>>, %arg6: memref<1x32xf32, #tpu.memory_space<vmem>>, %arg7: memref<1x32xf32, #tpu.memory_space<vmem>>, %arg8: memref<32x4xf32, #tpu.memory_space<vmem>>, %arg9: memref<32x4xf32, #tpu.memory_space<vmem>>, %arg10: memref<1x4xf32, #tpu.memory_space<vmem>>, %arg11: memref<2x4xf32, #tpu.memory_space<vmem>>, %arg12: memref<2x32xf32, #tpu.memory_space<vmem>>, %arg13: memref<2x32xf32, #tpu.memory_space<vmem>>) attributes {dimension_semantics = [#tpu.dimension_semantics<arbitrary>], iteration_bounds = array<i64: 1>, scalar_prefetch = 0 : i64, scratch_operands = 2 : i64, tpu.core_type = #tpu.core_type<tc>, window_params = [{pipeline_mode = #tpu.pipeline_mode<synchronous>, transform_indices = @transform_0, window_bounds = array<i64: 2, 1>}, {transform_indices = @transform_1, window_bounds = array<i64: 8, 3, 2, 32>}, {transform_indices = @transform_2, window_bounds = array<i64: 8, 3, 2, 32>}, {pipeline_mode = #tpu.pipeline_mode<synchronous>, transform_indices = @transform_3, window_bounds = array<i64: 3, 32, 32>}, {pipeline_mode = #tpu.pipeline_mode<synchronous>, transform_indices = @transform_4, window_bounds = array<i64: 3, 32, 32>}, {pipeline_mode = #tpu.pipeline_mode<synchronous>, transform_indices = @transform_5, window_bounds = array<i64: 1, 32>}, {pipeline_mode = #tpu.pipeline_mode<synchronous>, transform_indices = @transform_6, window_bounds = array<i64: 1, 32>}, {pipeline_mode = #tpu.pipeline_mode<synchronous>, transform_indices = @transform_7, window_bounds = array<i64: 32, 4>}, {pipeline_mode = #tpu.pipeline_mode<synchronous>, transform_indices = @transform_8, window_bounds = array<i64: 32, 4>}, {pipeline_mode = #tpu.pipeline_mode<synchronous>, transform_indices = @transform_9, window_bounds = array<i64: 1, 4>}, {pipeline_mode = #tpu.pipeline_mode<synchronous>, transform_indices = @transform_10, window_bounds = array<i64: 2, 4>}]} {
    %c0_i32 = arith.constant 0 : i32
    %0 = arith.cmpi eq, %arg0, %c0_i32 : i32
    %1 = arith.extui %0 : i1 to i32
    %c0_i32_0 = arith.constant 0 : i32
    %2 = arith.cmpi ne, %1, %c0_i32_0 : i32
    scf.if %2 {
      %cst_318 = arith.constant 0.000000e+00 : f32
      %757 = vector.broadcast %cst_318 : f32 to vector<2x32xf32>
      %c0_319 = arith.constant 0 : index
      %c0_320 = arith.constant 0 : index
      %758 = vector.load %arg12[%c0_319, %c0_320] : memref<2x32xf32, #tpu.memory_space<vmem>>, vector<2x32xf32>
      tpu.vector_store %arg12[%c0_319, %c0_320], %757 {strides = array<i32>} : memref<2x32xf32, #tpu.memory_space<vmem>>, vector<2x32xf32>,
      %cst_321 = arith.constant 0.000000e+00 : f32
      %759 = vector.broadcast %cst_321 : f32 to vector<2x32xf32>
      %c0_322 = arith.constant 0 : index
      %c0_323 = arith.constant 0 : index
      %760 = vector.load %arg13[%c0_322, %c0_323] : memref<2x32xf32, #tpu.memory_space<vmem>>, vector<2x32xf32>
      tpu.vector_store %arg13[%c0_322, %c0_323], %759 {strides = array<i32>} : memref<2x32xf32, #tpu.memory_space<vmem>>, vector<2x32xf32>,
    } else {
    }
    %c0 = arith.constant 0 : index
    %c0_1 = arith.constant 0 : index
    %3 = vector.load %arg1[%c0, %c0_1] : memref<2x1xi32, #tpu.memory_space<vmem>>, vector<2x1xi32>
    %c0_2 = arith.constant 0 : index
    %c0_3 = arith.constant 0 : index
    %4 = vector.load %arg6[%c0_2, %c0_3] : memref<1x32xf32, #tpu.memory_space<vmem>>, vector<1x32xf32>
    %c0_4 = arith.constant 0 : index
    %c0_5 = arith.constant 0 : index
    %5 = vector.load %arg7[%c0_4, %c0_5] : memref<1x32xf32, #tpu.memory_space<vmem>>, vector<1x32xf32>
    %c0_6 = arith.constant 0 : index
    %c0_7 = arith.constant 0 : index
    %6 = vector.load %arg12[%c0_6, %c0_7] : memref<2x32xf32, #tpu.memory_space<vmem>>, vector<2x32xf32>
    %c0_8 = arith.constant 0 : index
    %c0_9 = arith.constant 0 : index
    %7 = vector.load %arg13[%c0_8, %c0_9] : memref<2x32xf32, #tpu.memory_space<vmem>>, vector<2x32xf32>
    %c0_i32_10 = arith.constant 0 : i32
    %c8_i32 = arith.constant 8 : i32
    %8 = arith.muli %arg0, %c8_i32 : i32
    %9 = arith.addi %8, %c0_i32_10 : i32
    %c7_i32 = arith.constant 7 : i32
    %10 = arith.subi %c7_i32, %9 : i32
    %11 = arith.index_cast %c0_i32_10 : i32 to index
    %c0_11 = arith.constant 0 : index
    %c0_12 = arith.constant 0 : index
    %c0_13 = arith.constant 0 : index
    %12 = vector.load %arg2[%11, %c0_11, %c0_12, %c0_13] : memref<8x3x2x32xf32, #tpu.memory_space<vmem>>, vector<1x3x2x32xf32>
    %13 = vector.shape_cast %12 : vector<1x3x2x32xf32> to vector<3x2x32xf32>
    %14 = vector.broadcast %9 : i32 to vector<2x1xi32>
    %15 = arith.cmpi slt, %14, %3 : vector<2x1xi32>
    %c0_14 = arith.constant 0 : index
    %c0_15 = arith.constant 0 : index
    %c0_16 = arith.constant 0 : index
    %16 = vector.load %arg4[%c0_14, %c0_15, %c0_16] : memref<3x32x32xf32, #tpu.memory_space<vmem>>, vector<1x32x32xf32>
    %17 = vector.shape_cast %16 : vector<1x32x32xf32> to vector<32x32xf32>
    %cst = arith.constant dense<0.000000e+00> : vector<2x32xf32>
    %18 = tpu.matmul %6, %17, %cst {dimension_numbers = #tpu.dot_dimension_numbers<[1], [0], [0], [1], [0, 0, 1, 1], [], []>} : vector<2x32xf32>, vector<32x32xf32>, vector<2x32xf32> -> vector<2x32xf32>
    %c1 = arith.constant 1 : index
    %c0_17 = arith.constant 0 : index
    %c0_18 = arith.constant 0 : index
    %19 = vector.load %arg4[%c1, %c0_17, %c0_18] : memref<3x32x32xf32, #tpu.memory_space<vmem>>, vector<1x32x32xf32>
    %20 = vector.shape_cast %19 : vector<1x32x32xf32> to vector<32x32xf32>
    %cst_19 = arith.constant dense<0.000000e+00> : vector<2x32xf32>
    %21 = tpu.matmul %6, %20, %cst_19 {dimension_numbers = #tpu.dot_dimension_numbers<[1], [0], [0], [1], [0, 0, 1, 1], [], []>} : vector<2x32xf32>, vector<32x32xf32>, vector<2x32xf32> -> vector<2x32xf32>
    %c2 = arith.constant 2 : index
    %c0_20 = arith.constant 0 : index
    %c0_21 = arith.constant 0 : index
    %22 = vector.load %arg4[%c2, %c0_20, %c0_21] : memref<3x32x32xf32, #tpu.memory_space<vmem>>, vector<1x32x32xf32>
    %23 = vector.shape_cast %22 : vector<1x32x32xf32> to vector<32x32xf32>
    %cst_22 = arith.constant dense<0.000000e+00> : vector<2x32xf32>
    %24 = tpu.matmul %6, %23, %cst_22 {dimension_numbers = #tpu.dot_dimension_numbers<[1], [0], [0], [1], [0, 0, 1, 1], [], []>} : vector<2x32xf32>, vector<32x32xf32>, vector<2x32xf32> -> vector<2x32xf32>
    %25 = vector.extract_strided_slice %13 {offsets = [0, 0, 0], sizes = [1, 2, 32], strides = [1, 1, 1]} : vector<3x2x32xf32> to vector<1x2x32xf32>
    %26 = vector.shape_cast %25 : vector<1x2x32xf32> to vector<2x32xf32>
    %27 = arith.addf %26, %18 : vector<2x32xf32>
    %28 = arith.negf %27 : vector<2x32xf32>
    %29 = math.exp %28 : vector<2x32xf32>
    %cst_23 = arith.constant 1.000000e+00 : f32
    %30 = vector.broadcast %cst_23 : f32 to vector<2x32xf32>
    %31 = arith.addf %30, %29 : vector<2x32xf32>
    %32 = arith.divf %30, %31 : vector<2x32xf32>
    %33 = vector.extract_strided_slice %13 {offsets = [1, 0, 0], sizes = [1, 2, 32], strides = [1, 1, 1]} : vector<3x2x32xf32> to vector<1x2x32xf32>
    %34 = vector.shape_cast %33 : vector<1x2x32xf32> to vector<2x32xf32>
    %35 = arith.addf %34, %21 : vector<2x32xf32>
    %36 = arith.negf %35 : vector<2x32xf32>
    %37 = math.exp %36 : vector<2x32xf32>
    %cst_24 = arith.constant 1.000000e+00 : f32
    %38 = vector.broadcast %cst_24 : f32 to vector<2x32xf32>
    %39 = arith.addf %38, %37 : vector<2x32xf32>
    %40 = arith.divf %38, %39 : vector<2x32xf32>
    %41 = vector.extract_strided_slice %13 {offsets = [2, 0, 0], sizes = [1, 2, 32], strides = [1, 1, 1]} : vector<3x2x32xf32> to vector<1x2x32xf32>
    %42 = vector.shape_cast %41 : vector<1x2x32xf32> to vector<2x32xf32>
    %43 = vector.broadcast %4 : vector<1x32xf32> to vector<2x32xf32>
    %44 = arith.addf %24, %43 : vector<2x32xf32>
    %45 = arith.mulf %32, %44 : vector<2x32xf32>
    %46 = arith.addf %42, %45 : vector<2x32xf32>
    %47 = math.tanh %46 : vector<2x32xf32>
    %cst_25 = arith.constant 1.000000e+00 : f32
    %48 = vector.broadcast %cst_25 : f32 to vector<2x32xf32>
    %49 = arith.subf %48, %40 : vector<2x32xf32>
    %50 = arith.mulf %49, %47 : vector<2x32xf32>
    %51 = arith.mulf %40, %6 : vector<2x32xf32>
    %52 = arith.addf %50, %51 : vector<2x32xf32>
    %53 = vector.shape_cast %15 : vector<2x1xi1> to vector<2x1xi1>
    %54 = vector.broadcast %53 : vector<2x1xi1> to vector<2x32xi1>
    %55 = arith.select %54, %52, %6 : vector<2x32xi1>, vector<2x32xf32>
    %56 = arith.index_cast %c0_i32_10 : i32 to index
    %c0_26 = arith.constant 0 : index
    %c0_27 = arith.constant 0 : index
    %c0_28 = arith.constant 0 : index
    %57 = vector.load %arg3[%56, %c0_26, %c0_27, %c0_28] : memref<8x3x2x32xf32, #tpu.memory_space<vmem>>, vector<1x3x2x32xf32>
    %58 = vector.shape_cast %57 : vector<1x3x2x32xf32> to vector<3x2x32xf32>
    %59 = vector.broadcast %10 : i32 to vector<2x1xi32>
    %60 = arith.cmpi slt, %59, %3 : vector<2x1xi32>
    %c0_29 = arith.constant 0 : index
    %c0_30 = arith.constant 0 : index
    %c0_31 = arith.constant 0 : index
    %61 = vector.load %arg5[%c0_29, %c0_30, %c0_31] : memref<3x32x32xf32, #tpu.memory_space<vmem>>, vector<1x32x32xf32>
    %62 = vector.shape_cast %61 : vector<1x32x32xf32> to vector<32x32xf32>
    %cst_32 = arith.constant dense<0.000000e+00> : vector<2x32xf32>
    %63 = tpu.matmul %7, %62, %cst_32 {dimension_numbers = #tpu.dot_dimension_numbers<[1], [0], [0], [1], [0, 0, 1, 1], [], []>} : vector<2x32xf32>, vector<32x32xf32>, vector<2x32xf32> -> vector<2x32xf32>
    %c1_33 = arith.constant 1 : index
    %c0_34 = arith.constant 0 : index
    %c0_35 = arith.constant 0 : index
    %64 = vector.load %arg5[%c1_33, %c0_34, %c0_35] : memref<3x32x32xf32, #tpu.memory_space<vmem>>, vector<1x32x32xf32>
    %65 = vector.shape_cast %64 : vector<1x32x32xf32> to vector<32x32xf32>
    %cst_36 = arith.constant dense<0.000000e+00> : vector<2x32xf32>
    %66 = tpu.matmul %7, %65, %cst_36 {dimension_numbers = #tpu.dot_dimension_numbers<[1], [0], [0], [1], [0, 0, 1, 1], [], []>} : vector<2x32xf32>, vector<32x32xf32>, vector<2x32xf32> -> vector<2x32xf32>
    %c2_37 = arith.constant 2 : index
    %c0_38 = arith.constant 0 : index
    %c0_39 = arith.constant 0 : index
    %67 = vector.load %arg5[%c2_37, %c0_38, %c0_39] : memref<3x32x32xf32, #tpu.memory_space<vmem>>, vector<1x32x32xf32>
    %68 = vector.shape_cast %67 : vector<1x32x32xf32> to vector<32x32xf32>
    %cst_40 = arith.constant dense<0.000000e+00> : vector<2x32xf32>
    %69 = tpu.matmul %7, %68, %cst_40 {dimension_numbers = #tpu.dot_dimension_numbers<[1], [0], [0], [1], [0, 0, 1, 1], [], []>} : vector<2x32xf32>, vector<32x32xf32>, vector<2x32xf32> -> vector<2x32xf32>
    %70 = vector.extract_strided_slice %58 {offsets = [0, 0, 0], sizes = [1, 2, 32], strides = [1, 1, 1]} : vector<3x2x32xf32> to vector<1x2x32xf32>
    %71 = vector.shape_cast %70 : vector<1x2x32xf32> to vector<2x32xf32>
    %72 = arith.addf %71, %63 : vector<2x32xf32>
    %73 = arith.negf %72 : vector<2x32xf32>
    %74 = math.exp %73 : vector<2x32xf32>
    %cst_41 = arith.constant 1.000000e+00 : f32
    %75 = vector.broadcast %cst_41 : f32 to vector<2x32xf32>
    %76 = arith.addf %75, %74 : vector<2x32xf32>
    %77 = arith.divf %75, %76 : vector<2x32xf32>
    %78 = vector.extract_strided_slice %58 {offsets = [1, 0, 0], sizes = [1, 2, 32], strides = [1, 1, 1]} : vector<3x2x32xf32> to vector<1x2x32xf32>
    %79 = vector.shape_cast %78 : vector<1x2x32xf32> to vector<2x32xf32>
    %80 = arith.addf %79, %66 : vector<2x32xf32>
    %81 = arith.negf %80 : vector<2x32xf32>
    %82 = math.exp %81 : vector<2x32xf32>
    %cst_42 = arith.constant 1.000000e+00 : f32
    %83 = vector.broadcast %cst_42 : f32 to vector<2x32xf32>
    %84 = arith.addf %83, %82 : vector<2x32xf32>
    %85 = arith.divf %83, %84 : vector<2x32xf32>
    %86 = vector.extract_strided_slice %58 {offsets = [2, 0, 0], sizes = [1, 2, 32], strides = [1, 1, 1]} : vector<3x2x32xf32> to vector<1x2x32xf32>
    %87 = vector.shape_cast %86 : vector<1x2x32xf32> to vector<2x32xf32>
    %88 = vector.broadcast %5 : vector<1x32xf32> to vector<2x32xf32>
    %89 = arith.addf %69, %88 : vector<2x32xf32>
    %90 = arith.mulf %77, %89 : vector<2x32xf32>
    %91 = arith.addf %87, %90 : vector<2x32xf32>
    %92 = math.tanh %91 : vector<2x32xf32>
    %cst_43 = arith.constant 1.000000e+00 : f32
    %93 = vector.broadcast %cst_43 : f32 to vector<2x32xf32>
    %94 = arith.subf %93, %85 : vector<2x32xf32>
    %95 = arith.mulf %94, %92 : vector<2x32xf32>
    %96 = arith.mulf %85, %7 : vector<2x32xf32>
    %97 = arith.addf %95, %96 : vector<2x32xf32>
    %98 = vector.shape_cast %60 : vector<2x1xi1> to vector<2x1xi1>
    %99 = vector.broadcast %98 : vector<2x1xi1> to vector<2x32xi1>
    %100 = arith.select %99, %97, %7 : vector<2x32xi1>, vector<2x32xf32>
    %c1_i32 = arith.constant 1 : i32
    %c8_i32_44 = arith.constant 8 : i32
    %101 = arith.muli %arg0, %c8_i32_44 : i32
    %102 = arith.addi %101, %c1_i32 : i32
    %c7_i32_45 = arith.constant 7 : i32
    %103 = arith.subi %c7_i32_45, %102 : i32
    %104 = arith.index_cast %c1_i32 : i32 to index
    %c0_46 = arith.constant 0 : index
    %c0_47 = arith.constant 0 : index
    %c0_48 = arith.constant 0 : index
    %105 = vector.load %arg2[%104, %c0_46, %c0_47, %c0_48] : memref<8x3x2x32xf32, #tpu.memory_space<vmem>>, vector<1x3x2x32xf32>
    %106 = vector.shape_cast %105 : vector<1x3x2x32xf32> to vector<3x2x32xf32>
    %107 = vector.broadcast %102 : i32 to vector<2x1xi32>
    %108 = arith.cmpi slt, %107, %3 : vector<2x1xi32>
    %c0_49 = arith.constant 0 : index
    %c0_50 = arith.constant 0 : index
    %c0_51 = arith.constant 0 : index
    %109 = vector.load %arg4[%c0_49, %c0_50, %c0_51] : memref<3x32x32xf32, #tpu.memory_space<vmem>>, vector<1x32x32xf32>
    %110 = vector.shape_cast %109 : vector<1x32x32xf32> to vector<32x32xf32>
    %cst_52 = arith.constant dense<0.000000e+00> : vector<2x32xf32>
    %111 = tpu.matmul %55, %110, %cst_52 {dimension_numbers = #tpu.dot_dimension_numbers<[1], [0], [0], [1], [0, 0, 1, 1], [], []>} : vector<2x32xf32>, vector<32x32xf32>, vector<2x32xf32> -> vector<2x32xf32>
    %c1_53 = arith.constant 1 : index
    %c0_54 = arith.constant 0 : index
    %c0_55 = arith.constant 0 : index
    %112 = vector.load %arg4[%c1_53, %c0_54, %c0_55] : memref<3x32x32xf32, #tpu.memory_space<vmem>>, vector<1x32x32xf32>
    %113 = vector.shape_cast %112 : vector<1x32x32xf32> to vector<32x32xf32>
    %cst_56 = arith.constant dense<0.000000e+00> : vector<2x32xf32>
    %114 = tpu.matmul %55, %113, %cst_56 {dimension_numbers = #tpu.dot_dimension_numbers<[1], [0], [0], [1], [0, 0, 1, 1], [], []>} : vector<2x32xf32>, vector<32x32xf32>, vector<2x32xf32> -> vector<2x32xf32>
    %c2_57 = arith.constant 2 : index
    %c0_58 = arith.constant 0 : index
    %c0_59 = arith.constant 0 : index
    %115 = vector.load %arg4[%c2_57, %c0_58, %c0_59] : memref<3x32x32xf32, #tpu.memory_space<vmem>>, vector<1x32x32xf32>
    %116 = vector.shape_cast %115 : vector<1x32x32xf32> to vector<32x32xf32>
    %cst_60 = arith.constant dense<0.000000e+00> : vector<2x32xf32>
    %117 = tpu.matmul %55, %116, %cst_60 {dimension_numbers = #tpu.dot_dimension_numbers<[1], [0], [0], [1], [0, 0, 1, 1], [], []>} : vector<2x32xf32>, vector<32x32xf32>, vector<2x32xf32> -> vector<2x32xf32>
    %118 = vector.extract_strided_slice %106 {offsets = [0, 0, 0], sizes = [1, 2, 32], strides = [1, 1, 1]} : vector<3x2x32xf32> to vector<1x2x32xf32>
    %119 = vector.shape_cast %118 : vector<1x2x32xf32> to vector<2x32xf32>
    %120 = arith.addf %119, %111 : vector<2x32xf32>
    %121 = arith.negf %120 : vector<2x32xf32>
    %122 = math.exp %121 : vector<2x32xf32>
    %cst_61 = arith.constant 1.000000e+00 : f32
    %123 = vector.broadcast %cst_61 : f32 to vector<2x32xf32>
    %124 = arith.addf %123, %122 : vector<2x32xf32>
    %125 = arith.divf %123, %124 : vector<2x32xf32>
    %126 = vector.extract_strided_slice %106 {offsets = [1, 0, 0], sizes = [1, 2, 32], strides = [1, 1, 1]} : vector<3x2x32xf32> to vector<1x2x32xf32>
    %127 = vector.shape_cast %126 : vector<1x2x32xf32> to vector<2x32xf32>
    %128 = arith.addf %127, %114 : vector<2x32xf32>
    %129 = arith.negf %128 : vector<2x32xf32>
    %130 = math.exp %129 : vector<2x32xf32>
    %cst_62 = arith.constant 1.000000e+00 : f32
    %131 = vector.broadcast %cst_62 : f32 to vector<2x32xf32>
    %132 = arith.addf %131, %130 : vector<2x32xf32>
    %133 = arith.divf %131, %132 : vector<2x32xf32>
    %134 = vector.extract_strided_slice %106 {offsets = [2, 0, 0], sizes = [1, 2, 32], strides = [1, 1, 1]} : vector<3x2x32xf32> to vector<1x2x32xf32>
    %135 = vector.shape_cast %134 : vector<1x2x32xf32> to vector<2x32xf32>
    %136 = vector.broadcast %4 : vector<1x32xf32> to vector<2x32xf32>
    %137 = arith.addf %117, %136 : vector<2x32xf32>
    %138 = arith.mulf %125, %137 : vector<2x32xf32>
    %139 = arith.addf %135, %138 : vector<2x32xf32>
    %140 = math.tanh %139 : vector<2x32xf32>
    %cst_63 = arith.constant 1.000000e+00 : f32
    %141 = vector.broadcast %cst_63 : f32 to vector<2x32xf32>
    %142 = arith.subf %141, %133 : vector<2x32xf32>
    %143 = arith.mulf %142, %140 : vector<2x32xf32>
    %144 = arith.mulf %133, %55 : vector<2x32xf32>
    %145 = arith.addf %143, %144 : vector<2x32xf32>
    %146 = vector.shape_cast %108 : vector<2x1xi1> to vector<2x1xi1>
    %147 = vector.broadcast %146 : vector<2x1xi1> to vector<2x32xi1>
    %148 = arith.select %147, %145, %55 : vector<2x32xi1>, vector<2x32xf32>
    %149 = arith.index_cast %c1_i32 : i32 to index
    %c0_64 = arith.constant 0 : index
    %c0_65 = arith.constant 0 : index
    %c0_66 = arith.constant 0 : index
    %150 = vector.load %arg3[%149, %c0_64, %c0_65, %c0_66] : memref<8x3x2x32xf32, #tpu.memory_space<vmem>>, vector<1x3x2x32xf32>
    %151 = vector.shape_cast %150 : vector<1x3x2x32xf32> to vector<3x2x32xf32>
    %152 = vector.broadcast %103 : i32 to vector<2x1xi32>
    %153 = arith.cmpi slt, %152, %3 : vector<2x1xi32>
    %c0_67 = arith.constant 0 : index
    %c0_68 = arith.constant 0 : index
    %c0_69 = arith.constant 0 : index
    %154 = vector.load %arg5[%c0_67, %c0_68, %c0_69] : memref<3x32x32xf32, #tpu.memory_space<vmem>>, vector<1x32x32xf32>
    %155 = vector.shape_cast %154 : vector<1x32x32xf32> to vector<32x32xf32>
    %cst_70 = arith.constant dense<0.000000e+00> : vector<2x32xf32>
    %156 = tpu.matmul %100, %155, %cst_70 {dimension_numbers = #tpu.dot_dimension_numbers<[1], [0], [0], [1], [0, 0, 1, 1], [], []>} : vector<2x32xf32>, vector<32x32xf32>, vector<2x32xf32> -> vector<2x32xf32>
    %c1_71 = arith.constant 1 : index
    %c0_72 = arith.constant 0 : index
    %c0_73 = arith.constant 0 : index
    %157 = vector.load %arg5[%c1_71, %c0_72, %c0_73] : memref<3x32x32xf32, #tpu.memory_space<vmem>>, vector<1x32x32xf32>
    %158 = vector.shape_cast %157 : vector<1x32x32xf32> to vector<32x32xf32>
    %cst_74 = arith.constant dense<0.000000e+00> : vector<2x32xf32>
    %159 = tpu.matmul %100, %158, %cst_74 {dimension_numbers = #tpu.dot_dimension_numbers<[1], [0], [0], [1], [0, 0, 1, 1], [], []>} : vector<2x32xf32>, vector<32x32xf32>, vector<2x32xf32> -> vector<2x32xf32>
    %c2_75 = arith.constant 2 : index
    %c0_76 = arith.constant 0 : index
    %c0_77 = arith.constant 0 : index
    %160 = vector.load %arg5[%c2_75, %c0_76, %c0_77] : memref<3x32x32xf32, #tpu.memory_space<vmem>>, vector<1x32x32xf32>
    %161 = vector.shape_cast %160 : vector<1x32x32xf32> to vector<32x32xf32>
    %cst_78 = arith.constant dense<0.000000e+00> : vector<2x32xf32>
    %162 = tpu.matmul %100, %161, %cst_78 {dimension_numbers = #tpu.dot_dimension_numbers<[1], [0], [0], [1], [0, 0, 1, 1], [], []>} : vector<2x32xf32>, vector<32x32xf32>, vector<2x32xf32> -> vector<2x32xf32>
    %163 = vector.extract_strided_slice %151 {offsets = [0, 0, 0], sizes = [1, 2, 32], strides = [1, 1, 1]} : vector<3x2x32xf32> to vector<1x2x32xf32>
    %164 = vector.shape_cast %163 : vector<1x2x32xf32> to vector<2x32xf32>
    %165 = arith.addf %164, %156 : vector<2x32xf32>
    %166 = arith.negf %165 : vector<2x32xf32>
    %167 = math.exp %166 : vector<2x32xf32>
    %cst_79 = arith.constant 1.000000e+00 : f32
    %168 = vector.broadcast %cst_79 : f32 to vector<2x32xf32>
    %169 = arith.addf %168, %167 : vector<2x32xf32>
    %170 = arith.divf %168, %169 : vector<2x32xf32>
    %171 = vector.extract_strided_slice %151 {offsets = [1, 0, 0], sizes = [1, 2, 32], strides = [1, 1, 1]} : vector<3x2x32xf32> to vector<1x2x32xf32>
    %172 = vector.shape_cast %171 : vector<1x2x32xf32> to vector<2x32xf32>
    %173 = arith.addf %172, %159 : vector<2x32xf32>
    %174 = arith.negf %173 : vector<2x32xf32>
    %175 = math.exp %174 : vector<2x32xf32>
    %cst_80 = arith.constant 1.000000e+00 : f32
    %176 = vector.broadcast %cst_80 : f32 to vector<2x32xf32>
    %177 = arith.addf %176, %175 : vector<2x32xf32>
    %178 = arith.divf %176, %177 : vector<2x32xf32>
    %179 = vector.extract_strided_slice %151 {offsets = [2, 0, 0], sizes = [1, 2, 32], strides = [1, 1, 1]} : vector<3x2x32xf32> to vector<1x2x32xf32>
    %180 = vector.shape_cast %179 : vector<1x2x32xf32> to vector<2x32xf32>
    %181 = vector.broadcast %5 : vector<1x32xf32> to vector<2x32xf32>
    %182 = arith.addf %162, %181 : vector<2x32xf32>
    %183 = arith.mulf %170, %182 : vector<2x32xf32>
    %184 = arith.addf %180, %183 : vector<2x32xf32>
    %185 = math.tanh %184 : vector<2x32xf32>
    %cst_81 = arith.constant 1.000000e+00 : f32
    %186 = vector.broadcast %cst_81 : f32 to vector<2x32xf32>
    %187 = arith.subf %186, %178 : vector<2x32xf32>
    %188 = arith.mulf %187, %185 : vector<2x32xf32>
    %189 = arith.mulf %178, %100 : vector<2x32xf32>
    %190 = arith.addf %188, %189 : vector<2x32xf32>
    %191 = vector.shape_cast %153 : vector<2x1xi1> to vector<2x1xi1>
    %192 = vector.broadcast %191 : vector<2x1xi1> to vector<2x32xi1>
    %193 = arith.select %192, %190, %100 : vector<2x32xi1>, vector<2x32xf32>
    %c2_i32 = arith.constant 2 : i32
    %c8_i32_82 = arith.constant 8 : i32
    %194 = arith.muli %arg0, %c8_i32_82 : i32
    %195 = arith.addi %194, %c2_i32 : i32
    %c7_i32_83 = arith.constant 7 : i32
    %196 = arith.subi %c7_i32_83, %195 : i32
    %197 = arith.index_cast %c2_i32 : i32 to index
    %c0_84 = arith.constant 0 : index
    %c0_85 = arith.constant 0 : index
    %c0_86 = arith.constant 0 : index
    %198 = vector.load %arg2[%197, %c0_84, %c0_85, %c0_86] : memref<8x3x2x32xf32, #tpu.memory_space<vmem>>, vector<1x3x2x32xf32>
    %199 = vector.shape_cast %198 : vector<1x3x2x32xf32> to vector<3x2x32xf32>
    %200 = vector.broadcast %195 : i32 to vector<2x1xi32>
    %201 = arith.cmpi slt, %200, %3 : vector<2x1xi32>
    %c0_87 = arith.constant 0 : index
    %c0_88 = arith.constant 0 : index
    %c0_89 = arith.constant 0 : index
    %202 = vector.load %arg4[%c0_87, %c0_88, %c0_89] : memref<3x32x32xf32, #tpu.memory_space<vmem>>, vector<1x32x32xf32>
    %203 = vector.shape_cast %202 : vector<1x32x32xf32> to vector<32x32xf32>
    %cst_90 = arith.constant dense<0.000000e+00> : vector<2x32xf32>
    %204 = tpu.matmul %148, %203, %cst_90 {dimension_numbers = #tpu.dot_dimension_numbers<[1], [0], [0], [1], [0, 0, 1, 1], [], []>} : vector<2x32xf32>, vector<32x32xf32>, vector<2x32xf32> -> vector<2x32xf32>
    %c1_91 = arith.constant 1 : index
    %c0_92 = arith.constant 0 : index
    %c0_93 = arith.constant 0 : index
    %205 = vector.load %arg4[%c1_91, %c0_92, %c0_93] : memref<3x32x32xf32, #tpu.memory_space<vmem>>, vector<1x32x32xf32>
    %206 = vector.shape_cast %205 : vector<1x32x32xf32> to vector<32x32xf32>
    %cst_94 = arith.constant dense<0.000000e+00> : vector<2x32xf32>
    %207 = tpu.matmul %148, %206, %cst_94 {dimension_numbers = #tpu.dot_dimension_numbers<[1], [0], [0], [1], [0, 0, 1, 1], [], []>} : vector<2x32xf32>, vector<32x32xf32>, vector<2x32xf32> -> vector<2x32xf32>
    %c2_95 = arith.constant 2 : index
    %c0_96 = arith.constant 0 : index
    %c0_97 = arith.constant 0 : index
    %208 = vector.load %arg4[%c2_95, %c0_96, %c0_97] : memref<3x32x32xf32, #tpu.memory_space<vmem>>, vector<1x32x32xf32>
    %209 = vector.shape_cast %208 : vector<1x32x32xf32> to vector<32x32xf32>
    %cst_98 = arith.constant dense<0.000000e+00> : vector<2x32xf32>
    %210 = tpu.matmul %148, %209, %cst_98 {dimension_numbers = #tpu.dot_dimension_numbers<[1], [0], [0], [1], [0, 0, 1, 1], [], []>} : vector<2x32xf32>, vector<32x32xf32>, vector<2x32xf32> -> vector<2x32xf32>
    %211 = vector.extract_strided_slice %199 {offsets = [0, 0, 0], sizes = [1, 2, 32], strides = [1, 1, 1]} : vector<3x2x32xf32> to vector<1x2x32xf32>
    %212 = vector.shape_cast %211 : vector<1x2x32xf32> to vector<2x32xf32>
    %213 = arith.addf %212, %204 : vector<2x32xf32>
    %214 = arith.negf %213 : vector<2x32xf32>
    %215 = math.exp %214 : vector<2x32xf32>
    %cst_99 = arith.constant 1.000000e+00 : f32
    %216 = vector.broadcast %cst_99 : f32 to vector<2x32xf32>
    %217 = arith.addf %216, %215 : vector<2x32xf32>
    %218 = arith.divf %216, %217 : vector<2x32xf32>
    %219 = vector.extract_strided_slice %199 {offsets = [1, 0, 0], sizes = [1, 2, 32], strides = [1, 1, 1]} : vector<3x2x32xf32> to vector<1x2x32xf32>
    %220 = vector.shape_cast %219 : vector<1x2x32xf32> to vector<2x32xf32>
    %221 = arith.addf %220, %207 : vector<2x32xf32>
    %222 = arith.negf %221 : vector<2x32xf32>
    %223 = math.exp %222 : vector<2x32xf32>
    %cst_100 = arith.constant 1.000000e+00 : f32
    %224 = vector.broadcast %cst_100 : f32 to vector<2x32xf32>
    %225 = arith.addf %224, %223 : vector<2x32xf32>
    %226 = arith.divf %224, %225 : vector<2x32xf32>
    %227 = vector.extract_strided_slice %199 {offsets = [2, 0, 0], sizes = [1, 2, 32], strides = [1, 1, 1]} : vector<3x2x32xf32> to vector<1x2x32xf32>
    %228 = vector.shape_cast %227 : vector<1x2x32xf32> to vector<2x32xf32>
    %229 = vector.broadcast %4 : vector<1x32xf32> to vector<2x32xf32>
    %230 = arith.addf %210, %229 : vector<2x32xf32>
    %231 = arith.mulf %218, %230 : vector<2x32xf32>
    %232 = arith.addf %228, %231 : vector<2x32xf32>
    %233 = math.tanh %232 : vector<2x32xf32>
    %cst_101 = arith.constant 1.000000e+00 : f32
    %234 = vector.broadcast %cst_101 : f32 to vector<2x32xf32>
    %235 = arith.subf %234, %226 : vector<2x32xf32>
    %236 = arith.mulf %235, %233 : vector<2x32xf32>
    %237 = arith.mulf %226, %148 : vector<2x32xf32>
    %238 = arith.addf %236, %237 : vector<2x32xf32>
    %239 = vector.shape_cast %201 : vector<2x1xi1> to vector<2x1xi1>
    %240 = vector.broadcast %239 : vector<2x1xi1> to vector<2x32xi1>
    %241 = arith.select %240, %238, %148 : vector<2x32xi1>, vector<2x32xf32>
    %242 = arith.index_cast %c2_i32 : i32 to index
    %c0_102 = arith.constant 0 : index
    %c0_103 = arith.constant 0 : index
    %c0_104 = arith.constant 0 : index
    %243 = vector.load %arg3[%242, %c0_102, %c0_103, %c0_104] : memref<8x3x2x32xf32, #tpu.memory_space<vmem>>, vector<1x3x2x32xf32>
    %244 = vector.shape_cast %243 : vector<1x3x2x32xf32> to vector<3x2x32xf32>
    %245 = vector.broadcast %196 : i32 to vector<2x1xi32>
    %246 = arith.cmpi slt, %245, %3 : vector<2x1xi32>
    %c0_105 = arith.constant 0 : index
    %c0_106 = arith.constant 0 : index
    %c0_107 = arith.constant 0 : index
    %247 = vector.load %arg5[%c0_105, %c0_106, %c0_107] : memref<3x32x32xf32, #tpu.memory_space<vmem>>, vector<1x32x32xf32>
    %248 = vector.shape_cast %247 : vector<1x32x32xf32> to vector<32x32xf32>
    %cst_108 = arith.constant dense<0.000000e+00> : vector<2x32xf32>
    %249 = tpu.matmul %193, %248, %cst_108 {dimension_numbers = #tpu.dot_dimension_numbers<[1], [0], [0], [1], [0, 0, 1, 1], [], []>} : vector<2x32xf32>, vector<32x32xf32>, vector<2x32xf32> -> vector<2x32xf32>
    %c1_109 = arith.constant 1 : index
    %c0_110 = arith.constant 0 : index
    %c0_111 = arith.constant 0 : index
    %250 = vector.load %arg5[%c1_109, %c0_110, %c0_111] : memref<3x32x32xf32, #tpu.memory_space<vmem>>, vector<1x32x32xf32>
    %251 = vector.shape_cast %250 : vector<1x32x32xf32> to vector<32x32xf32>
    %cst_112 = arith.constant dense<0.000000e+00> : vector<2x32xf32>
    %252 = tpu.matmul %193, %251, %cst_112 {dimension_numbers = #tpu.dot_dimension_numbers<[1], [0], [0], [1], [0, 0, 1, 1], [], []>} : vector<2x32xf32>, vector<32x32xf32>, vector<2x32xf32> -> vector<2x32xf32>
    %c2_113 = arith.constant 2 : index
    %c0_114 = arith.constant 0 : index
    %c0_115 = arith.constant 0 : index
    %253 = vector.load %arg5[%c2_113, %c0_114, %c0_115] : memref<3x32x32xf32, #tpu.memory_space<vmem>>, vector<1x32x32xf32>
    %254 = vector.shape_cast %253 : vector<1x32x32xf32> to vector<32x32xf32>
    %cst_116 = arith.constant dense<0.000000e+00> : vector<2x32xf32>
    %255 = tpu.matmul %193, %254, %cst_116 {dimension_numbers = #tpu.dot_dimension_numbers<[1], [0], [0], [1], [0, 0, 1, 1], [], []>} : vector<2x32xf32>, vector<32x32xf32>, vector<2x32xf32> -> vector<2x32xf32>
    %256 = vector.extract_strided_slice %244 {offsets = [0, 0, 0], sizes = [1, 2, 32], strides = [1, 1, 1]} : vector<3x2x32xf32> to vector<1x2x32xf32>
    %257 = vector.shape_cast %256 : vector<1x2x32xf32> to vector<2x32xf32>
    %258 = arith.addf %257, %249 : vector<2x32xf32>
    %259 = arith.negf %258 : vector<2x32xf32>
    %260 = math.exp %259 : vector<2x32xf32>
    %cst_117 = arith.constant 1.000000e+00 : f32
    %261 = vector.broadcast %cst_117 : f32 to vector<2x32xf32>
    %262 = arith.addf %261, %260 : vector<2x32xf32>
    %263 = arith.divf %261, %262 : vector<2x32xf32>
    %264 = vector.extract_strided_slice %244 {offsets = [1, 0, 0], sizes = [1, 2, 32], strides = [1, 1, 1]} : vector<3x2x32xf32> to vector<1x2x32xf32>
    %265 = vector.shape_cast %264 : vector<1x2x32xf32> to vector<2x32xf32>
    %266 = arith.addf %265, %252 : vector<2x32xf32>
    %267 = arith.negf %266 : vector<2x32xf32>
    %268 = math.exp %267 : vector<2x32xf32>
    %cst_118 = arith.constant 1.000000e+00 : f32
    %269 = vector.broadcast %cst_118 : f32 to vector<2x32xf32>
    %270 = arith.addf %269, %268 : vector<2x32xf32>
    %271 = arith.divf %269, %270 : vector<2x32xf32>
    %272 = vector.extract_strided_slice %244 {offsets = [2, 0, 0], sizes = [1, 2, 32], strides = [1, 1, 1]} : vector<3x2x32xf32> to vector<1x2x32xf32>
    %273 = vector.shape_cast %272 : vector<1x2x32xf32> to vector<2x32xf32>
    %274 = vector.broadcast %5 : vector<1x32xf32> to vector<2x32xf32>
    %275 = arith.addf %255, %274 : vector<2x32xf32>
    %276 = arith.mulf %263, %275 : vector<2x32xf32>
    %277 = arith.addf %273, %276 : vector<2x32xf32>
    %278 = math.tanh %277 : vector<2x32xf32>
    %cst_119 = arith.constant 1.000000e+00 : f32
    %279 = vector.broadcast %cst_119 : f32 to vector<2x32xf32>
    %280 = arith.subf %279, %271 : vector<2x32xf32>
    %281 = arith.mulf %280, %278 : vector<2x32xf32>
    %282 = arith.mulf %271, %193 : vector<2x32xf32>
    %283 = arith.addf %281, %282 : vector<2x32xf32>
    %284 = vector.shape_cast %246 : vector<2x1xi1> to vector<2x1xi1>
    %285 = vector.broadcast %284 : vector<2x1xi1> to vector<2x32xi1>
    %286 = arith.select %285, %283, %193 : vector<2x32xi1>, vector<2x32xf32>
    %c3_i32 = arith.constant 3 : i32
    %c8_i32_120 = arith.constant 8 : i32
    %287 = arith.muli %arg0, %c8_i32_120 : i32
    %288 = arith.addi %287, %c3_i32 : i32
    %c7_i32_121 = arith.constant 7 : i32
    %289 = arith.subi %c7_i32_121, %288 : i32
    %290 = arith.index_cast %c3_i32 : i32 to index
    %c0_122 = arith.constant 0 : index
    %c0_123 = arith.constant 0 : index
    %c0_124 = arith.constant 0 : index
    %291 = vector.load %arg2[%290, %c0_122, %c0_123, %c0_124] : memref<8x3x2x32xf32, #tpu.memory_space<vmem>>, vector<1x3x2x32xf32>
    %292 = vector.shape_cast %291 : vector<1x3x2x32xf32> to vector<3x2x32xf32>
    %293 = vector.broadcast %288 : i32 to vector<2x1xi32>
    %294 = arith.cmpi slt, %293, %3 : vector<2x1xi32>
    %c0_125 = arith.constant 0 : index
    %c0_126 = arith.constant 0 : index
    %c0_127 = arith.constant 0 : index
    %295 = vector.load %arg4[%c0_125, %c0_126, %c0_127] : memref<3x32x32xf32, #tpu.memory_space<vmem>>, vector<1x32x32xf32>
    %296 = vector.shape_cast %295 : vector<1x32x32xf32> to vector<32x32xf32>
    %cst_128 = arith.constant dense<0.000000e+00> : vector<2x32xf32>
    %297 = tpu.matmul %241, %296, %cst_128 {dimension_numbers = #tpu.dot_dimension_numbers<[1], [0], [0], [1], [0, 0, 1, 1], [], []>} : vector<2x32xf32>, vector<32x32xf32>, vector<2x32xf32> -> vector<2x32xf32>
    %c1_129 = arith.constant 1 : index
    %c0_130 = arith.constant 0 : index
    %c0_131 = arith.constant 0 : index
    %298 = vector.load %arg4[%c1_129, %c0_130, %c0_131] : memref<3x32x32xf32, #tpu.memory_space<vmem>>, vector<1x32x32xf32>
    %299 = vector.shape_cast %298 : vector<1x32x32xf32> to vector<32x32xf32>
    %cst_132 = arith.constant dense<0.000000e+00> : vector<2x32xf32>
    %300 = tpu.matmul %241, %299, %cst_132 {dimension_numbers = #tpu.dot_dimension_numbers<[1], [0], [0], [1], [0, 0, 1, 1], [], []>} : vector<2x32xf32>, vector<32x32xf32>, vector<2x32xf32> -> vector<2x32xf32>
    %c2_133 = arith.constant 2 : index
    %c0_134 = arith.constant 0 : index
    %c0_135 = arith.constant 0 : index
    %301 = vector.load %arg4[%c2_133, %c0_134, %c0_135] : memref<3x32x32xf32, #tpu.memory_space<vmem>>, vector<1x32x32xf32>
    %302 = vector.shape_cast %301 : vector<1x32x32xf32> to vector<32x32xf32>
    %cst_136 = arith.constant dense<0.000000e+00> : vector<2x32xf32>
    %303 = tpu.matmul %241, %302, %cst_136 {dimension_numbers = #tpu.dot_dimension_numbers<[1], [0], [0], [1], [0, 0, 1, 1], [], []>} : vector<2x32xf32>, vector<32x32xf32>, vector<2x32xf32> -> vector<2x32xf32>
    %304 = vector.extract_strided_slice %292 {offsets = [0, 0, 0], sizes = [1, 2, 32], strides = [1, 1, 1]} : vector<3x2x32xf32> to vector<1x2x32xf32>
    %305 = vector.shape_cast %304 : vector<1x2x32xf32> to vector<2x32xf32>
    %306 = arith.addf %305, %297 : vector<2x32xf32>
    %307 = arith.negf %306 : vector<2x32xf32>
    %308 = math.exp %307 : vector<2x32xf32>
    %cst_137 = arith.constant 1.000000e+00 : f32
    %309 = vector.broadcast %cst_137 : f32 to vector<2x32xf32>
    %310 = arith.addf %309, %308 : vector<2x32xf32>
    %311 = arith.divf %309, %310 : vector<2x32xf32>
    %312 = vector.extract_strided_slice %292 {offsets = [1, 0, 0], sizes = [1, 2, 32], strides = [1, 1, 1]} : vector<3x2x32xf32> to vector<1x2x32xf32>
    %313 = vector.shape_cast %312 : vector<1x2x32xf32> to vector<2x32xf32>
    %314 = arith.addf %313, %300 : vector<2x32xf32>
    %315 = arith.negf %314 : vector<2x32xf32>
    %316 = math.exp %315 : vector<2x32xf32>
    %cst_138 = arith.constant 1.000000e+00 : f32
    %317 = vector.broadcast %cst_138 : f32 to vector<2x32xf32>
    %318 = arith.addf %317, %316 : vector<2x32xf32>
    %319 = arith.divf %317, %318 : vector<2x32xf32>
    %320 = vector.extract_strided_slice %292 {offsets = [2, 0, 0], sizes = [1, 2, 32], strides = [1, 1, 1]} : vector<3x2x32xf32> to vector<1x2x32xf32>
    %321 = vector.shape_cast %320 : vector<1x2x32xf32> to vector<2x32xf32>
    %322 = vector.broadcast %4 : vector<1x32xf32> to vector<2x32xf32>
    %323 = arith.addf %303, %322 : vector<2x32xf32>
    %324 = arith.mulf %311, %323 : vector<2x32xf32>
    %325 = arith.addf %321, %324 : vector<2x32xf32>
    %326 = math.tanh %325 : vector<2x32xf32>
    %cst_139 = arith.constant 1.000000e+00 : f32
    %327 = vector.broadcast %cst_139 : f32 to vector<2x32xf32>
    %328 = arith.subf %327, %319 : vector<2x32xf32>
    %329 = arith.mulf %328, %326 : vector<2x32xf32>
    %330 = arith.mulf %319, %241 : vector<2x32xf32>
    %331 = arith.addf %329, %330 : vector<2x32xf32>
    %332 = vector.shape_cast %294 : vector<2x1xi1> to vector<2x1xi1>
    %333 = vector.broadcast %332 : vector<2x1xi1> to vector<2x32xi1>
    %334 = arith.select %333, %331, %241 : vector<2x32xi1>, vector<2x32xf32>
    %335 = arith.index_cast %c3_i32 : i32 to index
    %c0_140 = arith.constant 0 : index
    %c0_141 = arith.constant 0 : index
    %c0_142 = arith.constant 0 : index
    %336 = vector.load %arg3[%335, %c0_140, %c0_141, %c0_142] : memref<8x3x2x32xf32, #tpu.memory_space<vmem>>, vector<1x3x2x32xf32>
    %337 = vector.shape_cast %336 : vector<1x3x2x32xf32> to vector<3x2x32xf32>
    %338 = vector.broadcast %289 : i32 to vector<2x1xi32>
    %339 = arith.cmpi slt, %338, %3 : vector<2x1xi32>
    %c0_143 = arith.constant 0 : index
    %c0_144 = arith.constant 0 : index
    %c0_145 = arith.constant 0 : index
    %340 = vector.load %arg5[%c0_143, %c0_144, %c0_145] : memref<3x32x32xf32, #tpu.memory_space<vmem>>, vector<1x32x32xf32>
    %341 = vector.shape_cast %340 : vector<1x32x32xf32> to vector<32x32xf32>
    %cst_146 = arith.constant dense<0.000000e+00> : vector<2x32xf32>
    %342 = tpu.matmul %286, %341, %cst_146 {dimension_numbers = #tpu.dot_dimension_numbers<[1], [0], [0], [1], [0, 0, 1, 1], [], []>} : vector<2x32xf32>, vector<32x32xf32>, vector<2x32xf32> -> vector<2x32xf32>
    %c1_147 = arith.constant 1 : index
    %c0_148 = arith.constant 0 : index
    %c0_149 = arith.constant 0 : index
    %343 = vector.load %arg5[%c1_147, %c0_148, %c0_149] : memref<3x32x32xf32, #tpu.memory_space<vmem>>, vector<1x32x32xf32>
    %344 = vector.shape_cast %343 : vector<1x32x32xf32> to vector<32x32xf32>
    %cst_150 = arith.constant dense<0.000000e+00> : vector<2x32xf32>
    %345 = tpu.matmul %286, %344, %cst_150 {dimension_numbers = #tpu.dot_dimension_numbers<[1], [0], [0], [1], [0, 0, 1, 1], [], []>} : vector<2x32xf32>, vector<32x32xf32>, vector<2x32xf32> -> vector<2x32xf32>
    %c2_151 = arith.constant 2 : index
    %c0_152 = arith.constant 0 : index
    %c0_153 = arith.constant 0 : index
    %346 = vector.load %arg5[%c2_151, %c0_152, %c0_153] : memref<3x32x32xf32, #tpu.memory_space<vmem>>, vector<1x32x32xf32>
    %347 = vector.shape_cast %346 : vector<1x32x32xf32> to vector<32x32xf32>
    %cst_154 = arith.constant dense<0.000000e+00> : vector<2x32xf32>
    %348 = tpu.matmul %286, %347, %cst_154 {dimension_numbers = #tpu.dot_dimension_numbers<[1], [0], [0], [1], [0, 0, 1, 1], [], []>} : vector<2x32xf32>, vector<32x32xf32>, vector<2x32xf32> -> vector<2x32xf32>
    %349 = vector.extract_strided_slice %337 {offsets = [0, 0, 0], sizes = [1, 2, 32], strides = [1, 1, 1]} : vector<3x2x32xf32> to vector<1x2x32xf32>
    %350 = vector.shape_cast %349 : vector<1x2x32xf32> to vector<2x32xf32>
    %351 = arith.addf %350, %342 : vector<2x32xf32>
    %352 = arith.negf %351 : vector<2x32xf32>
    %353 = math.exp %352 : vector<2x32xf32>
    %cst_155 = arith.constant 1.000000e+00 : f32
    %354 = vector.broadcast %cst_155 : f32 to vector<2x32xf32>
    %355 = arith.addf %354, %353 : vector<2x32xf32>
    %356 = arith.divf %354, %355 : vector<2x32xf32>
    %357 = vector.extract_strided_slice %337 {offsets = [1, 0, 0], sizes = [1, 2, 32], strides = [1, 1, 1]} : vector<3x2x32xf32> to vector<1x2x32xf32>
    %358 = vector.shape_cast %357 : vector<1x2x32xf32> to vector<2x32xf32>
    %359 = arith.addf %358, %345 : vector<2x32xf32>
    %360 = arith.negf %359 : vector<2x32xf32>
    %361 = math.exp %360 : vector<2x32xf32>
    %cst_156 = arith.constant 1.000000e+00 : f32
    %362 = vector.broadcast %cst_156 : f32 to vector<2x32xf32>
    %363 = arith.addf %362, %361 : vector<2x32xf32>
    %364 = arith.divf %362, %363 : vector<2x32xf32>
    %365 = vector.extract_strided_slice %337 {offsets = [2, 0, 0], sizes = [1, 2, 32], strides = [1, 1, 1]} : vector<3x2x32xf32> to vector<1x2x32xf32>
    %366 = vector.shape_cast %365 : vector<1x2x32xf32> to vector<2x32xf32>
    %367 = vector.broadcast %5 : vector<1x32xf32> to vector<2x32xf32>
    %368 = arith.addf %348, %367 : vector<2x32xf32>
    %369 = arith.mulf %356, %368 : vector<2x32xf32>
    %370 = arith.addf %366, %369 : vector<2x32xf32>
    %371 = math.tanh %370 : vector<2x32xf32>
    %cst_157 = arith.constant 1.000000e+00 : f32
    %372 = vector.broadcast %cst_157 : f32 to vector<2x32xf32>
    %373 = arith.subf %372, %364 : vector<2x32xf32>
    %374 = arith.mulf %373, %371 : vector<2x32xf32>
    %375 = arith.mulf %364, %286 : vector<2x32xf32>
    %376 = arith.addf %374, %375 : vector<2x32xf32>
    %377 = vector.shape_cast %339 : vector<2x1xi1> to vector<2x1xi1>
    %378 = vector.broadcast %377 : vector<2x1xi1> to vector<2x32xi1>
    %379 = arith.select %378, %376, %286 : vector<2x32xi1>, vector<2x32xf32>
    %c4_i32 = arith.constant 4 : i32
    %c8_i32_158 = arith.constant 8 : i32
    %380 = arith.muli %arg0, %c8_i32_158 : i32
    %381 = arith.addi %380, %c4_i32 : i32
    %c7_i32_159 = arith.constant 7 : i32
    %382 = arith.subi %c7_i32_159, %381 : i32
    %383 = arith.index_cast %c4_i32 : i32 to index
    %c0_160 = arith.constant 0 : index
    %c0_161 = arith.constant 0 : index
    %c0_162 = arith.constant 0 : index
    %384 = vector.load %arg2[%383, %c0_160, %c0_161, %c0_162] : memref<8x3x2x32xf32, #tpu.memory_space<vmem>>, vector<1x3x2x32xf32>
    %385 = vector.shape_cast %384 : vector<1x3x2x32xf32> to vector<3x2x32xf32>
    %386 = vector.broadcast %381 : i32 to vector<2x1xi32>
    %387 = arith.cmpi slt, %386, %3 : vector<2x1xi32>
    %c0_163 = arith.constant 0 : index
    %c0_164 = arith.constant 0 : index
    %c0_165 = arith.constant 0 : index
    %388 = vector.load %arg4[%c0_163, %c0_164, %c0_165] : memref<3x32x32xf32, #tpu.memory_space<vmem>>, vector<1x32x32xf32>
    %389 = vector.shape_cast %388 : vector<1x32x32xf32> to vector<32x32xf32>
    %cst_166 = arith.constant dense<0.000000e+00> : vector<2x32xf32>
    %390 = tpu.matmul %334, %389, %cst_166 {dimension_numbers = #tpu.dot_dimension_numbers<[1], [0], [0], [1], [0, 0, 1, 1], [], []>} : vector<2x32xf32>, vector<32x32xf32>, vector<2x32xf32> -> vector<2x32xf32>
    %c1_167 = arith.constant 1 : index
    %c0_168 = arith.constant 0 : index
    %c0_169 = arith.constant 0 : index
    %391 = vector.load %arg4[%c1_167, %c0_168, %c0_169] : memref<3x32x32xf32, #tpu.memory_space<vmem>>, vector<1x32x32xf32>
    %392 = vector.shape_cast %391 : vector<1x32x32xf32> to vector<32x32xf32>
    %cst_170 = arith.constant dense<0.000000e+00> : vector<2x32xf32>
    %393 = tpu.matmul %334, %392, %cst_170 {dimension_numbers = #tpu.dot_dimension_numbers<[1], [0], [0], [1], [0, 0, 1, 1], [], []>} : vector<2x32xf32>, vector<32x32xf32>, vector<2x32xf32> -> vector<2x32xf32>
    %c2_171 = arith.constant 2 : index
    %c0_172 = arith.constant 0 : index
    %c0_173 = arith.constant 0 : index
    %394 = vector.load %arg4[%c2_171, %c0_172, %c0_173] : memref<3x32x32xf32, #tpu.memory_space<vmem>>, vector<1x32x32xf32>
    %395 = vector.shape_cast %394 : vector<1x32x32xf32> to vector<32x32xf32>
    %cst_174 = arith.constant dense<0.000000e+00> : vector<2x32xf32>
    %396 = tpu.matmul %334, %395, %cst_174 {dimension_numbers = #tpu.dot_dimension_numbers<[1], [0], [0], [1], [0, 0, 1, 1], [], []>} : vector<2x32xf32>, vector<32x32xf32>, vector<2x32xf32> -> vector<2x32xf32>
    %397 = vector.extract_strided_slice %385 {offsets = [0, 0, 0], sizes = [1, 2, 32], strides = [1, 1, 1]} : vector<3x2x32xf32> to vector<1x2x32xf32>
    %398 = vector.shape_cast %397 : vector<1x2x32xf32> to vector<2x32xf32>
    %399 = arith.addf %398, %390 : vector<2x32xf32>
    %400 = arith.negf %399 : vector<2x32xf32>
    %401 = math.exp %400 : vector<2x32xf32>
    %cst_175 = arith.constant 1.000000e+00 : f32
    %402 = vector.broadcast %cst_175 : f32 to vector<2x32xf32>
    %403 = arith.addf %402, %401 : vector<2x32xf32>
    %404 = arith.divf %402, %403 : vector<2x32xf32>
    %405 = vector.extract_strided_slice %385 {offsets = [1, 0, 0], sizes = [1, 2, 32], strides = [1, 1, 1]} : vector<3x2x32xf32> to vector<1x2x32xf32>
    %406 = vector.shape_cast %405 : vector<1x2x32xf32> to vector<2x32xf32>
    %407 = arith.addf %406, %393 : vector<2x32xf32>
    %408 = arith.negf %407 : vector<2x32xf32>
    %409 = math.exp %408 : vector<2x32xf32>
    %cst_176 = arith.constant 1.000000e+00 : f32
    %410 = vector.broadcast %cst_176 : f32 to vector<2x32xf32>
    %411 = arith.addf %410, %409 : vector<2x32xf32>
    %412 = arith.divf %410, %411 : vector<2x32xf32>
    %413 = vector.extract_strided_slice %385 {offsets = [2, 0, 0], sizes = [1, 2, 32], strides = [1, 1, 1]} : vector<3x2x32xf32> to vector<1x2x32xf32>
    %414 = vector.shape_cast %413 : vector<1x2x32xf32> to vector<2x32xf32>
    %415 = vector.broadcast %4 : vector<1x32xf32> to vector<2x32xf32>
    %416 = arith.addf %396, %415 : vector<2x32xf32>
    %417 = arith.mulf %404, %416 : vector<2x32xf32>
    %418 = arith.addf %414, %417 : vector<2x32xf32>
    %419 = math.tanh %418 : vector<2x32xf32>
    %cst_177 = arith.constant 1.000000e+00 : f32
    %420 = vector.broadcast %cst_177 : f32 to vector<2x32xf32>
    %421 = arith.subf %420, %412 : vector<2x32xf32>
    %422 = arith.mulf %421, %419 : vector<2x32xf32>
    %423 = arith.mulf %412, %334 : vector<2x32xf32>
    %424 = arith.addf %422, %423 : vector<2x32xf32>
    %425 = vector.shape_cast %387 : vector<2x1xi1> to vector<2x1xi1>
    %426 = vector.broadcast %425 : vector<2x1xi1> to vector<2x32xi1>
    %427 = arith.select %426, %424, %334 : vector<2x32xi1>, vector<2x32xf32>
    %428 = arith.index_cast %c4_i32 : i32 to index
    %c0_178 = arith.constant 0 : index
    %c0_179 = arith.constant 0 : index
    %c0_180 = arith.constant 0 : index
    %429 = vector.load %arg3[%428, %c0_178, %c0_179, %c0_180] : memref<8x3x2x32xf32, #tpu.memory_space<vmem>>, vector<1x3x2x32xf32>
    %430 = vector.shape_cast %429 : vector<1x3x2x32xf32> to vector<3x2x32xf32>
    %431 = vector.broadcast %382 : i32 to vector<2x1xi32>
    %432 = arith.cmpi slt, %431, %3 : vector<2x1xi32>
    %c0_181 = arith.constant 0 : index
    %c0_182 = arith.constant 0 : index
    %c0_183 = arith.constant 0 : index
    %433 = vector.load %arg5[%c0_181, %c0_182, %c0_183] : memref<3x32x32xf32, #tpu.memory_space<vmem>>, vector<1x32x32xf32>
    %434 = vector.shape_cast %433 : vector<1x32x32xf32> to vector<32x32xf32>
    %cst_184 = arith.constant dense<0.000000e+00> : vector<2x32xf32>
    %435 = tpu.matmul %379, %434, %cst_184 {dimension_numbers = #tpu.dot_dimension_numbers<[1], [0], [0], [1], [0, 0, 1, 1], [], []>} : vector<2x32xf32>, vector<32x32xf32>, vector<2x32xf32> -> vector<2x32xf32>
    %c1_185 = arith.constant 1 : index
    %c0_186 = arith.constant 0 : index
    %c0_187 = arith.constant 0 : index
    %436 = vector.load %arg5[%c1_185, %c0_186, %c0_187] : memref<3x32x32xf32, #tpu.memory_space<vmem>>, vector<1x32x32xf32>
    %437 = vector.shape_cast %436 : vector<1x32x32xf32> to vector<32x32xf32>
    %cst_188 = arith.constant dense<0.000000e+00> : vector<2x32xf32>
    %438 = tpu.matmul %379, %437, %cst_188 {dimension_numbers = #tpu.dot_dimension_numbers<[1], [0], [0], [1], [0, 0, 1, 1], [], []>} : vector<2x32xf32>, vector<32x32xf32>, vector<2x32xf32> -> vector<2x32xf32>
    %c2_189 = arith.constant 2 : index
    %c0_190 = arith.constant 0 : index
    %c0_191 = arith.constant 0 : index
    %439 = vector.load %arg5[%c2_189, %c0_190, %c0_191] : memref<3x32x32xf32, #tpu.memory_space<vmem>>, vector<1x32x32xf32>
    %440 = vector.shape_cast %439 : vector<1x32x32xf32> to vector<32x32xf32>
    %cst_192 = arith.constant dense<0.000000e+00> : vector<2x32xf32>
    %441 = tpu.matmul %379, %440, %cst_192 {dimension_numbers = #tpu.dot_dimension_numbers<[1], [0], [0], [1], [0, 0, 1, 1], [], []>} : vector<2x32xf32>, vector<32x32xf32>, vector<2x32xf32> -> vector<2x32xf32>
    %442 = vector.extract_strided_slice %430 {offsets = [0, 0, 0], sizes = [1, 2, 32], strides = [1, 1, 1]} : vector<3x2x32xf32> to vector<1x2x32xf32>
    %443 = vector.shape_cast %442 : vector<1x2x32xf32> to vector<2x32xf32>
    %444 = arith.addf %443, %435 : vector<2x32xf32>
    %445 = arith.negf %444 : vector<2x32xf32>
    %446 = math.exp %445 : vector<2x32xf32>
    %cst_193 = arith.constant 1.000000e+00 : f32
    %447 = vector.broadcast %cst_193 : f32 to vector<2x32xf32>
    %448 = arith.addf %447, %446 : vector<2x32xf32>
    %449 = arith.divf %447, %448 : vector<2x32xf32>
    %450 = vector.extract_strided_slice %430 {offsets = [1, 0, 0], sizes = [1, 2, 32], strides = [1, 1, 1]} : vector<3x2x32xf32> to vector<1x2x32xf32>
    %451 = vector.shape_cast %450 : vector<1x2x32xf32> to vector<2x32xf32>
    %452 = arith.addf %451, %438 : vector<2x32xf32>
    %453 = arith.negf %452 : vector<2x32xf32>
    %454 = math.exp %453 : vector<2x32xf32>
    %cst_194 = arith.constant 1.000000e+00 : f32
    %455 = vector.broadcast %cst_194 : f32 to vector<2x32xf32>
    %456 = arith.addf %455, %454 : vector<2x32xf32>
    %457 = arith.divf %455, %456 : vector<2x32xf32>
    %458 = vector.extract_strided_slice %430 {offsets = [2, 0, 0], sizes = [1, 2, 32], strides = [1, 1, 1]} : vector<3x2x32xf32> to vector<1x2x32xf32>
    %459 = vector.shape_cast %458 : vector<1x2x32xf32> to vector<2x32xf32>
    %460 = vector.broadcast %5 : vector<1x32xf32> to vector<2x32xf32>
    %461 = arith.addf %441, %460 : vector<2x32xf32>
    %462 = arith.mulf %449, %461 : vector<2x32xf32>
    %463 = arith.addf %459, %462 : vector<2x32xf32>
    %464 = math.tanh %463 : vector<2x32xf32>
    %cst_195 = arith.constant 1.000000e+00 : f32
    %465 = vector.broadcast %cst_195 : f32 to vector<2x32xf32>
    %466 = arith.subf %465, %457 : vector<2x32xf32>
    %467 = arith.mulf %466, %464 : vector<2x32xf32>
    %468 = arith.mulf %457, %379 : vector<2x32xf32>
    %469 = arith.addf %467, %468 : vector<2x32xf32>
    %470 = vector.shape_cast %432 : vector<2x1xi1> to vector<2x1xi1>
    %471 = vector.broadcast %470 : vector<2x1xi1> to vector<2x32xi1>
    %472 = arith.select %471, %469, %379 : vector<2x32xi1>, vector<2x32xf32>
    %c5_i32 = arith.constant 5 : i32
    %c8_i32_196 = arith.constant 8 : i32
    %473 = arith.muli %arg0, %c8_i32_196 : i32
    %474 = arith.addi %473, %c5_i32 : i32
    %c7_i32_197 = arith.constant 7 : i32
    %475 = arith.subi %c7_i32_197, %474 : i32
    %476 = arith.index_cast %c5_i32 : i32 to index
    %c0_198 = arith.constant 0 : index
    %c0_199 = arith.constant 0 : index
    %c0_200 = arith.constant 0 : index
    %477 = vector.load %arg2[%476, %c0_198, %c0_199, %c0_200] : memref<8x3x2x32xf32, #tpu.memory_space<vmem>>, vector<1x3x2x32xf32>
    %478 = vector.shape_cast %477 : vector<1x3x2x32xf32> to vector<3x2x32xf32>
    %479 = vector.broadcast %474 : i32 to vector<2x1xi32>
    %480 = arith.cmpi slt, %479, %3 : vector<2x1xi32>
    %c0_201 = arith.constant 0 : index
    %c0_202 = arith.constant 0 : index
    %c0_203 = arith.constant 0 : index
    %481 = vector.load %arg4[%c0_201, %c0_202, %c0_203] : memref<3x32x32xf32, #tpu.memory_space<vmem>>, vector<1x32x32xf32>
    %482 = vector.shape_cast %481 : vector<1x32x32xf32> to vector<32x32xf32>
    %cst_204 = arith.constant dense<0.000000e+00> : vector<2x32xf32>
    %483 = tpu.matmul %427, %482, %cst_204 {dimension_numbers = #tpu.dot_dimension_numbers<[1], [0], [0], [1], [0, 0, 1, 1], [], []>} : vector<2x32xf32>, vector<32x32xf32>, vector<2x32xf32> -> vector<2x32xf32>
    %c1_205 = arith.constant 1 : index
    %c0_206 = arith.constant 0 : index
    %c0_207 = arith.constant 0 : index
    %484 = vector.load %arg4[%c1_205, %c0_206, %c0_207] : memref<3x32x32xf32, #tpu.memory_space<vmem>>, vector<1x32x32xf32>
    %485 = vector.shape_cast %484 : vector<1x32x32xf32> to vector<32x32xf32>
    %cst_208 = arith.constant dense<0.000000e+00> : vector<2x32xf32>
    %486 = tpu.matmul %427, %485, %cst_208 {dimension_numbers = #tpu.dot_dimension_numbers<[1], [0], [0], [1], [0, 0, 1, 1], [], []>} : vector<2x32xf32>, vector<32x32xf32>, vector<2x32xf32> -> vector<2x32xf32>
    %c2_209 = arith.constant 2 : index
    %c0_210 = arith.constant 0 : index
    %c0_211 = arith.constant 0 : index
    %487 = vector.load %arg4[%c2_209, %c0_210, %c0_211] : memref<3x32x32xf32, #tpu.memory_space<vmem>>, vector<1x32x32xf32>
    %488 = vector.shape_cast %487 : vector<1x32x32xf32> to vector<32x32xf32>
    %cst_212 = arith.constant dense<0.000000e+00> : vector<2x32xf32>
    %489 = tpu.matmul %427, %488, %cst_212 {dimension_numbers = #tpu.dot_dimension_numbers<[1], [0], [0], [1], [0, 0, 1, 1], [], []>} : vector<2x32xf32>, vector<32x32xf32>, vector<2x32xf32> -> vector<2x32xf32>
    %490 = vector.extract_strided_slice %478 {offsets = [0, 0, 0], sizes = [1, 2, 32], strides = [1, 1, 1]} : vector<3x2x32xf32> to vector<1x2x32xf32>
    %491 = vector.shape_cast %490 : vector<1x2x32xf32> to vector<2x32xf32>
    %492 = arith.addf %491, %483 : vector<2x32xf32>
    %493 = arith.negf %492 : vector<2x32xf32>
    %494 = math.exp %493 : vector<2x32xf32>
    %cst_213 = arith.constant 1.000000e+00 : f32
    %495 = vector.broadcast %cst_213 : f32 to vector<2x32xf32>
    %496 = arith.addf %495, %494 : vector<2x32xf32>
    %497 = arith.divf %495, %496 : vector<2x32xf32>
    %498 = vector.extract_strided_slice %478 {offsets = [1, 0, 0], sizes = [1, 2, 32], strides = [1, 1, 1]} : vector<3x2x32xf32> to vector<1x2x32xf32>
    %499 = vector.shape_cast %498 : vector<1x2x32xf32> to vector<2x32xf32>
    %500 = arith.addf %499, %486 : vector<2x32xf32>
    %501 = arith.negf %500 : vector<2x32xf32>
    %502 = math.exp %501 : vector<2x32xf32>
    %cst_214 = arith.constant 1.000000e+00 : f32
    %503 = vector.broadcast %cst_214 : f32 to vector<2x32xf32>
    %504 = arith.addf %503, %502 : vector<2x32xf32>
    %505 = arith.divf %503, %504 : vector<2x32xf32>
    %506 = vector.extract_strided_slice %478 {offsets = [2, 0, 0], sizes = [1, 2, 32], strides = [1, 1, 1]} : vector<3x2x32xf32> to vector<1x2x32xf32>
    %507 = vector.shape_cast %506 : vector<1x2x32xf32> to vector<2x32xf32>
    %508 = vector.broadcast %4 : vector<1x32xf32> to vector<2x32xf32>
    %509 = arith.addf %489, %508 : vector<2x32xf32>
    %510 = arith.mulf %497, %509 : vector<2x32xf32>
    %511 = arith.addf %507, %510 : vector<2x32xf32>
    %512 = math.tanh %511 : vector<2x32xf32>
    %cst_215 = arith.constant 1.000000e+00 : f32
    %513 = vector.broadcast %cst_215 : f32 to vector<2x32xf32>
    %514 = arith.subf %513, %505 : vector<2x32xf32>
    %515 = arith.mulf %514, %512 : vector<2x32xf32>
    %516 = arith.mulf %505, %427 : vector<2x32xf32>
    %517 = arith.addf %515, %516 : vector<2x32xf32>
    %518 = vector.shape_cast %480 : vector<2x1xi1> to vector<2x1xi1>
    %519 = vector.broadcast %518 : vector<2x1xi1> to vector<2x32xi1>
    %520 = arith.select %519, %517, %427 : vector<2x32xi1>, vector<2x32xf32>
    %521 = arith.index_cast %c5_i32 : i32 to index
    %c0_216 = arith.constant 0 : index
    %c0_217 = arith.constant 0 : index
    %c0_218 = arith.constant 0 : index
    %522 = vector.load %arg3[%521, %c0_216, %c0_217, %c0_218] : memref<8x3x2x32xf32, #tpu.memory_space<vmem>>, vector<1x3x2x32xf32>
    %523 = vector.shape_cast %522 : vector<1x3x2x32xf32> to vector<3x2x32xf32>
    %524 = vector.broadcast %475 : i32 to vector<2x1xi32>
    %525 = arith.cmpi slt, %524, %3 : vector<2x1xi32>
    %c0_219 = arith.constant 0 : index
    %c0_220 = arith.constant 0 : index
    %c0_221 = arith.constant 0 : index
    %526 = vector.load %arg5[%c0_219, %c0_220, %c0_221] : memref<3x32x32xf32, #tpu.memory_space<vmem>>, vector<1x32x32xf32>
    %527 = vector.shape_cast %526 : vector<1x32x32xf32> to vector<32x32xf32>
    %cst_222 = arith.constant dense<0.000000e+00> : vector<2x32xf32>
    %528 = tpu.matmul %472, %527, %cst_222 {dimension_numbers = #tpu.dot_dimension_numbers<[1], [0], [0], [1], [0, 0, 1, 1], [], []>} : vector<2x32xf32>, vector<32x32xf32>, vector<2x32xf32> -> vector<2x32xf32>
    %c1_223 = arith.constant 1 : index
    %c0_224 = arith.constant 0 : index
    %c0_225 = arith.constant 0 : index
    %529 = vector.load %arg5[%c1_223, %c0_224, %c0_225] : memref<3x32x32xf32, #tpu.memory_space<vmem>>, vector<1x32x32xf32>
    %530 = vector.shape_cast %529 : vector<1x32x32xf32> to vector<32x32xf32>
    %cst_226 = arith.constant dense<0.000000e+00> : vector<2x32xf32>
    %531 = tpu.matmul %472, %530, %cst_226 {dimension_numbers = #tpu.dot_dimension_numbers<[1], [0], [0], [1], [0, 0, 1, 1], [], []>} : vector<2x32xf32>, vector<32x32xf32>, vector<2x32xf32> -> vector<2x32xf32>
    %c2_227 = arith.constant 2 : index
    %c0_228 = arith.constant 0 : index
    %c0_229 = arith.constant 0 : index
    %532 = vector.load %arg5[%c2_227, %c0_228, %c0_229] : memref<3x32x32xf32, #tpu.memory_space<vmem>>, vector<1x32x32xf32>
    %533 = vector.shape_cast %532 : vector<1x32x32xf32> to vector<32x32xf32>
    %cst_230 = arith.constant dense<0.000000e+00> : vector<2x32xf32>
    %534 = tpu.matmul %472, %533, %cst_230 {dimension_numbers = #tpu.dot_dimension_numbers<[1], [0], [0], [1], [0, 0, 1, 1], [], []>} : vector<2x32xf32>, vector<32x32xf32>, vector<2x32xf32> -> vector<2x32xf32>
    %535 = vector.extract_strided_slice %523 {offsets = [0, 0, 0], sizes = [1, 2, 32], strides = [1, 1, 1]} : vector<3x2x32xf32> to vector<1x2x32xf32>
    %536 = vector.shape_cast %535 : vector<1x2x32xf32> to vector<2x32xf32>
    %537 = arith.addf %536, %528 : vector<2x32xf32>
    %538 = arith.negf %537 : vector<2x32xf32>
    %539 = math.exp %538 : vector<2x32xf32>
    %cst_231 = arith.constant 1.000000e+00 : f32
    %540 = vector.broadcast %cst_231 : f32 to vector<2x32xf32>
    %541 = arith.addf %540, %539 : vector<2x32xf32>
    %542 = arith.divf %540, %541 : vector<2x32xf32>
    %543 = vector.extract_strided_slice %523 {offsets = [1, 0, 0], sizes = [1, 2, 32], strides = [1, 1, 1]} : vector<3x2x32xf32> to vector<1x2x32xf32>
    %544 = vector.shape_cast %543 : vector<1x2x32xf32> to vector<2x32xf32>
    %545 = arith.addf %544, %531 : vector<2x32xf32>
    %546 = arith.negf %545 : vector<2x32xf32>
    %547 = math.exp %546 : vector<2x32xf32>
    %cst_232 = arith.constant 1.000000e+00 : f32
    %548 = vector.broadcast %cst_232 : f32 to vector<2x32xf32>
    %549 = arith.addf %548, %547 : vector<2x32xf32>
    %550 = arith.divf %548, %549 : vector<2x32xf32>
    %551 = vector.extract_strided_slice %523 {offsets = [2, 0, 0], sizes = [1, 2, 32], strides = [1, 1, 1]} : vector<3x2x32xf32> to vector<1x2x32xf32>
    %552 = vector.shape_cast %551 : vector<1x2x32xf32> to vector<2x32xf32>
    %553 = vector.broadcast %5 : vector<1x32xf32> to vector<2x32xf32>
    %554 = arith.addf %534, %553 : vector<2x32xf32>
    %555 = arith.mulf %542, %554 : vector<2x32xf32>
    %556 = arith.addf %552, %555 : vector<2x32xf32>
    %557 = math.tanh %556 : vector<2x32xf32>
    %cst_233 = arith.constant 1.000000e+00 : f32
    %558 = vector.broadcast %cst_233 : f32 to vector<2x32xf32>
    %559 = arith.subf %558, %550 : vector<2x32xf32>
    %560 = arith.mulf %559, %557 : vector<2x32xf32>
    %561 = arith.mulf %550, %472 : vector<2x32xf32>
    %562 = arith.addf %560, %561 : vector<2x32xf32>
    %563 = vector.shape_cast %525 : vector<2x1xi1> to vector<2x1xi1>
    %564 = vector.broadcast %563 : vector<2x1xi1> to vector<2x32xi1>
    %565 = arith.select %564, %562, %472 : vector<2x32xi1>, vector<2x32xf32>
    %c6_i32 = arith.constant 6 : i32
    %c8_i32_234 = arith.constant 8 : i32
    %566 = arith.muli %arg0, %c8_i32_234 : i32
    %567 = arith.addi %566, %c6_i32 : i32
    %c7_i32_235 = arith.constant 7 : i32
    %568 = arith.subi %c7_i32_235, %567 : i32
    %569 = arith.index_cast %c6_i32 : i32 to index
    %c0_236 = arith.constant 0 : index
    %c0_237 = arith.constant 0 : index
    %c0_238 = arith.constant 0 : index
    %570 = vector.load %arg2[%569, %c0_236, %c0_237, %c0_238] : memref<8x3x2x32xf32, #tpu.memory_space<vmem>>, vector<1x3x2x32xf32>
    %571 = vector.shape_cast %570 : vector<1x3x2x32xf32> to vector<3x2x32xf32>
    %572 = vector.broadcast %567 : i32 to vector<2x1xi32>
    %573 = arith.cmpi slt, %572, %3 : vector<2x1xi32>
    %c0_239 = arith.constant 0 : index
    %c0_240 = arith.constant 0 : index
    %c0_241 = arith.constant 0 : index
    %574 = vector.load %arg4[%c0_239, %c0_240, %c0_241] : memref<3x32x32xf32, #tpu.memory_space<vmem>>, vector<1x32x32xf32>
    %575 = vector.shape_cast %574 : vector<1x32x32xf32> to vector<32x32xf32>
    %cst_242 = arith.constant dense<0.000000e+00> : vector<2x32xf32>
    %576 = tpu.matmul %520, %575, %cst_242 {dimension_numbers = #tpu.dot_dimension_numbers<[1], [0], [0], [1], [0, 0, 1, 1], [], []>} : vector<2x32xf32>, vector<32x32xf32>, vector<2x32xf32> -> vector<2x32xf32>
    %c1_243 = arith.constant 1 : index
    %c0_244 = arith.constant 0 : index
    %c0_245 = arith.constant 0 : index
    %577 = vector.load %arg4[%c1_243, %c0_244, %c0_245] : memref<3x32x32xf32, #tpu.memory_space<vmem>>, vector<1x32x32xf32>
    %578 = vector.shape_cast %577 : vector<1x32x32xf32> to vector<32x32xf32>
    %cst_246 = arith.constant dense<0.000000e+00> : vector<2x32xf32>
    %579 = tpu.matmul %520, %578, %cst_246 {dimension_numbers = #tpu.dot_dimension_numbers<[1], [0], [0], [1], [0, 0, 1, 1], [], []>} : vector<2x32xf32>, vector<32x32xf32>, vector<2x32xf32> -> vector<2x32xf32>
    %c2_247 = arith.constant 2 : index
    %c0_248 = arith.constant 0 : index
    %c0_249 = arith.constant 0 : index
    %580 = vector.load %arg4[%c2_247, %c0_248, %c0_249] : memref<3x32x32xf32, #tpu.memory_space<vmem>>, vector<1x32x32xf32>
    %581 = vector.shape_cast %580 : vector<1x32x32xf32> to vector<32x32xf32>
    %cst_250 = arith.constant dense<0.000000e+00> : vector<2x32xf32>
    %582 = tpu.matmul %520, %581, %cst_250 {dimension_numbers = #tpu.dot_dimension_numbers<[1], [0], [0], [1], [0, 0, 1, 1], [], []>} : vector<2x32xf32>, vector<32x32xf32>, vector<2x32xf32> -> vector<2x32xf32>
    %583 = vector.extract_strided_slice %571 {offsets = [0, 0, 0], sizes = [1, 2, 32], strides = [1, 1, 1]} : vector<3x2x32xf32> to vector<1x2x32xf32>
    %584 = vector.shape_cast %583 : vector<1x2x32xf32> to vector<2x32xf32>
    %585 = arith.addf %584, %576 : vector<2x32xf32>
    %586 = arith.negf %585 : vector<2x32xf32>
    %587 = math.exp %586 : vector<2x32xf32>
    %cst_251 = arith.constant 1.000000e+00 : f32
    %588 = vector.broadcast %cst_251 : f32 to vector<2x32xf32>
    %589 = arith.addf %588, %587 : vector<2x32xf32>
    %590 = arith.divf %588, %589 : vector<2x32xf32>
    %591 = vector.extract_strided_slice %571 {offsets = [1, 0, 0], sizes = [1, 2, 32], strides = [1, 1, 1]} : vector<3x2x32xf32> to vector<1x2x32xf32>
    %592 = vector.shape_cast %591 : vector<1x2x32xf32> to vector<2x32xf32>
    %593 = arith.addf %592, %579 : vector<2x32xf32>
    %594 = arith.negf %593 : vector<2x32xf32>
    %595 = math.exp %594 : vector<2x32xf32>
    %cst_252 = arith.constant 1.000000e+00 : f32
    %596 = vector.broadcast %cst_252 : f32 to vector<2x32xf32>
    %597 = arith.addf %596, %595 : vector<2x32xf32>
    %598 = arith.divf %596, %597 : vector<2x32xf32>
    %599 = vector.extract_strided_slice %571 {offsets = [2, 0, 0], sizes = [1, 2, 32], strides = [1, 1, 1]} : vector<3x2x32xf32> to vector<1x2x32xf32>
    %600 = vector.shape_cast %599 : vector<1x2x32xf32> to vector<2x32xf32>
    %601 = vector.broadcast %4 : vector<1x32xf32> to vector<2x32xf32>
    %602 = arith.addf %582, %601 : vector<2x32xf32>
    %603 = arith.mulf %590, %602 : vector<2x32xf32>
    %604 = arith.addf %600, %603 : vector<2x32xf32>
    %605 = math.tanh %604 : vector<2x32xf32>
    %cst_253 = arith.constant 1.000000e+00 : f32
    %606 = vector.broadcast %cst_253 : f32 to vector<2x32xf32>
    %607 = arith.subf %606, %598 : vector<2x32xf32>
    %608 = arith.mulf %607, %605 : vector<2x32xf32>
    %609 = arith.mulf %598, %520 : vector<2x32xf32>
    %610 = arith.addf %608, %609 : vector<2x32xf32>
    %611 = vector.shape_cast %573 : vector<2x1xi1> to vector<2x1xi1>
    %612 = vector.broadcast %611 : vector<2x1xi1> to vector<2x32xi1>
    %613 = arith.select %612, %610, %520 : vector<2x32xi1>, vector<2x32xf32>
    %614 = arith.index_cast %c6_i32 : i32 to index
    %c0_254 = arith.constant 0 : index
    %c0_255 = arith.constant 0 : index
    %c0_256 = arith.constant 0 : index
    %615 = vector.load %arg3[%614, %c0_254, %c0_255, %c0_256] : memref<8x3x2x32xf32, #tpu.memory_space<vmem>>, vector<1x3x2x32xf32>
    %616 = vector.shape_cast %615 : vector<1x3x2x32xf32> to vector<3x2x32xf32>
    %617 = vector.broadcast %568 : i32 to vector<2x1xi32>
    %618 = arith.cmpi slt, %617, %3 : vector<2x1xi32>
    %c0_257 = arith.constant 0 : index
    %c0_258 = arith.constant 0 : index
    %c0_259 = arith.constant 0 : index
    %619 = vector.load %arg5[%c0_257, %c0_258, %c0_259] : memref<3x32x32xf32, #tpu.memory_space<vmem>>, vector<1x32x32xf32>
    %620 = vector.shape_cast %619 : vector<1x32x32xf32> to vector<32x32xf32>
    %cst_260 = arith.constant dense<0.000000e+00> : vector<2x32xf32>
    %621 = tpu.matmul %565, %620, %cst_260 {dimension_numbers = #tpu.dot_dimension_numbers<[1], [0], [0], [1], [0, 0, 1, 1], [], []>} : vector<2x32xf32>, vector<32x32xf32>, vector<2x32xf32> -> vector<2x32xf32>
    %c1_261 = arith.constant 1 : index
    %c0_262 = arith.constant 0 : index
    %c0_263 = arith.constant 0 : index
    %622 = vector.load %arg5[%c1_261, %c0_262, %c0_263] : memref<3x32x32xf32, #tpu.memory_space<vmem>>, vector<1x32x32xf32>
    %623 = vector.shape_cast %622 : vector<1x32x32xf32> to vector<32x32xf32>
    %cst_264 = arith.constant dense<0.000000e+00> : vector<2x32xf32>
    %624 = tpu.matmul %565, %623, %cst_264 {dimension_numbers = #tpu.dot_dimension_numbers<[1], [0], [0], [1], [0, 0, 1, 1], [], []>} : vector<2x32xf32>, vector<32x32xf32>, vector<2x32xf32> -> vector<2x32xf32>
    %c2_265 = arith.constant 2 : index
    %c0_266 = arith.constant 0 : index
    %c0_267 = arith.constant 0 : index
    %625 = vector.load %arg5[%c2_265, %c0_266, %c0_267] : memref<3x32x32xf32, #tpu.memory_space<vmem>>, vector<1x32x32xf32>
    %626 = vector.shape_cast %625 : vector<1x32x32xf32> to vector<32x32xf32>
    %cst_268 = arith.constant dense<0.000000e+00> : vector<2x32xf32>
    %627 = tpu.matmul %565, %626, %cst_268 {dimension_numbers = #tpu.dot_dimension_numbers<[1], [0], [0], [1], [0, 0, 1, 1], [], []>} : vector<2x32xf32>, vector<32x32xf32>, vector<2x32xf32> -> vector<2x32xf32>
    %628 = vector.extract_strided_slice %616 {offsets = [0, 0, 0], sizes = [1, 2, 32], strides = [1, 1, 1]} : vector<3x2x32xf32> to vector<1x2x32xf32>
    %629 = vector.shape_cast %628 : vector<1x2x32xf32> to vector<2x32xf32>
    %630 = arith.addf %629, %621 : vector<2x32xf32>
    %631 = arith.negf %630 : vector<2x32xf32>
    %632 = math.exp %631 : vector<2x32xf32>
    %cst_269 = arith.constant 1.000000e+00 : f32
    %633 = vector.broadcast %cst_269 : f32 to vector<2x32xf32>
    %634 = arith.addf %633, %632 : vector<2x32xf32>
    %635 = arith.divf %633, %634 : vector<2x32xf32>
    %636 = vector.extract_strided_slice %616 {offsets = [1, 0, 0], sizes = [1, 2, 32], strides = [1, 1, 1]} : vector<3x2x32xf32> to vector<1x2x32xf32>
    %637 = vector.shape_cast %636 : vector<1x2x32xf32> to vector<2x32xf32>
    %638 = arith.addf %637, %624 : vector<2x32xf32>
    %639 = arith.negf %638 : vector<2x32xf32>
    %640 = math.exp %639 : vector<2x32xf32>
    %cst_270 = arith.constant 1.000000e+00 : f32
    %641 = vector.broadcast %cst_270 : f32 to vector<2x32xf32>
    %642 = arith.addf %641, %640 : vector<2x32xf32>
    %643 = arith.divf %641, %642 : vector<2x32xf32>
    %644 = vector.extract_strided_slice %616 {offsets = [2, 0, 0], sizes = [1, 2, 32], strides = [1, 1, 1]} : vector<3x2x32xf32> to vector<1x2x32xf32>
    %645 = vector.shape_cast %644 : vector<1x2x32xf32> to vector<2x32xf32>
    %646 = vector.broadcast %5 : vector<1x32xf32> to vector<2x32xf32>
    %647 = arith.addf %627, %646 : vector<2x32xf32>
    %648 = arith.mulf %635, %647 : vector<2x32xf32>
    %649 = arith.addf %645, %648 : vector<2x32xf32>
    %650 = math.tanh %649 : vector<2x32xf32>
    %cst_271 = arith.constant 1.000000e+00 : f32
    %651 = vector.broadcast %cst_271 : f32 to vector<2x32xf32>
    %652 = arith.subf %651, %643 : vector<2x32xf32>
    %653 = arith.mulf %652, %650 : vector<2x32xf32>
    %654 = arith.mulf %643, %565 : vector<2x32xf32>
    %655 = arith.addf %653, %654 : vector<2x32xf32>
    %656 = vector.shape_cast %618 : vector<2x1xi1> to vector<2x1xi1>
    %657 = vector.broadcast %656 : vector<2x1xi1> to vector<2x32xi1>
    %658 = arith.select %657, %655, %565 : vector<2x32xi1>, vector<2x32xf32>
    %c7_i32_272 = arith.constant 7 : i32
    %c8_i32_273 = arith.constant 8 : i32
    %659 = arith.muli %arg0, %c8_i32_273 : i32
    %660 = arith.addi %659, %c7_i32_272 : i32
    %c7_i32_274 = arith.constant 7 : i32
    %661 = arith.subi %c7_i32_274, %660 : i32
    %662 = arith.index_cast %c7_i32_272 : i32 to index
    %c0_275 = arith.constant 0 : index
    %c0_276 = arith.constant 0 : index
    %c0_277 = arith.constant 0 : index
    %663 = vector.load %arg2[%662, %c0_275, %c0_276, %c0_277] : memref<8x3x2x32xf32, #tpu.memory_space<vmem>>, vector<1x3x2x32xf32>
    %664 = vector.shape_cast %663 : vector<1x3x2x32xf32> to vector<3x2x32xf32>
    %665 = vector.broadcast %660 : i32 to vector<2x1xi32>
    %666 = arith.cmpi slt, %665, %3 : vector<2x1xi32>
    %c0_278 = arith.constant 0 : index
    %c0_279 = arith.constant 0 : index
    %c0_280 = arith.constant 0 : index
    %667 = vector.load %arg4[%c0_278, %c0_279, %c0_280] : memref<3x32x32xf32, #tpu.memory_space<vmem>>, vector<1x32x32xf32>
    %668 = vector.shape_cast %667 : vector<1x32x32xf32> to vector<32x32xf32>
    %cst_281 = arith.constant dense<0.000000e+00> : vector<2x32xf32>
    %669 = tpu.matmul %613, %668, %cst_281 {dimension_numbers = #tpu.dot_dimension_numbers<[1], [0], [0], [1], [0, 0, 1, 1], [], []>} : vector<2x32xf32>, vector<32x32xf32>, vector<2x32xf32> -> vector<2x32xf32>
    %c1_282 = arith.constant 1 : index
    %c0_283 = arith.constant 0 : index
    %c0_284 = arith.constant 0 : index
    %670 = vector.load %arg4[%c1_282, %c0_283, %c0_284] : memref<3x32x32xf32, #tpu.memory_space<vmem>>, vector<1x32x32xf32>
    %671 = vector.shape_cast %670 : vector<1x32x32xf32> to vector<32x32xf32>
    %cst_285 = arith.constant dense<0.000000e+00> : vector<2x32xf32>
    %672 = tpu.matmul %613, %671, %cst_285 {dimension_numbers = #tpu.dot_dimension_numbers<[1], [0], [0], [1], [0, 0, 1, 1], [], []>} : vector<2x32xf32>, vector<32x32xf32>, vector<2x32xf32> -> vector<2x32xf32>
    %c2_286 = arith.constant 2 : index
    %c0_287 = arith.constant 0 : index
    %c0_288 = arith.constant 0 : index
    %673 = vector.load %arg4[%c2_286, %c0_287, %c0_288] : memref<3x32x32xf32, #tpu.memory_space<vmem>>, vector<1x32x32xf32>
    %674 = vector.shape_cast %673 : vector<1x32x32xf32> to vector<32x32xf32>
    %cst_289 = arith.constant dense<0.000000e+00> : vector<2x32xf32>
    %675 = tpu.matmul %613, %674, %cst_289 {dimension_numbers = #tpu.dot_dimension_numbers<[1], [0], [0], [1], [0, 0, 1, 1], [], []>} : vector<2x32xf32>, vector<32x32xf32>, vector<2x32xf32> -> vector<2x32xf32>
    %676 = vector.extract_strided_slice %664 {offsets = [0, 0, 0], sizes = [1, 2, 32], strides = [1, 1, 1]} : vector<3x2x32xf32> to vector<1x2x32xf32>
    %677 = vector.shape_cast %676 : vector<1x2x32xf32> to vector<2x32xf32>
    %678 = arith.addf %677, %669 : vector<2x32xf32>
    %679 = arith.negf %678 : vector<2x32xf32>
    %680 = math.exp %679 : vector<2x32xf32>
    %cst_290 = arith.constant 1.000000e+00 : f32
    %681 = vector.broadcast %cst_290 : f32 to vector<2x32xf32>
    %682 = arith.addf %681, %680 : vector<2x32xf32>
    %683 = arith.divf %681, %682 : vector<2x32xf32>
    %684 = vector.extract_strided_slice %664 {offsets = [1, 0, 0], sizes = [1, 2, 32], strides = [1, 1, 1]} : vector<3x2x32xf32> to vector<1x2x32xf32>
    %685 = vector.shape_cast %684 : vector<1x2x32xf32> to vector<2x32xf32>
    %686 = arith.addf %685, %672 : vector<2x32xf32>
    %687 = arith.negf %686 : vector<2x32xf32>
    %688 = math.exp %687 : vector<2x32xf32>
    %cst_291 = arith.constant 1.000000e+00 : f32
    %689 = vector.broadcast %cst_291 : f32 to vector<2x32xf32>
    %690 = arith.addf %689, %688 : vector<2x32xf32>
    %691 = arith.divf %689, %690 : vector<2x32xf32>
    %692 = vector.extract_strided_slice %664 {offsets = [2, 0, 0], sizes = [1, 2, 32], strides = [1, 1, 1]} : vector<3x2x32xf32> to vector<1x2x32xf32>
    %693 = vector.shape_cast %692 : vector<1x2x32xf32> to vector<2x32xf32>
    %694 = vector.broadcast %4 : vector<1x32xf32> to vector<2x32xf32>
    %695 = arith.addf %675, %694 : vector<2x32xf32>
    %696 = arith.mulf %683, %695 : vector<2x32xf32>
    %697 = arith.addf %693, %696 : vector<2x32xf32>
    %698 = math.tanh %697 : vector<2x32xf32>
    %cst_292 = arith.constant 1.000000e+00 : f32
    %699 = vector.broadcast %cst_292 : f32 to vector<2x32xf32>
    %700 = arith.subf %699, %691 : vector<2x32xf32>
    %701 = arith.mulf %700, %698 : vector<2x32xf32>
    %702 = arith.mulf %691, %613 : vector<2x32xf32>
    %703 = arith.addf %701, %702 : vector<2x32xf32>
    %704 = vector.shape_cast %666 : vector<2x1xi1> to vector<2x1xi1>
    %705 = vector.broadcast %704 : vector<2x1xi1> to vector<2x32xi1>
    %706 = arith.select %705, %703, %613 : vector<2x32xi1>, vector<2x32xf32>
    %707 = arith.index_cast %c7_i32_272 : i32 to index
    %c0_293 = arith.constant 0 : index
    %c0_294 = arith.constant 0 : index
    %c0_295 = arith.constant 0 : index
    %708 = vector.load %arg3[%707, %c0_293, %c0_294, %c0_295] : memref<8x3x2x32xf32, #tpu.memory_space<vmem>>, vector<1x3x2x32xf32>
    %709 = vector.shape_cast %708 : vector<1x3x2x32xf32> to vector<3x2x32xf32>
    %710 = vector.broadcast %661 : i32 to vector<2x1xi32>
    %711 = arith.cmpi slt, %710, %3 : vector<2x1xi32>
    %c0_296 = arith.constant 0 : index
    %c0_297 = arith.constant 0 : index
    %c0_298 = arith.constant 0 : index
    %712 = vector.load %arg5[%c0_296, %c0_297, %c0_298] : memref<3x32x32xf32, #tpu.memory_space<vmem>>, vector<1x32x32xf32>
    %713 = vector.shape_cast %712 : vector<1x32x32xf32> to vector<32x32xf32>
    %cst_299 = arith.constant dense<0.000000e+00> : vector<2x32xf32>
    %714 = tpu.matmul %658, %713, %cst_299 {dimension_numbers = #tpu.dot_dimension_numbers<[1], [0], [0], [1], [0, 0, 1, 1], [], []>} : vector<2x32xf32>, vector<32x32xf32>, vector<2x32xf32> -> vector<2x32xf32>
    %c1_300 = arith.constant 1 : index
    %c0_301 = arith.constant 0 : index
    %c0_302 = arith.constant 0 : index
    %715 = vector.load %arg5[%c1_300, %c0_301, %c0_302] : memref<3x32x32xf32, #tpu.memory_space<vmem>>, vector<1x32x32xf32>
    %716 = vector.shape_cast %715 : vector<1x32x32xf32> to vector<32x32xf32>
    %cst_303 = arith.constant dense<0.000000e+00> : vector<2x32xf32>
    %717 = tpu.matmul %658, %716, %cst_303 {dimension_numbers = #tpu.dot_dimension_numbers<[1], [0], [0], [1], [0, 0, 1, 1], [], []>} : vector<2x32xf32>, vector<32x32xf32>, vector<2x32xf32> -> vector<2x32xf32>
    %c2_304 = arith.constant 2 : index
    %c0_305 = arith.constant 0 : index
    %c0_306 = arith.constant 0 : index
    %718 = vector.load %arg5[%c2_304, %c0_305, %c0_306] : memref<3x32x32xf32, #tpu.memory_space<vmem>>, vector<1x32x32xf32>
    %719 = vector.shape_cast %718 : vector<1x32x32xf32> to vector<32x32xf32>
    %cst_307 = arith.constant dense<0.000000e+00> : vector<2x32xf32>
    %720 = tpu.matmul %658, %719, %cst_307 {dimension_numbers = #tpu.dot_dimension_numbers<[1], [0], [0], [1], [0, 0, 1, 1], [], []>} : vector<2x32xf32>, vector<32x32xf32>, vector<2x32xf32> -> vector<2x32xf32>
    %721 = vector.extract_strided_slice %709 {offsets = [0, 0, 0], sizes = [1, 2, 32], strides = [1, 1, 1]} : vector<3x2x32xf32> to vector<1x2x32xf32>
    %722 = vector.shape_cast %721 : vector<1x2x32xf32> to vector<2x32xf32>
    %723 = arith.addf %722, %714 : vector<2x32xf32>
    %724 = arith.negf %723 : vector<2x32xf32>
    %725 = math.exp %724 : vector<2x32xf32>
    %cst_308 = arith.constant 1.000000e+00 : f32
    %726 = vector.broadcast %cst_308 : f32 to vector<2x32xf32>
    %727 = arith.addf %726, %725 : vector<2x32xf32>
    %728 = arith.divf %726, %727 : vector<2x32xf32>
    %729 = vector.extract_strided_slice %709 {offsets = [1, 0, 0], sizes = [1, 2, 32], strides = [1, 1, 1]} : vector<3x2x32xf32> to vector<1x2x32xf32>
    %730 = vector.shape_cast %729 : vector<1x2x32xf32> to vector<2x32xf32>
    %731 = arith.addf %730, %717 : vector<2x32xf32>
    %732 = arith.negf %731 : vector<2x32xf32>
    %733 = math.exp %732 : vector<2x32xf32>
    %cst_309 = arith.constant 1.000000e+00 : f32
    %734 = vector.broadcast %cst_309 : f32 to vector<2x32xf32>
    %735 = arith.addf %734, %733 : vector<2x32xf32>
    %736 = arith.divf %734, %735 : vector<2x32xf32>
    %737 = vector.extract_strided_slice %709 {offsets = [2, 0, 0], sizes = [1, 2, 32], strides = [1, 1, 1]} : vector<3x2x32xf32> to vector<1x2x32xf32>
    %738 = vector.shape_cast %737 : vector<1x2x32xf32> to vector<2x32xf32>
    %739 = vector.broadcast %5 : vector<1x32xf32> to vector<2x32xf32>
    %740 = arith.addf %720, %739 : vector<2x32xf32>
    %741 = arith.mulf %728, %740 : vector<2x32xf32>
    %742 = arith.addf %738, %741 : vector<2x32xf32>
    %743 = math.tanh %742 : vector<2x32xf32>
    %cst_310 = arith.constant 1.000000e+00 : f32
    %744 = vector.broadcast %cst_310 : f32 to vector<2x32xf32>
    %745 = arith.subf %744, %736 : vector<2x32xf32>
    %746 = arith.mulf %745, %743 : vector<2x32xf32>
    %747 = arith.mulf %736, %658 : vector<2x32xf32>
    %748 = arith.addf %746, %747 : vector<2x32xf32>
    %749 = vector.shape_cast %711 : vector<2x1xi1> to vector<2x1xi1>
    %750 = vector.broadcast %749 : vector<2x1xi1> to vector<2x32xi1>
    %751 = arith.select %750, %748, %658 : vector<2x32xi1>, vector<2x32xf32>
    %c8_i32_311 = arith.constant 8 : i32
    %c0_312 = arith.constant 0 : index
    %c0_313 = arith.constant 0 : index
    %752 = vector.load %arg12[%c0_312, %c0_313] : memref<2x32xf32, #tpu.memory_space<vmem>>, vector<2x32xf32>
    tpu.vector_store %arg12[%c0_312, %c0_313], %706 {strides = array<i32>} : memref<2x32xf32, #tpu.memory_space<vmem>>, vector<2x32xf32>,
    %c0_314 = arith.constant 0 : index
    %c0_315 = arith.constant 0 : index
    %753 = vector.load %arg13[%c0_314, %c0_315] : memref<2x32xf32, #tpu.memory_space<vmem>>, vector<2x32xf32>
    tpu.vector_store %arg13[%c0_314, %c0_315], %751 {strides = array<i32>} : memref<2x32xf32, #tpu.memory_space<vmem>>, vector<2x32xf32>,
    %c0_i32_316 = arith.constant 0 : i32
    %754 = arith.cmpi eq, %arg0, %c0_i32_316 : i32
    %755 = arith.extui %754 : i1 to i32
    %c0_i32_317 = arith.constant 0 : i32
    %756 = arith.cmpi ne, %755, %c0_i32_317 : i32
    scf.if %756 {
      %c0_318 = arith.constant 0 : index
      %c0_319 = arith.constant 0 : index
      %757 = vector.load %arg8[%c0_318, %c0_319] : memref<32x4xf32, #tpu.memory_space<vmem>>, vector<32x4xf32>
      %cst_320 = arith.constant dense<0.000000e+00> : vector<2x4xf32>
      %758 = tpu.matmul %706, %757, %cst_320 {dimension_numbers = #tpu.dot_dimension_numbers<[1], [0], [0], [1], [0, 0, 1, 1], [], []>} : vector<2x32xf32>, vector<32x4xf32>, vector<2x4xf32> -> vector<2x4xf32>
      %c0_321 = arith.constant 0 : index
      %c0_322 = arith.constant 0 : index
      %759 = vector.load %arg9[%c0_321, %c0_322] : memref<32x4xf32, #tpu.memory_space<vmem>>, vector<32x4xf32>
      %cst_323 = arith.constant dense<0.000000e+00> : vector<2x4xf32>
      %760 = tpu.matmul %751, %759, %cst_323 {dimension_numbers = #tpu.dot_dimension_numbers<[1], [0], [0], [1], [0, 0, 1, 1], [], []>} : vector<2x32xf32>, vector<32x4xf32>, vector<2x4xf32> -> vector<2x4xf32>
      %761 = arith.addf %758, %760 : vector<2x4xf32>
      %c0_324 = arith.constant 0 : index
      %c0_325 = arith.constant 0 : index
      %762 = vector.load %arg10[%c0_324, %c0_325] : memref<1x4xf32, #tpu.memory_space<vmem>>, vector<1x4xf32>
      %763 = vector.broadcast %762 : vector<1x4xf32> to vector<2x4xf32>
      %764 = arith.addf %761, %763 : vector<2x4xf32>
      %c0_326 = arith.constant 0 : index
      %c0_327 = arith.constant 0 : index
      %765 = vector.load %arg11[%c0_326, %c0_327] : memref<2x4xf32, #tpu.memory_space<vmem>>, vector<2x4xf32>
      tpu.vector_store %arg11[%c0_326, %c0_327], %764 {strides = array<i32>} : memref<2x4xf32, #tpu.memory_space<vmem>>, vector<2x4xf32>,
    } else {
    }
    return
  }
  func.func @transform_0(%arg0: i32) -> (i32, i32) {
    %c0_i32 = arith.constant 0 : i32
    %c0_i32_0 = arith.constant 0 : i32
    %c0_i32_1 = arith.constant 0 : i32
    return %c0_i32, %c0_i32_0 : i32, i32
  }
  func.func @transform_1(%arg0: i32) -> (i32, i32, i32, i32) {
    %c0_i32 = arith.constant 0 : i32
    %c0_i32_0 = arith.constant 0 : i32
    %c0_i32_1 = arith.constant 0 : i32
    %c0_i32_2 = arith.constant 0 : i32
    return %arg0, %c0_i32, %c0_i32_0, %c0_i32_1 : i32, i32, i32, i32
  }
  func.func @transform_2(%arg0: i32) -> (i32, i32, i32, i32) {
    %c0_i32 = arith.constant 0 : i32
    %c0_i32_0 = arith.constant 0 : i32
    %c0_i32_1 = arith.constant 0 : i32
    %c0_i32_2 = arith.constant 0 : i32
    return %arg0, %c0_i32, %c0_i32_0, %c0_i32_1 : i32, i32, i32, i32
  }
  func.func @transform_3(%arg0: i32) -> (i32, i32, i32) {
    %c0_i32 = arith.constant 0 : i32
    %c0_i32_0 = arith.constant 0 : i32
    %c0_i32_1 = arith.constant 0 : i32
    %c0_i32_2 = arith.constant 0 : i32
    return %c0_i32, %c0_i32_0, %c0_i32_1 : i32, i32, i32
  }
  func.func @transform_4(%arg0: i32) -> (i32, i32, i32) {
    %c0_i32 = arith.constant 0 : i32
    %c0_i32_0 = arith.constant 0 : i32
    %c0_i32_1 = arith.constant 0 : i32
    %c0_i32_2 = arith.constant 0 : i32
    return %c0_i32, %c0_i32_0, %c0_i32_1 : i32, i32, i32
  }
  func.func @transform_5(%arg0: i32) -> (i32, i32) {
    %c0_i32 = arith.constant 0 : i32
    %c0_i32_0 = arith.constant 0 : i32
    %c0_i32_1 = arith.constant 0 : i32
    return %c0_i32, %c0_i32_0 : i32, i32
  }
  func.func @transform_6(%arg0: i32) -> (i32, i32) {
    %c0_i32 = arith.constant 0 : i32
    %c0_i32_0 = arith.constant 0 : i32
    %c0_i32_1 = arith.constant 0 : i32
    return %c0_i32, %c0_i32_0 : i32, i32
  }
  func.func @transform_7(%arg0: i32) -> (i32, i32) {
    %c0_i32 = arith.constant 0 : i32
    %c0_i32_0 = arith.constant 0 : i32
    %c0_i32_1 = arith.constant 0 : i32
    return %c0_i32, %c0_i32_0 : i32, i32
  }
  func.func @transform_8(%arg0: i32) -> (i32, i32) {
    %c0_i32 = arith.constant 0 : i32
    %c0_i32_0 = arith.constant 0 : i32
    %c0_i32_1 = arith.constant 0 : i32
    return %c0_i32, %c0_i32_0 : i32, i32
  }
  func.func @transform_9(%arg0: i32) -> (i32, i32) {
    %c0_i32 = arith.constant 0 : i32
    %c0_i32_0 = arith.constant 0 : i32
    %c0_i32_1 = arith.constant 0 : i32
    return %c0_i32, %c0_i32_0 : i32, i32
  }
  func.func @transform_10(%arg0: i32) -> (i32, i32) {
    %c0_i32 = arith.constant 0 : i32
    %c0_i32_0 = arith.constant 0 : i32
    %c0_i32_1 = arith.constant 0 : i32
    return %c0_i32, %c0_i32_0 : i32, i32
  }
}

</mosaic_0001>

<bundles_post_ra>
// kernel: bigru_forward.2
= control target key start
LH: loop header
LB: loop body
LE: loop exit
PB: predicated region body
PF: predicated region fallthrough
CT: control target
= control target key end

     0   :  { %vm26_vm0 = vcmask 130048   ;;  %vm80_vm1 = vcmask 523264   ;;  %s149_s1 = inlined_call_operand.vmem [shape: f32[16,192], index: 1, kind: input, shape index: {}]   ;;  %s150_s0 = inlined_call_operand.vmem [shape: f32[16,16], index: 0, kind: input, shape index: {}]   ;;  %s151_s2 = inlined_call_operand.vmem [shape: f32[1,192], index: 2, kind: input, shape index: {}]   ;;  %s152_s3 = inlined_call_operand.vmem [shape: f32[16,192], index: 3, kind: output, shape index: {}]  }
   0x1   :  { %v18_v0 = vld [vmem:[%s149_s1 + $0x10] sm:$0xff]  ;;  %v19_v1 = vld [vmem:[%s149_s1 + $0x18] sm:$0xff]  ;;  %v16_v2 = vld [vmem:[%s149_s1] sm:$0xff] }
   0x2   :  { %92 = vmatpush.msra.mxu2 %v18_v0  ;;  %94 = vmatpush.msra.mxu3 %v19_v1  ;;  %v17_v3 = vld [vmem:[%s149_s1 + $0x8] sm:$0xff]  ;;  %v14_v5 = vld [vmem:[%s150_s0] sm:$0xff] }
   0x3   :  { %v15_v4 = vld [vmem:[%s150_s0 + $0x8] sm:$0xff]  ;;  %47 = vmatpush.msra.mxu0 %v18_v0  ;;  %70 = vmatpush.msra.mxu1 %v19_v1  ;;  %v20_v6 = vld [vmem:[%s151_s2] sm:$0x3] }
   0x4   :  { %93 = vmatpush.msra.mxu2 %v16_v2  ;;  %95 = vmatpush.msra.mxu3 %v17_v3  ;;  %v22_v7 = vperm.slane %v20_v6, 0  ;;  %v23_v8 = vperm.slane %v20_v6, 1 }
   0x5   :  { %89 = vmatmul.msk.f32.vlgmr.msra.gmra.mxu2 %vm26_vm0, %v15_v4  ;;  %91 = vmatmul.msk.f32.vlgmr.msra.gmra.mxu3 %vm26_vm0, %v15_v4 }
   0x6   :  { %48 = vmatpush.msra.mxu0 %v16_v2  ;;  %71 = vmatpush.msra.mxu1 %v17_v3 }
   0x7   :  { %88 = vmatmul.msk.f32.vlgmr.msra.gmra.mxu0 %vm26_vm0, %v14_v5  ;;  %90 = vmatmul.msk.f32.vlgmr.msra.gmra.mxu1 %vm26_vm0, %v14_v5 }
  0x84   :  { %v50_v9 = vpop.f32.mrf.mxu0  ;;  %v73_v10 = vpop.f32.mrf.mxu1 }
  0x85   :  { %v51_v11 = vadd.f32 %v50_v9, %v22_v7  ;;  %v74_v12 = vadd.f32 %v73_v10, %v23_v8 }
  0x87   :  { %79 = vst [vmem:[%s152_s3] sm:$0xff] %v51_v11 }
  0x88   :  { %v53_v13 = vpop.f32.mrf.mxu2  ;;  %81 = vst.msk [vmem:[%s152_s3 + $0x8] sm:$0xff] %vm80_vm1, %v74_v12  ;;  %v76_v14 = vpop.f32.mrf.mxu3 }
  0x89   :  { %v54_v15 = vadd.f32 %v53_v13, %v22_v7  ;;  %v77_v16 = vadd.f32 %v76_v14, %v23_v8 }
  0x8b   :  { %82 = vst [vmem:[%s152_s3 + $0x10] sm:$0xff] %v54_v15 }
  0x8c   :  { %83 = vst.msk [vmem:[%s152_s3 + $0x18] sm:$0xff] %vm80_vm1, %v77_v16 }

// kernel: bigru_forward.3
= control target key start
LH: loop header
LB: loop body
LE: loop exit
PB: predicated region body
PF: predicated region fallthrough
CT: control target
= control target key end

     0   :  { %vm40_vm0 = vcmask 254976   ;;  %v2509_v6 = vmov 0.0   ;;  %v2510_v9 = vmov 0   ;;  %vm59_vm1 = vcmask 261120   ;;  %s3559_s0 = inlined_call_operand.vmem [shape: s32[2,1], index: 0, kind: input, shape index: {}]   ;;  %s3560_s1 = inlined_call_operand.vmem [shape: f32[8,3,2,32], index: 1, kind: input, shape index: {}]   ;;  %s3561_s2 = inlined_call_operand.vmem [shape: f32[8,3,2,32], index: 2, kind: input, shape index: {}]   ;;  %s3562_s3 = inlined_call_operand.vmem [shape: f32[3,32,32], index: 3, kind: input, shape index: {}]   ;;  %s3563_s4 = inlined_call_operand.vmem [shape: f32[3,32,32], index: 4, kind: input, shape index: {}]   ;;  %s3564_s5 = inlined_call_operand.vmem [shape: f32[1,32], index: 5, kind: input, shape index: {}]   ;;  %s3565_s6 = inlined_call_operand.vmem [shape: f32[1,32], index: 6, kind: input, shape index: {}]   ;;  %s3566_s7 = inlined_call_operand.vmem [shape: f32[32,4], index: 7, kind: input, shape index: {}]   ;;  %s3567_s8 = inlined_call_operand.vmem [shape: f32[32,4], index: 8, kind: input, shape index: {}]   ;;  %s3568_s9 = inlined_call_operand.vmem [shape: f32[1,4], index: 9, kind: input, shape index: {}]   ;;  %s3569_s10 = inlined_call_operand.hbm [shape: f32[2,4], index: 10, kind: output, shape index: {}]  }
   0x1   :  { %v2570_v0 = vld [vmem:[%s3562_s3 + $0x18] sm:$0xff]  ;;  %v2587_v3 = vld [vmem:[%s3562_s3 + $0x10] sm:$0xff]  ;;  %41 = vst.msk [vmem:[#allocation2] sm:$0x3] %vm40_vm0, %v2509_v6  ;;  %v2604_v7 = vld [vmem:[%s3562_s3 + $0x8] sm:$0xff]  ;;  %2291 = vset.pattern.permute.xlu0 %v2510_v9  ;;  %2292 = vset.pattern.permute.xlu1 %v2510_v9 }
   0x2   :  { %v2575_v1 = vld [vmem:[%s3562_s3 + $0x38] sm:$0xff]  ;;  %75 = vmatpush.msra.mxu0 %v2570_v0  ;;  %v2592_v4 = vld [vmem:[%s3562_s3 + $0x30] sm:$0xff]  ;;  %v2609_v8 = vld [vmem:[%s3562_s3 + $0x28] sm:$0xff]  ;;  %42 = vst.msk [vmem:[#allocation3] sm:$0x3] %vm40_vm0, %v2509_v6 }
   0x3   :  { %v2580_v2 = vld [vmem:[%s3563_s4 + $0x18] sm:$0xff]  ;;  %100 = vmatpush.msra.mxu1 %v2575_v1  ;;  %v2597_v5 = vld [vmem:[%s3563_s4 + $0x10] sm:$0xff]  ;;  %v2618_v10 = vld [vmem:[%s3563_s4 + $0x8] sm:$0xff] }
   0x4   :  { %213 = vmatpush.msra.mxu3 %v2580_v2  ;;  %76 = vmatpush.msra.mxu0 %v2587_v3  ;;  %v2624_v11 = vld [vmem:[%s3562_s3] sm:$0xff]  ;;  %v2642_v14 = vld [vmem:[%s3563_s4 + $0x38] sm:$0xff]  ;;  %v2662_v17 = vld [vmem:[%s3563_s4 + $0x30] sm:$0xff] }
   0x5   :  { %101 = vmatpush.msra.mxu1 %v2592_v4  ;;  %v2629_v12 = vld [vmem:[%s3562_s3 + $0x20] sm:$0xff]  ;;  %v2652_v16 = vld [vmem:[%s3562_s3 + $0x58] sm:$0xff]  ;;  %v2667_v18 = vld [vmem:[%s3563_s4 + $0x28] sm:$0xff] }
   0x6   :  { %214 = vmatpush.msra.mxu3 %v2597_v5  ;;  %v2634_v13 = vld [vmem:[%s3563_s4] sm:$0xff]  ;;  %77 = vmatpush.msra.mxu0 %v2604_v7  ;;  %v2679_v21 = vld [vmem:[%s3562_s3 + $0x50] sm:$0xff]  ;;  %v2690_v23 = vld [vmem:[%s3563_s4 + $0x58] sm:$0xff] }
   0x7   :  { %102 = vmatpush.msra.mxu1 %v2609_v8  ;;  %v2647_v15 = vld [vmem:[%s3559_s0] sm:$0x3]  ;;  %168 = vmatpush.msra.mxu2 %v2652_v16  ;;  %v2698_v24 = vld [vmem:[%s3562_s3 + $0x48] sm:$0xff] }
   0x8   :  { %215 = vmatpush.msra.mxu3 %v2618_v10  ;;  %vm2132_vm2 = vcmp.gt.s32.totalorder %v2647_v15, 0  ;;  %78 = vmatpush.msra.mxu0 %v2624_v11  ;;  %v2670_v19 = vld [vmem:[#allocation2] sm:$0x3] }
   0x9   :  { %103 = vmatpush.msra.mxu1 %v2629_v12  ;;  %v2674_v20 = vsel %vm2132_vm2, 1, %v2510_v9  ;;  %2133 = vmatmul.msk.f32.vlgmr.msra.gmra.mxu0 %vm59_vm1, %v2670_v19  ;;  %v2685_v22 = vld [vmem:[#allocation3] sm:$0x3] }
   0xa   :  { %216 = vmatpush.msra.mxu3 %v2634_v13  ;;  %238 = vmatpush.msrb.mxu0 %v2642_v14 }
   0xb   :  { %2138 = vmatmul.msk.f32.vlgmr.msra.gmra.mxu1 %vm59_vm1, %v2670_v19  ;;  %2147 = vmatmul.msk.f32.vlgmr.msra.gmra.mxu3 %vm59_vm1, %v2685_v22 }
   0xc   :  { %239 = vmatpush.msrb.mxu0 %v2662_v17 }
   0xd   :  { %15 = vsyncpa [#allocation5], 0  ;;  %v2703_v25 = vld [vmem:[%s3563_s4 + $0x20] sm:$0xff]  ;;  %185 = vperm.xlu0 %2291, %v2674_v20   ;;  %169 = vmatpush.msra.mxu2 %v2679_v21  ;;  %v2710_v26 = vld [vmem:[%s3563_s4 + $0x50] sm:$0xff]  ;;  %vm2146_vm3 = vcmp.gt.s32.totalorder %v2647_v15, 7  ;;  %vm2199_vm4 = vcmp.gt.s32.totalorder %v2647_v15, 3 }
   0xe   :  { %240 = vmatpush.msrb.mxu0 %v2667_v18  ;;  %v2716_v27 = vld [vmem:[%s3562_s3 + $0x40] sm:$0xff]  ;;  %306 = vmatpush.msrb.mxu1 %v2690_v23  ;;  %v2724_v28 = vld [vmem:[%s3563_s4 + $0x48] sm:$0xff]  ;;  %v2737_v30 = vsel %vm2146_vm3, 1, %v2510_v9  ;;  %v937_v31 = vsel %vm2199_vm4, 1, %v2510_v9  ;;  %vm2172_vm5 = vcmp.gt.s32.totalorder %v2647_v15, 6  ;;  %vm2163_vm6 = vcmp.gt.s32.totalorder %v2647_v15, 1 }
   0xf   :  { %170 = vmatpush.msra.mxu2 %v2698_v24  ;;  %370 = vmatpush.msrb.mxu3 %v2575_v1  ;;  %v2733_v29 = vld [vmem:[%s3563_s4 + $0x40] sm:$0xff]  ;;  %v2783_v32 = vsel %vm2172_vm5, 1, %v2510_v9  ;;  %s2123_s11 = sshll.u32 %s3569_s10, 4  ;;  %s2124_s11 = int_to_ptr.hbm [resolvable:$true] %s2123_s11 }
  0x10   :  { %241 = vmatpush.msrb.mxu0 %v2703_v25  ;;  %307 = vmatpush.msrb.mxu1 %v2710_v26  ;;  %v50_v33 = vld [vmem:[%s3560_s1] sm:$0x3]  ;;  %v51_v34 = vld [vmem:[%s3560_s1 + $0x2] sm:$0x3] }
  0x11   :  { %171 = vmatpush.msra.mxu2 %v2716_v27  ;;  %2152 = vmatmul.msk.f32.vlgmr.msrb.gmra.mxu0 %vm59_vm1, %v2685_v22  ;;  %v189_v41 = vld [vmem:[%s3561_s2] sm:$0x3]  ;;  %v190_v42 = vld [vmem:[%s3561_s2 + $0x2] sm:$0x3] }
  0x12   :  { %430 = vmatpush.msra.mxu0 %v2652_v16  ;;  %2145 = vmatmul.msk.f32.vlgmr.msra.gmra.mxu2 %vm59_vm1, %v2670_v19  ;;  %v2811_v62 = vld [vmem:[%s3564_s5] ss:$0 sm:$0xff] }
  0x13   :  { %308 = vmatpush.msrb.mxu1 %v2724_v28  ;;  %350 = vmatpush.msrb.mxu2 %v2570_v0 }
  0x14   :  { %371 = vmatpush.msrb.mxu3 %v2592_v4  ;;  %431 = vmatpush.msra.mxu0 %v2679_v21 }
  0x15   :  { %309 = vmatpush.msrb.mxu1 %v2733_v29  ;;  %323 = vperm.xlu0 %2291, %v2737_v30  }
  0x16   :  { %2159 = vmatmul.msk.f32.vlgmr.msrb.gmra.mxu1 %vm59_vm1, %v2685_v22  ;;  %351 = vmatpush.msrb.mxu2 %v2587_v3 }
  0x17   :  { %372 = vmatpush.msrb.mxu3 %v2609_v8  ;;  %472 = vmatpush.msra.mxu1 %v2580_v2 }
  0x18   :  { %352 = vmatpush.msrb.mxu2 %v2604_v7  ;;  %432 = vmatpush.msra.mxu0 %v2698_v24 }
  0x19   :  { %373 = vmatpush.msrb.mxu3 %v2629_v12  ;;  %473 = vmatpush.msra.mxu1 %v2597_v5 }
  0x1a   :  { %353 = vmatpush.msrb.mxu2 %v2624_v11  ;;  %433 = vmatpush.msra.mxu0 %v2716_v27 }
  0x1b   :  { %552 = vmatpush.msra.mxu3 %v2690_v23  ;;  %474 = vmatpush.msra.mxu1 %v2618_v10 }
  0x1c   :  { %492 = vmatpush.msra.mxu2 %v2642_v14  ;;  %596 = vmatpush.msrb.mxu0 %v2570_v0 }
  0x1d   :  { %939 = vperm.xlu0 %2291, %v937_v31   ;;  %553 = vmatpush.msra.mxu3 %v2710_v26 }
  0x1e   :  { %493 = vmatpush.msra.mxu2 %v2662_v17  ;;  %475 = vmatpush.msra.mxu1 %v2634_v13 }
  0x1f   :  { %554 = vmatpush.msra.mxu3 %v2724_v28  ;;  %597 = vmatpush.msrb.mxu0 %v2587_v3 }
  0x20   :  { %494 = vmatpush.msra.mxu2 %v2667_v18  ;;  %616 = vmatpush.msrb.mxu1 %v2575_v1 }
  0x21   :  { %555 = vmatpush.msra.mxu3 %v2733_v29  ;;  %598 = vmatpush.msrb.mxu0 %v2604_v7 }
  0x22   :  { %495 = vmatpush.msra.mxu2 %v2703_v25  ;;  %617 = vmatpush.msrb.mxu1 %v2592_v4 }
  0x23   :  { %2293 = vset.pattern.permute.xlu2 %v2510_v9  ;;  %599 = vmatpush.msrb.mxu0 %v2624_v11 }
  0x24   :  { %618 = vmatpush.msrb.mxu1 %v2609_v8 }
  0x25   :  { %1307 = vperm.xlu0 %2291, %v937_v31  }
  0x26   :  { %619 = vmatpush.msrb.mxu1 %v2629_v12 }
  0x2d   :  { %1677 = vperm.xlu0 %2291, %v2783_v32  }
  0x35   :  { %2045 = vperm.xlu0 %2291, %v2674_v20  }
  0x86   :  { %v80_v35 = vpop.f32.mrf.mxu0 }
  0x87   :  { %v113_v37 = vadd.f32 %v80_v35, %v50_v33  ;;  %v2816_v35 = vsel %vm2163_vm6, 1, %v2510_v9  ;;  %vm2208_vm6 = vcmp.gt.s32.totalorder %v2647_v15, 4 }
  0x88   :  { %v105_v36 = vpop.f32.mrf.mxu1  ;;  %447 = vperm.xlu1 %2292, %v2816_v35  }
  0x89   :  { %v133_v38 = vadd.f32 %v105_v36, %v51_v34  ;;  %v2143_v39 = vmul.f32 -1.442695, %v113_v37 }
  0x8b   :  { %v2144_v40 = vmul.f32 -1.442695, %v133_v38  ;;  %2297 = vpow2.f32 %v2143_v39 }
  0x8d   :  { %2299 = vpow2.f32 %v2144_v40 }
  0x8e   :  { %v218_v43 = vpop.f32.mrf.mxu3  ;;  %v243_v45 = vpop.f32.mrf.mxu0 }
  0x8f   :  { %v251_v44 = vadd.f32 %v218_v43, %v189_v41  ;;  %v271_v46 = vadd.f32 %v243_v45, %v190_v42 }
  0x90   :  { %569 = vperm.xlu1 %2292, %v2783_v32  }
  0x91   :  { %v2157_v47 = vmul.f32 -1.442695, %v251_v44  ;;  %v2298_v48 = vpop.eup %2297  ;;  %v2158_v49 = vmul.f32 -1.442695, %v271_v46  ;;  %v52_v46 = vld [vmem:[%s3560_s1 + $0x4] sm:$0x3] }
  0x92   :  { %v117_v51 = vadd.f32 1.0, %v2298_v48 }
  0x93   :  { %v2300_v50 = vpop.eup %2299  ;;  %2301 = vpow2.f32 %v2157_v47 }
  0x94   :  { %v137_v52 = vadd.f32 1.0, %v2300_v50  ;;  %2303 = vpow2.f32 %v2158_v49  ;;  %v129_v6 = vand.u32 2147483648, %v117_v51  ;;  %v127_v33 = vand.u32 2147483647, %v117_v51  ;;  %v2833_v49 = vld [vmem:[%s3565_s6] ss:$0 sm:$0xff] }
  0x95   :  { %2305 = vrcp.f32 %v117_v51  ;;  %v173_v20 = vpop.f32.mrf.mxu2  ;;  %vm123_vm8 = vweird.f32 %v117_v51 }
  0x96   :  { %2307 = vrcp.f32 %v137_v52  ;;  %v174_v38 = vadd.f32 %v2811_v62, %v173_v20  ;;  %vm143_vm9 = vweird.f32 %v137_v52  ;;  %v130_v40 = vor.u32 1.1754944e-38, %v129_v6 }
  0x97   :  { %v147_v42 = vand.u32 2147483647, %v137_v52  ;;  %vm128_vm11 = vcmp.eq.f32.partialorder %v127_v33, 8.507059e+37  ;;  %v149_v50 = vand.u32 2147483648, %v137_v52 }
  0x99   :  { %v2302_v53 = vpop.eup %2301  ;;  %vm148_vm2 = vcmp.eq.f32.partialorder %v147_v42, 8.507059e+37 }
  0x9a   :  { %v2304_v54 = vpop.eup %2303  ;;  %v2799_v55 = vadd.f32 1.0, %v2302_v53 }
  0x9b   :  { %v2306_v56 = vpop.eup %2305  ;;  %v2801_v57 = vadd.f32 1.0, %v2304_v54 }
  0x9c   :  { %v2803_v58 = vpop.eup %2307  ;;  %2309 = vrcp.f32 %v2799_v55  ;;  %v119_v59 = vmul.f32 %v2306_v56, %v117_v51  ;;  %vm124_vm7 = vweird.f32 %v2306_v56  ;;  %v267_v54 = vand.u32 2147483648, %v2799_v55 }
  0x9d   :  { %v139_v60 = vmul.f32 %v2803_v58, %v137_v52  ;;  %2311 = vrcp.f32 %v2801_v57  ;;  %vm125_vm10 = vmor %vm123_vm8, %vm124_vm7  ;;  %vm144_vm12 = vweird.f32 %v2803_v58  ;;  %vm261_vm15 = vweird.f32 %v2799_v55 }
  0x9e   :  { %v120_v61 = vsub.f32 1.0, %v119_v59  ;;  %vm2838_vm14 = vmor %vm143_vm9, %vm144_vm12  ;;  %v268_v52 = vor.u32 1.1754944e-38, %v267_v54  ;;  %vm281_vm4 = vweird.f32 %v2801_v57  ;;  %v285_v32 = vand.u32 2147483647, %v2801_v57 }
  0x9f   :  { %v140_v63 = vsub.f32 1.0, %v139_v60  ;;  %v265_v60 = vand.u32 2147483647, %v2799_v55 }
  0xa0   :  { %v121_v31 = vmul.f32 %v2306_v56, %v120_v61  ;;  %vm286_vm9 = vcmp.eq.f32.partialorder %v285_v32, 8.507059e+37 }
  0xa1   :  { %v141_v34 = vmul.f32 %v2803_v58, %v140_v63  ;;  %vm266_vm5 = vcmp.eq.f32.partialorder %v265_v60, 8.507059e+37 }
  0xa2   :  { %v2310_v36 = vpop.eup %2309  ;;  %v122_v37 = vadd.f32 %v2306_v56, %v121_v31 }
  0xa3   :  { %v2820_v39 = vpop.eup %2311  ;;  %v257_v41 = vmul.f32 %v2310_v36, %v2799_v55  ;;  %v142_v45 = vadd.f32 %v2803_v58, %v141_v34  ;;  %vm262_vm13 = vweird.f32 %v2310_v36  ;;  %v150_v34 = vor.u32 1.1754944e-38, %v149_v50 }
  0xa4   :  { %v277_v43 = vmul.f32 %v2820_v39, %v2801_v57  ;;  %v126_v44 = vsel %vm125_vm10, %v2306_v56, %v122_v37  ;;  %v311_v56 = vpop.f32.mrf.mxu1  ;;  %vm263_vm3 = vmor %vm261_vm15, %vm262_vm13  ;;  %vm282_vm7 = vweird.f32 %v2820_v39  ;;  %vm2181_vm13 = vcmp.gt.s32.totalorder %v2647_v15, 2 }
  0xa5   :  { %v131_v47 = vsel %vm128_vm11, %v130_v40, %v126_v44  ;;  %v258_v48 = vsub.f32 1.0, %v257_v41  ;;  %v146_v20 = vsel %vm2838_vm14, %v2803_v58, %v142_v45  ;;  %v312_v33 = vadd.f32 %v2833_v49, %v311_v56  ;;  %vm283_vm8 = vmor %vm281_vm4, %vm282_vm7 }
  0xa6   :  { %v278_v51 = vsub.f32 1.0, %v277_v43  ;;  %v176_v53 = vmul.f32 %v174_v38, %v131_v47  ;;  %v151_v55 = vsel %vm148_vm2, %v150_v34, %v146_v20  ;;  %v191_v38 = vld [vmem:[%s3561_s2 + $0x4] sm:$0x3]  ;;  %v287_v41 = vand.u32 2147483648, %v2801_v57  ;;  %v2169_v20 = vld [vmem:[%s3561_s2 + $0x6] sm:$0x3] }
  0xa7   :  { %v259_v59 = vmul.f32 %v2310_v36, %v258_v48  ;;  %v2859_v44 = vsel %vm2208_vm6, 1, %v2510_v9  ;;  %vm2190_vm11 = vcmp.gt.s32.totalorder %v2647_v15, 5 }
  0xa8   :  { %v279_v63 = vmul.f32 %v2820_v39, %v278_v51  ;;  %v177_v6 = vadd.f32 %v176_v53, %v52_v46  ;;  %v186_v46 = vpop.permute.xlu0 %185  ;;  %v288_v48 = vor.u32 1.1754944e-38, %v287_v41  ;;  %v181_v51 = vmul.f32 %v151_v55, %v2670_v19  ;;  %1061 = vperm.xlu1 %2292, %v2859_v44   ;;  %v2170_v41 = vld [vmem:[%s3561_s2 + $0x8] sm:$0x3] }
  0xa9   :  { %v260_v31 = vadd.f32 %v2310_v36, %v259_v59  ;;  %vm187_vm10 = vcmp.eq.s32.totalorder %v186_v46, 1  ;;  %v2875_v59 = vsel %vm2190_vm11, 1, %v2510_v9 }
  0xaa   :  { %2313 = vtanh.f32 %v177_v6  ;;  %v280_v58 = vadd.f32 %v2820_v39, %v279_v63 }
  0xab   :  { %v264_v37 = vsel %vm263_vm3, %v2310_v36, %v260_v31  ;;  %v179_v36 = vsub.f32 1.0, %v151_v55 }
  0xac   :  { %v269_v40 = vsel %vm266_vm5, %v268_v52, %v264_v37  ;;  %v284_v47 = vsel %vm283_vm8, %v2820_v39, %v280_v58 }
  0xad   :  { %v314_v42 = vmul.f32 %v312_v33, %v269_v40  ;;  %v289_v53 = vsel %vm286_vm9, %v288_v48, %v284_v47 }
  0xae   :  { %v317_v56 = vsub.f32 1.0, %v289_v53 }
  0xaf   :  { %v315_v43 = vadd.f32 %v314_v42, %v191_v38 }
  0xb0   :  { %v2314_v45 = vpop.eup %2313  ;;  %v324_v61 = vpop.permute.xlu0 %323  ;;  %1431 = vperm.xlu1 %2292, %v2875_v59  }
  0xb1   :  { %v180_v50 = vmul.f32 %v2314_v45, %v179_v36  ;;  %2315 = vtanh.f32 %v315_v43  ;;  %vm325_vm12 = vcmp.eq.s32.totalorder %v324_v61, 1 }
  0xb3   :  { %v182_v57 = vadd.f32 %v181_v51, %v180_v50 }
  0xb5   :  { %v2866_v54 = vsel %vm187_vm10, %v182_v57, %v2670_v19  ;;  %v319_v19 = vmul.f32 %v289_v53, %v2685_v22 }
  0xb6   :  { %2164 = vmatmul.msk.f32.vlgmr.msrb.gmra.mxu2 %vm59_vm1, %v2866_v54  ;;  %2165 = vmatmul.msk.f32.vlgmr.msrb.gmra.mxu3 %vm59_vm1, %v2866_v54 }
  0xb7   :  { %v2316_v39 = vpop.eup %2315  ;;  %2168 = vmatmul.msk.f32.vlgmr.msra.gmra.mxu0 %vm59_vm1, %v2866_v54  ;;  %718 = vmatpush.msrb.mxu3 %v2580_v2 }
  0xb8   :  { %v318_v60 = vmul.f32 %v2316_v39, %v317_v56  ;;  %676 = vmatpush.msrb.mxu2 %v2652_v16  ;;  %738 = vmatpush.msra.mxu0 %v2642_v14 }
  0xb9   :  { %719 = vmatpush.msrb.mxu3 %v2597_v5  ;;  %1799 = vperm.xlu1 %2292, %v2816_v35   ;;  %v2161_v35 = vld [vmem:[%s3560_s1 + $0x8] sm:$0x3] }
  0xba   :  { %v320_v63 = vadd.f32 %v319_v19, %v318_v60  ;;  %677 = vmatpush.msrb.mxu2 %v2679_v21  ;;  %739 = vmatpush.msra.mxu0 %v2662_v17 }
  0xbb   :  { %720 = vmatpush.msrb.mxu3 %v2618_v10 }
  0xbc   :  { %v2887_v6 = vsel %vm325_vm12, %v320_v63, %v2685_v22  ;;  %678 = vmatpush.msrb.mxu2 %v2698_v24  ;;  %740 = vmatpush.msra.mxu0 %v2667_v18  ;;  %v2160_v22 = vld [vmem:[%s3560_s1 + $0x6] sm:$0x3] }
  0xbd   :  { %2173 = vmatmul.msk.f32.vlgmr.msra.gmra.mxu1 %vm59_vm1, %v2887_v6  ;;  %721 = vmatpush.msrb.mxu3 %v2634_v13 }
  0xbe   :  { %2174 = vmatmul.msk.f32.vlgmr.msra.gmra.mxu2 %vm59_vm1, %v2887_v6  ;;  %2177 = vmatmul.msk.f32.vlgmr.msra.gmra.mxu3 %vm59_vm1, %v2887_v6 }
  0xbf   :  { %679 = vmatpush.msrb.mxu2 %v2716_v27  ;;  %798 = vmatpush.msra.mxu1 %v2690_v23 }
  0xc0   :  { %862 = vmatpush.msra.mxu3 %v2575_v1  ;;  %741 = vmatpush.msra.mxu0 %v2703_v25 }
  0xc1   :  { %842 = vmatpush.msra.mxu2 %v2570_v0  ;;  %799 = vmatpush.msra.mxu1 %v2710_v26 }
  0xc2   :  { %863 = vmatpush.msra.mxu3 %v2592_v4 }
  0xc3   :  { %800 = vmatpush.msra.mxu1 %v2724_v28  ;;  %843 = vmatpush.msra.mxu2 %v2587_v3 }
  0xc4   :  { %864 = vmatpush.msra.mxu3 %v2609_v8 }
  0xc5   :  { %801 = vmatpush.msra.mxu1 %v2733_v29  ;;  %844 = vmatpush.msra.mxu2 %v2604_v7 }
  0xc6   :  { %865 = vmatpush.msra.mxu3 %v2629_v12 }
  0xc7   :  { %845 = vmatpush.msra.mxu2 %v2624_v11 }
 0x134   :  { %v435_v60 = vpop.f32.mrf.mxu0 }
 0x139   :  { %v355_v31 = vpop.f32.mrf.mxu2  ;;  %v375_v33 = vpop.f32.mrf.mxu3 }
 0x13a   :  { %v378_v34 = vadd.f32 %v2160_v22, %v355_v31  ;;  %v398_v52 = vadd.f32 %v2161_v35, %v375_v33  ;;  %v477_v37 = vpop.f32.mrf.mxu1  ;;  %v2937_v33 = vsel %vm2181_vm13, 1, %v2510_v9 }
 0x13b   :  { %v500_v58 = vadd.f32 %v2169_v20, %v477_v37  ;;  %693 = vperm.xlu2 %2293, %v2937_v33  }
 0x13c   :  { %v2166_v55 = vmul.f32 -1.442695, %v378_v34  ;;  %v2167_v38 = vmul.f32 -1.442695, %v398_v52  ;;  %v436_v34 = vadd.f32 %v2811_v62, %v435_v60 }
 0x13d   :  { %v2175_v40 = vmul.f32 -1.442695, %v500_v58 }
 0x13e   :  { %2317 = vpow2.f32 %v2166_v55 }
 0x13f   :  { %2319 = vpow2.f32 %v2167_v38 }
 0x140   :  { %2321 = vpow2.f32 %v2175_v40 }
 0x141   :  { %v497_v42 = vpop.f32.mrf.mxu2  ;;  %v557_v22 = vpop.f32.mrf.mxu3 }
 0x142   :  { %v520_v32 = vadd.f32 %v2170_v41, %v497_v42  ;;  %v558_v38 = vadd.f32 %v2833_v49, %v557_v22 }
 0x143   :  { %815 = vperm.xlu2 %2293, %v2875_v59  }
 0x144   :  { %v2318_v36 = vpop.eup %2317  ;;  %v2176_v43 = vmul.f32 -1.442695, %v520_v32 }
 0x145   :  { %v2320_v45 = vpop.eup %2319  ;;  %v382_v46 = vadd.f32 1.0, %v2318_v36 }
 0x146   :  { %v2322_v47 = vpop.eup %2321  ;;  %v2925_v48 = vadd.f32 1.0, %v2320_v45  ;;  %2323 = vpow2.f32 %v2176_v43 }
 0x147   :  { %2325 = vrcp.f32 %v382_v46  ;;  %v504_v50 = vadd.f32 1.0, %v2322_v47  ;;  %v394_v35 = vand.u32 2147483648, %v382_v46  ;;  %v392_v37 = vand.u32 2147483647, %v382_v46  ;;  %v2162_v47 = vld [vmem:[%s3560_s1 + $0xa] sm:$0x3] }
 0x148   :  { %2327 = vrcp.f32 %v2925_v48  ;;  %vm388_vm15 = vweird.f32 %v382_v46  ;;  %vm408_vm2 = vweird.f32 %v2925_v48  ;;  %v412_v40 = vand.u32 2147483647, %v2925_v48 }
 0x149   :  { %2329 = vrcp.f32 %v504_v50  ;;  %v516_v9 = vand.u32 2147483648, %v504_v50  ;;  %v395_v42 = vor.u32 1.1754944e-38, %v394_v35  ;;  %v514_v36 = vand.u32 2147483647, %v504_v50 }
 0x14a   :  { %vm393_vm5 = vcmp.eq.f32.partialorder %v392_v37, 8.507059e+37  ;;  %vm510_vm6 = vweird.f32 %v504_v50  ;;  %v414_v60 = vand.u32 2147483648, %v2925_v48  ;;  %vm413_vm13 = vcmp.eq.f32.partialorder %v412_v40, 8.507059e+37 }
 0x14b   :  { %vm515_vm9 = vcmp.eq.f32.partialorder %v514_v36, 8.507059e+37  ;;  %1185 = vperm.xlu2 %2293, %v2859_v44  }
 0x14c   :  { %v2324_v51 = vpop.eup %2323 }
 0x14d   :  { %v2326_v53 = vpop.eup %2325  ;;  %v2928_v57 = vadd.f32 1.0, %v2324_v51 }
 0x14e   :  { %v2930_v56 = vpop.eup %2327  ;;  %v384_v39 = vmul.f32 %v2326_v53, %v382_v46  ;;  %vm389_vm14 = vweird.f32 %v2326_v53 }
 0x14f   :  { %v404_v19 = vmul.f32 %v2930_v56, %v2925_v48  ;;  %2331 = vrcp.f32 %v2928_v57  ;;  %v2330_v61 = vpop.eup %2329  ;;  %vm390_vm3 = vmor %vm388_vm15, %vm389_vm14  ;;  %vm409_vm7 = vweird.f32 %v2930_v56  ;;  %v536_v35 = vand.u32 2147483648, %v2928_v57 }
 0x150   :  { %v385_v63 = vsub.f32 1.0, %v384_v39  ;;  %v506_v31 = vmul.f32 %v2330_v61, %v504_v50  ;;  %vm511_vm4 = vweird.f32 %v2330_v61  ;;  %v534_v50 = vand.u32 2147483647, %v2928_v57  ;;  %vm2956_vm10 = vmor %vm408_vm2, %vm409_vm7 }
 0x151   :  { %v405_v20 = vsub.f32 1.0, %v404_v19  ;;  %vm512_vm8 = vmor %vm510_vm6, %vm511_vm4  ;;  %v415_v48 = vor.u32 1.1754944e-38, %v414_v60  ;;  %vm530_vm12 = vweird.f32 %v2928_v57 }
 0x152   :  { %v386_v52 = vmul.f32 %v2326_v53, %v385_v63  ;;  %v507_v55 = vsub.f32 1.0, %v506_v31  ;;  %vm535_vm15 = vcmp.eq.f32.partialorder %v534_v50, 8.507059e+37 }
 0x153   :  { %v406_v58 = vmul.f32 %v2930_v56, %v405_v20  ;;  %1553 = vperm.xlu2 %2293, %v2937_v33  }
 0x154   :  { %v387_v15 = vadd.f32 %v2326_v53, %v386_v52  ;;  %v508_v32 = vmul.f32 %v2330_v61, %v507_v55 }
 0x155   :  { %v2332_v41 = vpop.eup %2331  ;;  %v407_v51 = vadd.f32 %v2930_v56, %v406_v58 }
 0x156   :  { %v391_v43 = vsel %vm390_vm3, %v2326_v53, %v387_v15  ;;  %v526_v45 = vmul.f32 %v2332_v41, %v2928_v57  ;;  %v509_v39 = vadd.f32 %v2330_v61, %v508_v32  ;;  %v517_v53 = vor.u32 1.1754944e-38, %v516_v9 }
 0x157   :  { %v396_v46 = vsel %vm393_vm5, %v395_v42, %v391_v43  ;;  %vm531_vm11 = vweird.f32 %v2332_v41  ;;  %v537_v9 = vor.u32 1.1754944e-38, %v536_v35  ;;  %v448_v42 = vpop.permute.xlu1 %447 }
 0x158   :  { %v438_v19 = vmul.f32 %v436_v34, %v396_v46  ;;  %v527_v63 = vsub.f32 1.0, %v526_v45  ;;  %v513_v22 = vsel %vm512_vm8, %v2330_v61, %v509_v39  ;;  %v2171_v34 = vld [vmem:[%s3561_s2 + $0xa] sm:$0x3]  ;;  %v411_v61 = vsel %vm2956_vm10, %v2930_v56, %v407_v51  ;;  %vm532_vm14 = vmor %vm530_vm12, %vm531_vm11 }
 0x159   :  { %v518_v37 = vsel %vm515_vm9, %v517_v53, %v513_v22  ;;  %v416_v32 = vsel %vm413_vm13, %v415_v48, %v411_v61  ;;  %vm449_vm2 = vcmp.eq.s32.totalorder %v448_v42, 1 }
 0x15a   :  { %v439_v31 = vadd.f32 %v2162_v47, %v438_v19  ;;  %v528_v52 = vmul.f32 %v2332_v41, %v527_v63  ;;  %v560_v58 = vmul.f32 %v558_v38, %v518_v37  ;;  %v441_v43 = vsub.f32 1.0, %v416_v32 }
 0x15b   :  { %v443_v38 = vmul.f32 %v416_v32, %v2866_v54  ;;  %1923 = vperm.xlu2 %2293, %v2737_v30  }
 0x15c   :  { %2333 = vtanh.f32 %v439_v31  ;;  %v529_v55 = vadd.f32 %v2332_v41, %v528_v52  ;;  %v561_v15 = vadd.f32 %v2171_v34, %v560_v58 }
 0x15e   :  { %v533_v36 = vsel %vm532_vm14, %v2332_v41, %v529_v55  ;;  %2335 = vtanh.f32 %v561_v15 }
 0x15f   :  { %v538_v59 = vsel %vm535_vm15, %v537_v9, %v533_v36  ;;  %v570_v41 = vpop.permute.xlu1 %569 }
 0x160   :  { %v563_v46 = vsub.f32 1.0, %v538_v59  ;;  %v565_v51 = vmul.f32 %v538_v59, %v2887_v6  ;;  %vm571_vm3 = vcmp.eq.s32.totalorder %v570_v41, 1 }
 0x162   :  { %v2334_v45 = vpop.eup %2333 }
 0x163   :  { %v442_v56 = vmul.f32 %v2334_v45, %v441_v43  ;;  %v2180_v45 = vld [vmem:[%s3560_s1 + $0x10] sm:$0x3] }
 0x164   :  { %v2336_v47 = vpop.eup %2335 }
 0x165   :  { %v444_v57 = vadd.f32 %v443_v38, %v442_v56  ;;  %v564_v40 = vmul.f32 %v2336_v47, %v563_v46 }
 0x167   :  { %v2972_v39 = vsel %vm449_vm2, %v444_v57, %v2866_v54  ;;  %v566_v60 = vadd.f32 %v565_v51, %v564_v40 }
 0x168   :  { %2182 = vmatmul.msk.f32.vlgmr.msrb.gmra.mxu0 %vm59_vm1, %v2972_v39  ;;  %2183 = vmatmul.msk.f32.vlgmr.msrb.gmra.mxu1 %vm59_vm1, %v2972_v39 }
 0x169   :  { %2186 = vmatmul.msk.f32.vlgmr.msrb.gmra.mxu2 %vm59_vm1, %v2972_v39  ;;  %922 = vmatpush.msrb.mxu0 %v2652_v16  ;;  %v2982_v44 = vsel %vm571_vm3, %v566_v60, %v2887_v6 }
 0x16a   :  { %964 = vmatpush.msrb.mxu1 %v2580_v2  ;;  %2191 = vmatmul.msk.f32.vlgmr.msrb.gmra.mxu3 %vm59_vm1, %v2982_v44 }
 0x16b   :  { %923 = vmatpush.msrb.mxu0 %v2679_v21  ;;  %984 = vmatpush.msrb.mxu2 %v2642_v14 }
 0x16c   :  { %965 = vmatpush.msrb.mxu1 %v2597_v5  ;;  %1044 = vmatpush.msrb.mxu3 %v2690_v23 }
 0x16d   :  { %924 = vmatpush.msrb.mxu0 %v2698_v24  ;;  %985 = vmatpush.msrb.mxu2 %v2662_v17 }
 0x16e   :  { %966 = vmatpush.msrb.mxu1 %v2618_v10  ;;  %1045 = vmatpush.msrb.mxu3 %v2710_v26 }
 0x16f   :  { %925 = vmatpush.msrb.mxu0 %v2716_v27  ;;  %986 = vmatpush.msrb.mxu2 %v2667_v18 }
 0x170   :  { %2192 = vmatmul.msk.f32.vlgmr.msra.gmra.mxu0 %vm59_vm1, %v2982_v44  ;;  %2195 = vmatmul.msk.f32.vlgmr.msra.gmra.mxu1 %vm59_vm1, %v2982_v44 }
 0x171   :  { %967 = vmatpush.msrb.mxu1 %v2634_v13  ;;  %1046 = vmatpush.msrb.mxu3 %v2724_v28 }
 0x172   :  { %987 = vmatpush.msrb.mxu2 %v2703_v25  ;;  %1088 = vmatpush.msra.mxu0 %v2570_v0  ;;  %v2178_v0 = vld [vmem:[%s3560_s1 + $0xc] sm:$0x3] }
 0x173   :  { %1047 = vmatpush.msrb.mxu3 %v2733_v29  ;;  %1108 = vmatpush.msra.mxu1 %v2575_v1  ;;  %v2179_v1 = vld [vmem:[%s3560_s1 + $0xe] sm:$0x3] }
 0x174   :  { %1089 = vmatpush.msra.mxu0 %v2587_v3 }
 0x175   :  { %1109 = vmatpush.msra.mxu1 %v2592_v4 }
 0x176   :  { %1090 = vmatpush.msra.mxu0 %v2604_v7 }
 0x177   :  { %1110 = vmatpush.msra.mxu1 %v2609_v8  ;;  %v2188_v8 = vld [vmem:[%s3561_s2 + $0xe] sm:$0x3] }
 0x178   :  { %1091 = vmatpush.msra.mxu0 %v2624_v11  ;;  %v2187_v11 = vld [vmem:[%s3561_s2 + $0xc] sm:$0x3] }
 0x179   :  { %1111 = vmatpush.msra.mxu1 %v2629_v12 }
 0x1e5   :  { %v601_v2 = vpop.f32.mrf.mxu0  ;;  %v621_v3 = vpop.f32.mrf.mxu1 }
 0x1e6   :  { %v624_v5 = vadd.f32 %v2178_v0, %v601_v2  ;;  %v644_v4 = vadd.f32 %v2179_v1, %v621_v3 }
 0x1e8   :  { %v2184_v10 = vmul.f32 -1.442695, %v624_v5  ;;  %v2185_v7 = vmul.f32 -1.442695, %v644_v4 }
 0x1ea   :  { %2337 = vpow2.f32 %v2184_v10 }
 0x1eb   :  { %2339 = vpow2.f32 %v2185_v7 }
 0x1ec   :  { %v681_v15 = vpop.f32.mrf.mxu2 }
 0x1ed   :  { %v743_v12 = vpop.f32.mrf.mxu0  ;;  %v723_v13 = vpop.f32.mrf.mxu3  ;;  %v682_v59 = vadd.f32 %v2811_v62, %v681_v15 }
 0x1ee   :  { %v766_v14 = vadd.f32 %v2188_v8, %v743_v12  ;;  %v746_v18 = vadd.f32 %v2187_v11, %v723_v13  ;;  %v803_v7 = vpop.f32.mrf.mxu1 }
 0x1f0   :  { %v2338_v23 = vpop.eup %2337  ;;  %v2194_v30 = vmul.f32 -1.442695, %v766_v14  ;;  %v2193_v33 = vmul.f32 -1.442695, %v746_v18  ;;  %v804_v14 = vadd.f32 %v2833_v49, %v803_v7 }
 0x1f1   :  { %v2340_v54 = vpop.eup %2339  ;;  %v628_v6 = vadd.f32 1.0, %v2338_v23 }
 0x1f2   :  { %v648_v19 = vadd.f32 1.0, %v2340_v54  ;;  %2341 = vpow2.f32 %v2194_v30  ;;  %v2189_v30 = vld [vmem:[%s3561_s2 + $0x10] sm:$0x3] }
 0x1f3   :  { %2343 = vrcp.f32 %v628_v6  ;;  %v640_v61 = vand.u32 2147483648, %v628_v6  ;;  %v638_v48 = vand.u32 2147483647, %v628_v6  ;;  %vm634_vm5 = vweird.f32 %v628_v6 }
 0x1f4   :  { %2345 = vrcp.f32 %v648_v19  ;;  %v660_v57 = vand.u32 2147483648, %v648_v19  ;;  %vm654_vm9 = vweird.f32 %v648_v19  ;;  %v658_v51 = vand.u32 2147483647, %v648_v19 }
 0x1f5   :  { %2347 = vpow2.f32 %v2193_v33  ;;  %v641_v32 = vor.u32 1.1754944e-38, %v640_v61  ;;  %vm639_vm7 = vcmp.eq.f32.partialorder %v638_v48, 8.507059e+37  ;;  %v3062_v61 = vld [vmem:[%s3563_s4 + $0x18] sm:$0xff] }
 0x1f6   :  { %v661_v3 = vor.u32 1.1754944e-38, %v660_v57  ;;  %vm659_vm12 = vcmp.eq.f32.partialorder %v658_v51, 8.507059e+37 }
 0x1f8   :  { %v2342_v63 = vpop.eup %2341 }
 0x1f9   :  { %v2344_v53 = vpop.eup %2343  ;;  %v3027_v22 = vadd.f32 1.0, %v2342_v63 }
 0x1fa   :  { %v2346_v50 = vpop.eup %2345  ;;  %v630_v35 = vmul.f32 %v2344_v53, %v628_v6  ;;  %vm635_vm4 = vweird.f32 %v2344_v53 }
 0x1fb   :  { %v2348_v20 = vpop.eup %2347  ;;  %v650_v31 = vmul.f32 %v2346_v50, %v648_v19  ;;  %2349 = vrcp.f32 %v3027_v22  ;;  %vm636_vm6 = vmor %vm634_vm5, %vm635_vm4  ;;  %vm655_vm8 = vweird.f32 %v2346_v50  ;;  %vm776_vm3 = vweird.f32 %v3027_v22 }
 0x1fc   :  { %v631_v52 = vsub.f32 1.0, %v630_v35  ;;  %v750_v34 = vadd.f32 1.0, %v2348_v20  ;;  %vm656_vm10 = vmor %vm654_vm9, %vm655_vm8  ;;  %v694_v20 = vpop.permute.xlu2 %693 }
 0x1fd   :  { %v651_v37 = vsub.f32 1.0, %v650_v31  ;;  %vm695_vm5 = vcmp.eq.s32.totalorder %v694_v20, 1 }
 0x1fe   :  { %v632_v58 = vmul.f32 %v2344_v53, %v631_v52  ;;  %2351 = vrcp.f32 %v750_v34  ;;  %v762_v2 = vand.u32 2147483648, %v750_v34  ;;  %v760_v4 = vand.u32 2147483647, %v750_v34 }
 0x1ff   :  { %v652_v55 = vmul.f32 %v2346_v50, %v651_v37  ;;  %vm756_vm13 = vweird.f32 %v750_v34 }
 0x200   :  { %v633_v9 = vadd.f32 %v2344_v53, %v632_v58  ;;  %v763_v12 = vor.u32 1.1754944e-38, %v762_v2  ;;  %vm761_vm15 = vcmp.eq.f32.partialorder %v760_v4, 8.507059e+37  ;;  %v3075_v58 = vld [vmem:[%s3563_s4 + $0x10] sm:$0xff] }
 0x201   :  { %v3030_v42 = vpop.eup %2349  ;;  %v653_v56 = vadd.f32 %v2346_v50, %v652_v55  ;;  %v3083_v55 = vld [vmem:[%s3563_s4 + $0x8] sm:$0xff]  ;;  %v2206_v2 = vld [vmem:[%s3561_s2 + $0x14] sm:$0x3] }
 0x202   :  { %v637_v36 = vsel %vm636_vm6, %v2344_v53, %v633_v9  ;;  %v772_v43 = vmul.f32 %v3030_v42, %v3027_v22  ;;  %vm777_vm2 = vweird.f32 %v3030_v42  ;;  %v782_v53 = vand.u32 2147483648, %v3027_v22 }
 0x203   :  { %v642_v46 = vsel %vm639_vm7, %v641_v32, %v637_v36  ;;  %v657_v1 = vsel %vm656_vm10, %v2346_v50, %v653_v56  ;;  %v780_v50 = vand.u32 2147483647, %v3027_v22  ;;  %vm778_vm4 = vmor %vm776_vm3, %vm777_vm2  ;;  %v3114_v36 = vld [vmem:[%s3563_s4 + $0x58] sm:$0xff] }
 0x204   :  { %v2352_v38 = vpop.eup %2351  ;;  %v684_v47 = vmul.f32 %v682_v59, %v642_v46  ;;  %v773_v60 = vsub.f32 1.0, %v772_v43  ;;  %v662_v8 = vsel %vm659_vm12, %v661_v3, %v657_v1  ;;  %v783_v37 = vor.u32 1.1754944e-38, %v782_v53  ;;  %v3139_v59 = vld [vmem:[%s3562_s3 + $0x30] sm:$0xff]  ;;  %v3152_v43 = vld [vmem:[%s3562_s3 + $0x28] sm:$0xff] }
 0x205   :  { %v752_v40 = vmul.f32 %v2352_v38, %v750_v34  ;;  %vm757_vm11 = vweird.f32 %v2352_v38  ;;  %v687_v18 = vsub.f32 1.0, %v662_v8  ;;  %v689_v63 = vmul.f32 %v662_v8, %v2972_v39  ;;  %v2196_v46 = vld [vmem:[%s3560_s1 + $0x12] sm:$0x3] }
 0x206   :  { %v685_v41 = vadd.f32 %v2180_v45, %v684_v47  ;;  %v774_v10 = vmul.f32 %v3030_v42, %v773_v60  ;;  %vm758_vm14 = vmor %vm756_vm13, %vm757_vm11  ;;  %vm781_vm6 = vcmp.eq.f32.partialorder %v780_v50, 8.507059e+37  ;;  %v3165_v45 = vld [vmem:[%s3562_s3 + $0x20] sm:$0xff] }
 0x207   :  { %v753_v0 = vsub.f32 1.0, %v752_v40 }
 0x208   :  { %2353 = vtanh.f32 %v685_v41  ;;  %v775_v6 = vadd.f32 %v3030_v42, %v774_v10  ;;  %v2205_v41 = vld [vmem:[%s3561_s2 + $0x12] sm:$0x3] }
 0x209   :  { %v754_v5 = vmul.f32 %v2352_v38, %v753_v0 }
 0x20a   :  { %v779_v52 = vsel %vm778_vm4, %v3030_v42, %v775_v6  ;;  %v3091_v42 = vld [vmem:[%s3563_s4 + $0x28] sm:$0xff] }
 0x20b   :  { %v755_v11 = vadd.f32 %v2352_v38, %v754_v5  ;;  %v784_v22 = vsel %vm781_vm6, %v783_v37, %v779_v52 }
 0x20c   :  { %v809_v48 = vsub.f32 1.0, %v784_v22  ;;  %v811_v9 = vmul.f32 %v784_v22, %v2982_v44 }
 0x20d   :  { %v759_v13 = vsel %vm758_vm14, %v2352_v38, %v755_v11 }
 0x20e   :  { %v2354_v23 = vpop.eup %2353  ;;  %v764_v54 = vsel %vm761_vm15, %v763_v12, %v759_v13 }
 0x20f   :  { %v806_v33 = vmul.f32 %v804_v14, %v764_v54  ;;  %v688_v19 = vmul.f32 %v2354_v23, %v687_v18 }
 0x211   :  { %v807_v35 = vadd.f32 %v2189_v30, %v806_v33  ;;  %v690_v31 = vadd.f32 %v689_v63, %v688_v19 }
 0x213   :  { %2355 = vtanh.f32 %v807_v35  ;;  %v3051_v34 = vsel %vm695_vm5, %v690_v31, %v2972_v39  ;;  %v3069_v39 = vld [vmem:[%s3563_s4 + $0x38] sm:$0xff] }
 0x214   :  { %2200 = vmatmul.msk.f32.vlgmr.msra.gmra.mxu2 %vm59_vm1, %v3051_v34  ;;  %2201 = vmatmul.msk.f32.vlgmr.msra.gmra.mxu3 %vm59_vm1, %v3051_v34 }
 0x215   :  { %2204 = vmatmul.msk.f32.vlgmr.msrb.gmra.mxu0 %vm59_vm1, %v3051_v34  ;;  %1210 = vmatpush.msra.mxu3 %v3062_v61 }
 0x216   :  { %1168 = vmatpush.msra.mxu2 %v2652_v16  ;;  %1230 = vmatpush.msrb.mxu0 %v3069_v39 }
 0x217   :  { %1211 = vmatpush.msra.mxu3 %v3075_v58 }
 0x218   :  { %1169 = vmatpush.msra.mxu2 %v2679_v21  ;;  %1231 = vmatpush.msrb.mxu0 %v2662_v17  ;;  %v3097_v17 = vld [vmem:[%s3563_s4] sm:$0xff]  ;;  %v816_v21 = vpop.permute.xlu2 %815 }
 0x219   :  { %v2356_v16 = vpop.eup %2355  ;;  %1212 = vmatpush.msra.mxu3 %v3083_v55  ;;  %vm817_vm7 = vcmp.eq.s32.totalorder %v816_v21, 1 }
 0x21a   :  { %v810_v15 = vmul.f32 %v2356_v16, %v809_v48  ;;  %1170 = vmatpush.msra.mxu2 %v2698_v24  ;;  %1232 = vmatpush.msrb.mxu0 %v3091_v42 }
 0x21b   :  { %1213 = vmatpush.msra.mxu3 %v3097_v17 }
 0x21c   :  { %v812_v32 = vadd.f32 %v811_v9, %v810_v15  ;;  %1171 = vmatpush.msra.mxu2 %v2716_v27  ;;  %1233 = vmatpush.msrb.mxu0 %v2703_v25  ;;  %v3120_v25 = vld [vmem:[%s3562_s3 + $0x18] sm:$0xff] }
 0x21d   :  { %v3126_v27 = vld [vmem:[%s3562_s3 + $0x38] sm:$0xff] }
 0x21e   :  { %v3103_v24 = vsel %vm817_vm7, %v812_v32, %v2982_v44  ;;  %v3133_v44 = vld [vmem:[%s3562_s3 + $0x10] sm:$0xff] }
 0x21f   :  { %2209 = vmatmul.msk.f32.vlgmr.msrb.gmra.mxu1 %vm59_vm1, %v3103_v24  ;;  %2210 = vmatmul.msk.f32.vlgmr.msrb.gmra.mxu2 %vm59_vm1, %v3103_v24 }
 0x220   :  { %2213 = vmatmul.msk.f32.vlgmr.msrb.gmra.mxu3 %vm59_vm1, %v3103_v24  ;;  %1290 = vmatpush.msrb.mxu1 %v3114_v36 }
 0x221   :  { %1334 = vmatpush.msrb.mxu2 %v3120_v25  ;;  %1354 = vmatpush.msrb.mxu3 %v3126_v27 }
 0x222   :  { %1291 = vmatpush.msrb.mxu1 %v2710_v26  ;;  %v3146_v26 = vld [vmem:[%s3562_s3 + $0x8] sm:$0xff] }
 0x223   :  { %1335 = vmatpush.msrb.mxu2 %v3133_v44  ;;  %1355 = vmatpush.msrb.mxu3 %v3139_v59 }
 0x224   :  { %1292 = vmatpush.msrb.mxu1 %v2724_v28  ;;  %v3159_v28 = vld [vmem:[%s3562_s3] sm:$0xff] }
 0x225   :  { %1336 = vmatpush.msrb.mxu2 %v3146_v26  ;;  %1356 = vmatpush.msrb.mxu3 %v3152_v43 }
 0x226   :  { %1293 = vmatpush.msrb.mxu1 %v2733_v29  ;;  %v2197_v29 = vld [vmem:[%s3560_s1 + $0x14] sm:$0x3] }
 0x227   :  { %1337 = vmatpush.msrb.mxu2 %v3159_v28  ;;  %1357 = vmatpush.msrb.mxu3 %v3165_v45 }
 0x292   :  { %v927_v50 = vpop.f32.mrf.mxu0 }
 0x293   :  { %v928_v22 = vadd.f32 %v2811_v62, %v927_v50  ;;  %v940_v50 = vpop.permute.xlu0 %939 }
 0x297   :  { %v847_v56 = vpop.f32.mrf.mxu2  ;;  %v867_v38 = vpop.f32.mrf.mxu3 }
 0x298   :  { %v870_v47 = vadd.f32 %v2196_v46, %v847_v56  ;;  %v890_v57 = vadd.f32 %v2197_v29, %v867_v38  ;;  %v2198_v56 = vld [vmem:[%s3560_s1 + $0x16] sm:$0x3] }
 0x29a   :  { %v2202_v40 = vmul.f32 -1.442695, %v870_v47  ;;  %v2203_v51 = vmul.f32 -1.442695, %v890_v57 }
 0x29c   :  { %2357 = vpow2.f32 %v2202_v40  ;;  %v969_v60 = vpop.f32.mrf.mxu1 }
 0x29d   :  { %2359 = vpow2.f32 %v2203_v51  ;;  %v992_v0 = vadd.f32 %v2205_v41, %v969_v60 }
 0x29f   :  { %v2211_v1 = vmul.f32 -1.442695, %v992_v0 }
 0x2a1   :  { %2361 = vpow2.f32 %v2211_v1 }
 0x2a2   :  { %v2358_v3 = vpop.eup %2357  ;;  %v989_v5 = vpop.f32.mrf.mxu2 }
 0x2a3   :  { %v2360_v4 = vpop.eup %2359  ;;  %v874_v10 = vadd.f32 1.0, %v2358_v3  ;;  %v1012_v7 = vadd.f32 %v2206_v2, %v989_v5  ;;  %v1049_v29 = vpop.f32.mrf.mxu3 }
 0x2a4   :  { %v3180_v8 = vadd.f32 1.0, %v2360_v4  ;;  %v1050_v0 = vadd.f32 %v2833_v49, %v1049_v29  ;;  %v3267_v29 = vld [vmem:[%s3563_s4 + $0x20] sm:$0xff] }
 0x2a5   :  { %2363 = vrcp.f32 %v874_v10  ;;  %v2212_v12 = vmul.f32 -1.442695, %v1012_v7  ;;  %v884_v33 = vand.u32 2147483647, %v874_v10  ;;  %v886_v19 = vand.u32 2147483648, %v874_v10 }
 0x2a6   :  { %2365 = vrcp.f32 %v3180_v8  ;;  %vm880_vm9 = vweird.f32 %v874_v10  ;;  %vm900_vm14 = vweird.f32 %v3180_v8  ;;  %v906_v62 = vand.u32 2147483648, %v3180_v8 }
 0x2a7   :  { %v2362_v11 = vpop.eup %2361  ;;  %2367 = vpow2.f32 %v2212_v12  ;;  %vm885_vm11 = vcmp.eq.f32.partialorder %v884_v33, 8.507059e+37  ;;  %v887_v48 = vor.u32 1.1754944e-38, %v886_v19  ;;  %v904_v40 = vand.u32 2147483647, %v3180_v8 }
 0x2a8   :  { %v996_v13 = vadd.f32 1.0, %v2362_v11  ;;  %v907_v4 = vor.u32 1.1754944e-38, %v906_v62  ;;  %v2215_v62 = vld [vmem:[%s3560_s1 + $0x1a] sm:$0x3] }
 0x2a9   :  { %vm905_vm5 = vcmp.eq.f32.partialorder %v904_v40, 8.507059e+37 }
 0x2aa   :  { %2369 = vrcp.f32 %v996_v13  ;;  %v1006_v9 = vand.u32 2147483647, %v996_v13  ;;  %v1008_v21 = vand.u32 2147483648, %v996_v13  ;;  %vm1002_vm2 = vweird.f32 %v996_v13 }
 0x2ab   :  { %v2364_v14 = vpop.eup %2363 }
 0x2ac   :  { %v2366_v18 = vpop.eup %2365  ;;  %v876_v23 = vmul.f32 %v2364_v14, %v874_v10  ;;  %vm881_vm8 = vweird.f32 %v2364_v14  ;;  %v1009_v60 = vor.u32 1.1754944e-38, %v1008_v21  ;;  %vm1007_vm4 = vcmp.eq.f32.partialorder %v1006_v9, 8.507059e+37  ;;  %v2207_v10 = vld [vmem:[%s3561_s2 + $0x16] sm:$0x3] }
 0x2ad   :  { %v896_v30 = vmul.f32 %v2366_v18, %v3180_v8  ;;  %v2368_v6 = vpop.eup %2367  ;;  %vm882_vm10 = vmor %vm880_vm9, %vm881_vm8  ;;  %vm901_vm12 = vweird.f32 %v2366_v18  ;;  %v3233_v21 = vld [vmem:[%s3563_s4 + $0x30] sm:$0xff] }
 0x2ae   :  { %v877_v54 = vsub.f32 1.0, %v876_v23  ;;  %v1016_v20 = vadd.f32 1.0, %v2368_v6  ;;  %vm3190_vm15 = vmor %vm900_vm14, %vm901_vm12 }
 0x2af   :  { %v897_v63 = vsub.f32 1.0, %v896_v30 }
 0x2b0   :  { %v2370_v53 = vpop.eup %2369  ;;  %v878_v35 = vmul.f32 %v2364_v14, %v877_v54  ;;  %2371 = vrcp.f32 %v1016_v20  ;;  %v1028_v12 = vand.u32 2147483648, %v1016_v20  ;;  %vm1022_vm7 = vweird.f32 %v1016_v20 }
 0x2b1   :  { %v898_v31 = vmul.f32 %v2366_v18, %v897_v63  ;;  %v998_v52 = vmul.f32 %v2370_v53, %v996_v13  ;;  %vm1003_vm13 = vweird.f32 %v2370_v53 }
 0x2b2   :  { %v879_v37 = vadd.f32 %v2364_v14, %v878_v35  ;;  %vm1004_vm3 = vmor %vm1002_vm2, %vm1003_vm13  ;;  %v1029_v6 = vor.u32 1.1754944e-38, %v1028_v12 }
 0x2b3   :  { %v999_v16 = vsub.f32 1.0, %v998_v52  ;;  %v899_v38 = vadd.f32 %v2366_v18, %v898_v31 }
 0x2b4   :  { %v883_v15 = vsel %vm882_vm10, %v2364_v14, %v879_v37  ;;  %v1026_v14 = vand.u32 2147483647, %v1016_v20  ;;  %vm941_vm10 = vcmp.eq.s32.totalorder %v940_v50, 1 }
 0x2b5   :  { %v888_v32 = vsel %vm885_vm11, %v887_v48, %v883_v15  ;;  %v1000_v46 = vmul.f32 %v2370_v53, %v999_v16  ;;  %v903_v5 = vsel %vm3190_vm15, %v2366_v18, %v899_v38  ;;  %v3215_v48 = vld [vmem:[%s3562_s3 + $0x58] sm:$0xff]  ;;  %v3223_v15 = vld [vmem:[%s3562_s3 + $0x50] sm:$0xff]  ;;  %v3282_v38 = vld [vmem:[%s3563_s4 + $0x40] sm:$0xff] }
 0x2b6   :  { %v930_v47 = vmul.f32 %v928_v22, %v888_v32  ;;  %v2372_v41 = vpop.eup %2371  ;;  %v908_v13 = vsel %vm905_vm5, %v907_v4, %v903_v5  ;;  %vm1027_vm9 = vcmp.eq.f32.partialorder %v1026_v14, 8.507059e+37  ;;  %v3241_v32 = vld [vmem:[%s3562_s3 + $0x48] sm:$0xff] }
 0x2b7   :  { %v1001_v51 = vadd.f32 %v2370_v53, %v1000_v46  ;;  %v1018_v2 = vmul.f32 %v2372_v41, %v1016_v20  ;;  %vm1023_vm6 = vweird.f32 %v2372_v41  ;;  %v933_v18 = vsub.f32 1.0, %v908_v13  ;;  %v3260_v46 = vld [vmem:[%s3563_s4 + $0x50] sm:$0xff] }
 0x2b8   :  { %v931_v1 = vadd.f32 %v2198_v56, %v930_v47  ;;  %vm1024_vm8 = vmor %vm1022_vm7, %vm1023_vm6  ;;  %v935_v63 = vmul.f32 %v908_v13, %v3051_v34  ;;  %v3274_v56 = vld [vmem:[%s3563_s4 + $0x48] sm:$0xff]  ;;  %v2214_v47 = vld [vmem:[%s3560_s1 + $0x18] sm:$0x3] }
 0x2b9   :  { %v1005_v3 = vsel %vm1004_vm3, %v2370_v53, %v1001_v51  ;;  %v1019_v8 = vsub.f32 1.0, %v1018_v2 }
 0x2ba   :  { %v1010_v7 = vsel %vm1007_vm4, %v1009_v60, %v1005_v3  ;;  %2373 = vtanh.f32 %v931_v1  ;;  %v2224_v1 = vld [vmem:[%s3561_s2 + $0x1a] sm:$0x3]  ;;  %v2223_v3 = vld [vmem:[%s3561_s2 + $0x18] sm:$0x3] }
 0x2bb   :  { %v1052_v11 = vmul.f32 %v1050_v0, %v1010_v7  ;;  %v1020_v49 = vmul.f32 %v2372_v41, %v1019_v8 }
 0x2bd   :  { %v1053_v23 = vadd.f32 %v2207_v10, %v1052_v11  ;;  %v1021_v30 = vadd.f32 %v2372_v41, %v1020_v49 }
 0x2bf   :  { %2375 = vtanh.f32 %v1053_v23  ;;  %v1025_v33 = vsel %vm1024_vm8, %v2372_v41, %v1021_v30 }
 0x2c0   :  { %v2374_v54 = vpop.eup %2373  ;;  %v1030_v53 = vsel %vm1027_vm9, %v1029_v6, %v1025_v33 }
 0x2c1   :  { %v934_v19 = vmul.f32 %v2374_v54, %v933_v18  ;;  %v1055_v35 = vsub.f32 1.0, %v1030_v53  ;;  %v1057_v22 = vmul.f32 %v1030_v53, %v3103_v24 }
 0x2c3   :  { %v936_v31 = vadd.f32 %v935_v63, %v934_v19 }
 0x2c5   :  { %v2376_v52 = vpop.eup %2375  ;;  %v3203_v37 = vsel %vm941_vm10, %v936_v31, %v3051_v34  ;;  %v1062_v34 = vpop.permute.xlu1 %1061 }
 0x2c6   :  { %v1056_v20 = vmul.f32 %v2376_v52, %v1055_v35  ;;  %2218 = vmatmul.msk.f32.vlgmr.msra.gmra.mxu0 %vm59_vm1, %v3203_v37  ;;  %2219 = vmatmul.msk.f32.vlgmr.msra.gmra.mxu1 %vm59_vm1, %v3203_v37  ;;  %vm1063_vm11 = vcmp.eq.s32.totalorder %v1062_v34, 1 }
 0x2c7   :  { %2222 = vmatmul.msk.f32.vlgmr.msra.gmra.mxu2 %vm59_vm1, %v3203_v37  ;;  %1414 = vmatpush.msra.mxu0 %v3215_v48 }
 0x2c8   :  { %v1058_v16 = vadd.f32 %v1057_v22, %v1056_v20  ;;  %1456 = vmatpush.msra.mxu1 %v3062_v61  ;;  %1476 = vmatpush.msra.mxu2 %v3069_v39 }
 0x2c9   :  { %1415 = vmatpush.msra.mxu0 %v3223_v15 }
 0x2ca   :  { %v3227_v9 = vsel %vm1063_vm11, %v1058_v16, %v3103_v24  ;;  %1457 = vmatpush.msra.mxu1 %v3075_v58  ;;  %1477 = vmatpush.msra.mxu2 %v3233_v21  ;;  %v3249_v24 = vld [vmem:[%s3562_s3 + $0x40] sm:$0xff] }
 0x2cb   :  { %2227 = vmatmul.msk.f32.vlgmr.msra.gmra.mxu3 %vm59_vm1, %v3227_v9  ;;  %1416 = vmatpush.msra.mxu0 %v3241_v32 }
 0x2cc   :  { %1536 = vmatpush.msra.mxu3 %v3114_v36  ;;  %1458 = vmatpush.msra.mxu1 %v3083_v55 }
 0x2cd   :  { %1417 = vmatpush.msra.mxu0 %v3249_v24  ;;  %1478 = vmatpush.msra.mxu2 %v3091_v42 }
 0x2ce   :  { %2228 = vmatmul.msk.f32.vlgmr.msrb.gmra.mxu0 %vm59_vm1, %v3227_v9  ;;  %2231 = vmatmul.msk.f32.vlgmr.msrb.gmra.mxu1 %vm59_vm1, %v3227_v9 }
 0x2cf   :  { %1537 = vmatpush.msra.mxu3 %v3260_v46  ;;  %1459 = vmatpush.msra.mxu1 %v3097_v17 }
 0x2d0   :  { %1479 = vmatpush.msra.mxu2 %v3267_v29  ;;  %1580 = vmatpush.msrb.mxu0 %v3120_v25 }
 0x2d1   :  { %1538 = vmatpush.msra.mxu3 %v3274_v56  ;;  %1600 = vmatpush.msrb.mxu1 %v3126_v27 }
 0x2d2   :  { %1581 = vmatpush.msrb.mxu0 %v3133_v44 }
 0x2d3   :  { %1539 = vmatpush.msra.mxu3 %v3282_v38  ;;  %1601 = vmatpush.msrb.mxu1 %v3139_v59 }
 0x2d4   :  { %1582 = vmatpush.msrb.mxu0 %v3146_v26 }
 0x2d5   :  { %1602 = vmatpush.msrb.mxu1 %v3152_v43 }
 0x2d6   :  { %1583 = vmatpush.msrb.mxu0 %v3159_v28 }
 0x2d7   :  { %1603 = vmatpush.msrb.mxu1 %v3165_v45 }
 0x343   :  { %v1093_v57 = vpop.f32.mrf.mxu0  ;;  %v1113_v40 = vpop.f32.mrf.mxu1 }
 0x344   :  { %v1116_v51 = vadd.f32 %v2214_v47, %v1093_v57  ;;  %v1136_v41 = vadd.f32 %v2215_v62, %v1113_v40  ;;  %v3310_v62 = vld [vmem:[%s3564_s5] ss:$0 sm:$0xff] }
 0x346   :  { %v2220_v60 = vmul.f32 -1.442695, %v1116_v51  ;;  %v2221_v0 = vmul.f32 -1.442695, %v1136_v41  ;;  %v2216_v51 = vld [vmem:[%s3560_s1 + $0x1c] sm:$0x3] }
 0x348   :  { %2377 = vpow2.f32 %v2220_v60 }
 0x349   :  { %2379 = vpow2.f32 %v2221_v0 }
 0x34a   :  { %v1173_v20 = vpop.f32.mrf.mxu2 }
 0x34b   :  { %v1235_v2 = vpop.f32.mrf.mxu0  ;;  %v1174_v57 = vadd.f32 %v3310_v62, %v1173_v20 }
 0x34c   :  { %v1258_v5 = vadd.f32 %v2224_v1, %v1235_v2 }
 0x34e   :  { %v2378_v4 = vpop.eup %2377  ;;  %v1215_v10 = vpop.f32.mrf.mxu3  ;;  %v2230_v7 = vmul.f32 -1.442695, %v1258_v5 }
 0x34f   :  { %v2380_v8 = vpop.eup %2379  ;;  %v1120_v11 = vadd.f32 1.0, %v2378_v4  ;;  %v1238_v12 = vadd.f32 %v2223_v3, %v1215_v10 }
 0x350   :  { %v1140_v13 = vadd.f32 1.0, %v2380_v8  ;;  %2381 = vpow2.f32 %v2230_v7 }
 0x351   :  { %2383 = vrcp.f32 %v1120_v11  ;;  %v2229_v49 = vmul.f32 -1.442695, %v1238_v12  ;;  %v1132_v53 = vand.u32 2147483648, %v1120_v11  ;;  %v1130_v35 = vand.u32 2147483647, %v1120_v11 }
 0x352   :  { %2385 = vrcp.f32 %v1140_v13  ;;  %vm1126_vm13 = vweird.f32 %v1120_v11  ;;  %v1152_v60 = vand.u32 2147483648, %v1140_v13  ;;  %vm1146_vm3 = vweird.f32 %v1140_v13 }
 0x353   :  { %2387 = vpow2.f32 %v2229_v49  ;;  %v1133_v16 = vor.u32 1.1754944e-38, %v1132_v53  ;;  %vm1131_vm15 = vcmp.eq.f32.partialorder %v1130_v35, 8.507059e+37  ;;  %v1150_v2 = vand.u32 2147483647, %v1140_v13 }
 0x354   :  { %v1153_v7 = vor.u32 1.1754944e-38, %v1152_v60 }
 0x355   :  { %vm1151_vm5 = vcmp.eq.f32.partialorder %v1150_v2, 8.507059e+37 }
 0x356   :  { %v2382_v14 = vpop.eup %2381 }
 0x357   :  { %v2384_v23 = vpop.eup %2383  ;;  %v3302_v30 = vadd.f32 1.0, %v2382_v14 }
 0x358   :  { %v2386_v18 = vpop.eup %2385  ;;  %v1122_v54 = vmul.f32 %v2384_v23, %v1120_v11  ;;  %vm1127_vm12 = vweird.f32 %v2384_v23 }
 0x359   :  { %v1142_v6 = vmul.f32 %v2386_v18, %v1140_v13  ;;  %2389 = vrcp.f32 %v3302_v30  ;;  %v2388_v19 = vpop.eup %2387  ;;  %vm1128_vm14 = vmor %vm1126_vm13, %vm1127_vm12  ;;  %vm1147_vm2 = vweird.f32 %v2386_v18  ;;  %vm1268_vm12 = vweird.f32 %v3302_v30 }
 0x35a   :  { %v1123_v33 = vsub.f32 1.0, %v1122_v54  ;;  %v1242_v31 = vadd.f32 1.0, %v2388_v19  ;;  %vm1148_vm4 = vmor %vm1146_vm3, %vm1147_vm2  ;;  %v1295_v54 = vpop.f32.mrf.mxu1 }
 0x35b   :  { %v1143_v63 = vsub.f32 1.0, %v1142_v6 }
 0x35c   :  { %v1124_v50 = vmul.f32 %v2384_v23, %v1123_v33  ;;  %2391 = vrcp.f32 %v1242_v31  ;;  %v1254_v49 = vand.u32 2147483648, %v1242_v31  ;;  %vm1248_vm7 = vweird.f32 %v1242_v31 }
 0x35d   :  { %v1144_v52 = vmul.f32 %v2386_v18, %v1143_v63  ;;  %v3322_v63 = vld [vmem:[%s3565_s6] ss:$0 sm:$0xff]  ;;  %s2511_s6 = smov [#allocation4]  }
 0x35e   :  { %v1125_v22 = vadd.f32 %v2384_v23, %v1124_v50  ;;  %v1296_v53 = vadd.f32 %v3322_v63, %v1295_v54  ;;  %v2242_v54 = vld [vmem:[%s3561_s2 + $0x20] sm:$0x3]  ;;  %s2121_s29 = sshll.u32 %s2511_s6, 4  ;;  %s2122_s29 = int_to_ptr.vmem [resolvable:$true] %s2121_s29 }
 0x35f   :  { %v3305_v34 = vpop.eup %2389  ;;  %v1145_v40 = vadd.f32 %v2386_v18, %v1144_v52 }
 0x360   :  { %v1129_v47 = vsel %vm1128_vm14, %v2384_v23, %v1125_v22  ;;  %v1264_v1 = vmul.f32 %v3305_v34, %v3302_v30  ;;  %v1252_v23 = vand.u32 2147483647, %v1242_v31  ;;  %vm1269_vm10 = vweird.f32 %v3305_v34 }
 0x361   :  { %v1134_v41 = vsel %vm1131_vm15, %v1133_v16, %v1129_v47  ;;  %v1149_v4 = vsel %vm1148_vm4, %v2386_v18, %v1145_v40  ;;  %v1255_v18 = vor.u32 1.1754944e-38, %v1254_v49  ;;  %v1186_v16 = vpop.permute.xlu2 %1185  ;;  %v1274_v47 = vand.u32 2147483648, %v3302_v30  ;;  %vm1270_vm13 = vmor %vm1268_vm12, %vm1269_vm10 }
 0x362   :  { %v1176_v0 = vmul.f32 %v1174_v57, %v1134_v41  ;;  %v2392_v3 = vpop.eup %2391  ;;  %v1265_v8 = vsub.f32 1.0, %v1264_v1  ;;  %v1154_v12 = vsel %vm1151_vm5, %v1153_v7, %v1149_v4  ;;  %vm1253_vm9 = vcmp.eq.f32.partialorder %v1252_v23, 8.507059e+37 }
 0x363   :  { %v1244_v10 = vmul.f32 %v2392_v3, %v1242_v31  ;;  %vm1249_vm6 = vweird.f32 %v2392_v3  ;;  %v1179_v33 = vsub.f32 1.0, %v1154_v12  ;;  %v1181_v52 = vmul.f32 %v1154_v12, %v3203_v37  ;;  %v2225_v31 = vld [vmem:[%s3561_s2 + $0x1c] sm:$0x3] }
 0x364   :  { %v1177_v5 = vadd.f32 %v2216_v51, %v1176_v0  ;;  %v1266_v6 = vmul.f32 %v3305_v34, %v1265_v8  ;;  %vm1250_vm8 = vmor %vm1248_vm7, %vm1249_vm6  ;;  %vm1187_vm11 = vcmp.eq.s32.totalorder %v1186_v16, 1  ;;  %v1272_v51 = vand.u32 2147483647, %v3302_v30 }
 0x365   :  { %v1245_v11 = vsub.f32 1.0, %v1244_v10  ;;  %v1275_v1 = vor.u32 1.1754944e-38, %v1274_v47 }
 0x366   :  { %2393 = vtanh.f32 %v1177_v5  ;;  %v1267_v20 = vadd.f32 %v3305_v34, %v1266_v6  ;;  %vm1273_vm14 = vcmp.eq.f32.partialorder %v1272_v51, 8.507059e+37  ;;  %v1308_v5 = vpop.permute.xlu0 %1307 }
 0x367   :  { %v1246_v14 = vmul.f32 %v2392_v3, %v1245_v11  ;;  %vm1309_vm15 = vcmp.eq.s32.totalorder %v1308_v5, 1 }
 0x368   :  { %v1271_v0 = vsel %vm1270_vm13, %v3305_v34, %v1267_v20 }
 0x369   :  { %v1247_v13 = vadd.f32 %v2392_v3, %v1246_v14 }
 0x36b   :  { %v1251_v35 = vsel %vm1250_vm8, %v2392_v3, %v1247_v13 }
 0x36c   :  { %v2394_v19 = vpop.eup %2393  ;;  %v1256_v22 = vsel %vm1253_vm9, %v1255_v18, %v1251_v35 }
 0x36d   :  { %v1180_v50 = vmul.f32 %v2394_v19, %v1179_v33  ;;  %v1298_v57 = vmul.f32 %v1296_v53, %v1256_v22 }
 0x36f   :  { %v1182_v40 = vadd.f32 %v1181_v52, %v1180_v50  ;;  %v1299_v41 = vadd.f32 %v2225_v31, %v1298_v57 }
 0x371   :  { %v3335_v60 = vsel %vm1187_vm11, %v1182_v40, %v3203_v37  ;;  %2395 = vtanh.f32 %v1299_v41  ;;  %v1276_v37 = vsel %vm1273_vm14, %v1275_v1, %v1271_v0 }
 0x372   :  { %2236 = vmatmul.msk.f32.vlgmr.msrb.gmra.mxu2 %vm59_vm1, %v3335_v60  ;;  %2237 = vmatmul.msk.f32.vlgmr.msrb.gmra.mxu3 %vm59_vm1, %v3335_v60  ;;  %v1301_v30 = vsub.f32 1.0, %v1276_v37  ;;  %v1303_v3 = vmul.f32 %v1276_v37, %v3227_v9 }
 0x373   :  { %2240 = vmatmul.msk.f32.vlgmr.msra.gmra.mxu0 %vm59_vm1, %v3335_v60  ;;  %1702 = vmatpush.msrb.mxu3 %v3062_v61 }
 0x374   :  { %1660 = vmatpush.msrb.mxu2 %v3215_v48  ;;  %1722 = vmatpush.msra.mxu0 %v3069_v39 }
 0x375   :  { %1703 = vmatpush.msrb.mxu3 %v3075_v58 }
 0x376   :  { %1661 = vmatpush.msrb.mxu2 %v3223_v15  ;;  %1723 = vmatpush.msra.mxu0 %v3233_v21 }
 0x377   :  { %1704 = vmatpush.msrb.mxu3 %v3083_v55  ;;  %v2396_v34 = vpop.eup %2395 }
 0x378   :  { %1662 = vmatpush.msrb.mxu2 %v3241_v32  ;;  %1724 = vmatpush.msra.mxu0 %v3091_v42  ;;  %v1302_v2 = vmul.f32 %v2396_v34, %v1301_v30 }
 0x379   :  { %1705 = vmatpush.msrb.mxu3 %v3097_v17 }
 0x37a   :  { %1663 = vmatpush.msrb.mxu2 %v3249_v24  ;;  %1725 = vmatpush.msra.mxu0 %v3267_v29  ;;  %v1304_v4 = vadd.f32 %v1303_v3, %v1302_v2 }
 0x37c   :  { %v3358_v10 = vsel %vm1309_vm15, %v1304_v4, %v3227_v9  ;;  %v2234_v4 = vld [vmem:[%s3560_s1 + $0x22] sm:$0x3] }
 0x37d   :  { %2245 = vmatmul.msk.f32.vlgmr.msra.gmra.mxu1 %vm59_vm1, %v3358_v10  ;;  %2246 = vmatmul.msk.f32.vlgmr.msra.gmra.mxu2 %vm59_vm1, %v3358_v10 }
 0x37e   :  { %2249 = vmatmul.msk.f32.vlgmr.msra.gmra.mxu3 %vm59_vm1, %v3358_v10  ;;  %1782 = vmatpush.msra.mxu1 %v3114_v36 }
 0x37f   :  { %1826 = vmatpush.msra.mxu2 %v3120_v25  ;;  %1846 = vmatpush.msra.mxu3 %v3126_v27  ;;  %v2232_v25 = vld [vmem:[%s3560_s1 + $0x1e] sm:$0x3]  ;;  %v2233_v27 = vld [vmem:[%s3560_s1 + $0x20] sm:$0x3] }
 0x380   :  { %1783 = vmatpush.msra.mxu1 %v3260_v46 }
 0x381   :  { %1827 = vmatpush.msra.mxu2 %v3133_v44  ;;  %1847 = vmatpush.msra.mxu3 %v3139_v59 }
 0x382   :  { %1784 = vmatpush.msra.mxu1 %v3274_v56 }
 0x383   :  { %1828 = vmatpush.msra.mxu2 %v3146_v26  ;;  %1848 = vmatpush.msra.mxu3 %v3152_v43 }
 0x384   :  { %1785 = vmatpush.msra.mxu1 %v3282_v38 }
 0x385   :  { %1829 = vmatpush.msra.mxu2 %v3159_v28  ;;  %1849 = vmatpush.msra.mxu3 %v3165_v45  ;;  %v2241_v28 = vld [vmem:[%s3561_s2 + $0x1e] sm:$0x3] }
 0x3f0   :  { %v1419_v40 = vpop.f32.mrf.mxu0 }
 0x3f1   :  { %v1420_v34 = vadd.f32 %v3310_v62, %v1419_v40 }
 0x3f5   :  { %v1339_v44 = vpop.f32.mrf.mxu2  ;;  %v1359_v59 = vpop.f32.mrf.mxu3 }
 0x3f6   :  { %v1362_v9 = vadd.f32 %v2232_v25, %v1339_v44  ;;  %v1382_v26 = vadd.f32 %v2233_v27, %v1359_v59 }
 0x3f8   :  { %v2238_v7 = vmul.f32 -1.442695, %v1362_v9  ;;  %v2239_v43 = vmul.f32 -1.442695, %v1382_v26 }
 0x3fa   :  { %2397 = vpow2.f32 %v2238_v7  ;;  %v1461_v45 = vpop.f32.mrf.mxu1 }
 0x3fb   :  { %2399 = vpow2.f32 %v2239_v43  ;;  %v1484_v8 = vadd.f32 %v2241_v28, %v1461_v45 }
 0x3fd   :  { %v2247_v11 = vmul.f32 -1.442695, %v1484_v8 }
 0x3ff   :  { %2401 = vpow2.f32 %v2247_v11 }
 0x400   :  { %v2398_v12 = vpop.eup %2397  ;;  %v1481_v6 = vpop.f32.mrf.mxu2 }
 0x401   :  { %v2400_v49 = vpop.eup %2399  ;;  %v1366_v14 = vadd.f32 1.0, %v2398_v12  ;;  %v1504_v33 = vadd.f32 %v2242_v54, %v1481_v6  ;;  %v1541_v43 = vpop.f32.mrf.mxu3 }
 0x402   :  { %v3387_v23 = vadd.f32 1.0, %v2400_v49 }
 0x403   :  { %2403 = vrcp.f32 %v1366_v14  ;;  %v2248_v19 = vmul.f32 -1.442695, %v1504_v33  ;;  %v1378_v31 = vand.u32 2147483648, %v1366_v14  ;;  %v1376_v47 = vand.u32 2147483647, %v1366_v14 }
 0x404   :  { %2405 = vrcp.f32 %v3387_v23  ;;  %vm1372_vm3 = vweird.f32 %v1366_v14  ;;  %vm1392_vm7 = vweird.f32 %v3387_v23  ;;  %v1398_v44 = vand.u32 2147483648, %v3387_v23  ;;  %v2243_v33 = vld [vmem:[%s3561_s2 + $0x22] sm:$0x3] }
 0x405   :  { %v2402_v13 = vpop.eup %2401  ;;  %2407 = vpow2.f32 %v2248_v19  ;;  %v1379_v37 = vor.u32 1.1754944e-38, %v1378_v31  ;;  %vm1377_vm5 = vcmp.eq.f32.partialorder %v1376_v47, 8.507059e+37  ;;  %v1396_v9 = vand.u32 2147483647, %v3387_v23 }
 0x406   :  { %v1488_v18 = vadd.f32 1.0, %v2402_v13  ;;  %v1399_v49 = vor.u32 1.1754944e-38, %v1398_v44 }
 0x407   :  { %vm1397_vm13 = vcmp.eq.f32.partialorder %v1396_v9, 8.507059e+37 }
 0x408   :  { %2409 = vrcp.f32 %v1488_v18  ;;  %v1500_v59 = vand.u32 2147483648, %v1488_v18  ;;  %v1498_v7 = vand.u32 2147483647, %v1488_v18  ;;  %vm1494_vm10 = vweird.f32 %v1488_v18 }
 0x409   :  { %v2404_v53 = vpop.eup %2403 }
 0x40a   :  { %v2406_v50 = vpop.eup %2405  ;;  %v1368_v35 = vmul.f32 %v2404_v53, %v1366_v14  ;;  %vm1373_vm2 = vweird.f32 %v2404_v53  ;;  %v1501_v14 = vor.u32 1.1754944e-38, %v1500_v59  ;;  %vm1499_vm12 = vcmp.eq.f32.partialorder %v1498_v7, 8.507059e+37 }
 0x40b   :  { %v1388_v52 = vmul.f32 %v2406_v50, %v3387_v23  ;;  %v2408_v57 = vpop.eup %2407  ;;  %vm1374_vm4 = vmor %vm1372_vm3, %vm1373_vm2  ;;  %vm1393_vm6 = vweird.f32 %v2406_v50  ;;  %v1542_v23 = vadd.f32 %v3322_v63, %v1541_v43 }
 0x40c   :  { %v1369_v20 = vsub.f32 1.0, %v1368_v35  ;;  %v1508_v1 = vadd.f32 1.0, %v2408_v57  ;;  %vm3401_vm9 = vmor %vm1392_vm7, %vm1393_vm6 }
 0x40d   :  { %v1389_v22 = vsub.f32 1.0, %v1388_v52 }
 0x40e   :  { %v1370_v16 = vmul.f32 %v2404_v53, %v1369_v20  ;;  %v2410_v41 = vpop.eup %2409  ;;  %2411 = vrcp.f32 %v1508_v1  ;;  %v1520_v35 = vand.u32 2147483648, %v1508_v1  ;;  %vm1514_vm15 = vweird.f32 %v1508_v1 }
 0x40f   :  { %v1390_v51 = vmul.f32 %v2406_v50, %v1389_v22  ;;  %v1490_v30 = vmul.f32 %v2410_v41, %v1488_v18  ;;  %vm1495_vm8 = vweird.f32 %v2410_v41 }
 0x410   :  { %v1371_v0 = vadd.f32 %v2404_v53, %v1370_v16  ;;  %vm1496_vm11 = vmor %vm1494_vm10, %vm1495_vm8  ;;  %v1521_v40 = vor.u32 1.1754944e-38, %v1520_v35  ;;  %v2252_v35 = vld [vmem:[%s3560_s1 + $0x28] sm:$0x3] }
 0x411   :  { %v1491_v5 = vsub.f32 1.0, %v1490_v30  ;;  %v1391_v25 = vadd.f32 %v2406_v50, %v1390_v51  ;;  %v1432_v51 = vpop.permute.xlu1 %1431 }
 0x412   :  { %v1375_v2 = vsel %vm1374_vm4, %v2404_v53, %v1371_v0  ;;  %vm1433_vm4 = vcmp.eq.s32.totalorder %v1432_v51, 1 }
 0x413   :  { %v1380_v3 = vsel %vm1377_vm5, %v1379_v37, %v1375_v2  ;;  %v1492_v26 = vmul.f32 %v2410_v41, %v1491_v5  ;;  %v1395_v11 = vsel %vm3401_vm9, %v2406_v50, %v1391_v25  ;;  %v1518_v50 = vand.u32 2147483647, %v1508_v1 }
 0x414   :  { %v1422_v27 = vmul.f32 %v1420_v34, %v1380_v3  ;;  %v2412_v12 = vpop.eup %2411  ;;  %v1400_v19 = vsel %vm1397_vm13, %v1399_v49, %v1395_v11 }
 0x415   :  { %v1493_v8 = vadd.f32 %v2410_v41, %v1492_v26  ;;  %v1510_v54 = vmul.f32 %v2412_v12, %v1508_v1  ;;  %vm1515_vm14 = vweird.f32 %v2412_v12  ;;  %v1425_v31 = vsub.f32 1.0, %v1400_v19 }
 0x416   :  { %v1423_v45 = vadd.f32 %v2234_v4, %v1422_v27  ;;  %v1427_v57 = vmul.f32 %v1400_v19, %v3335_v60  ;;  %vm1516_vm2 = vmor %vm1514_vm15, %vm1515_vm14  ;;  %vm1519_vm3 = vcmp.eq.f32.partialorder %v1518_v50, 8.507059e+37  ;;  %v2259_v4 = vld [vmem:[%s3561_s2 + $0x24] sm:$0x3] }
 0x417   :  { %v1497_v6 = vsel %vm1496_vm11, %v2410_v41, %v1493_v8  ;;  %v1511_v18 = vsub.f32 1.0, %v1510_v54 }
 0x418   :  { %2413 = vtanh.f32 %v1423_v45  ;;  %v1502_v13 = vsel %vm1499_vm12, %v1501_v14, %v1497_v6 }
 0x419   :  { %v1544_v53 = vmul.f32 %v1542_v23, %v1502_v13  ;;  %v1512_v52 = vmul.f32 %v2412_v12, %v1511_v18 }
 0x41b   :  { %v1545_v20 = vadd.f32 %v2243_v33, %v1544_v53  ;;  %v1513_v16 = vadd.f32 %v2412_v12, %v1512_v52 }
 0x41d   :  { %2415 = vtanh.f32 %v1545_v20  ;;  %v1517_v41 = vsel %vm1516_vm2, %v2412_v12, %v1513_v16 }
 0x41e   :  { %v2414_v22 = vpop.eup %2413  ;;  %v1522_v37 = vsel %vm1519_vm3, %v1521_v40, %v1517_v41 }
 0x41f   :  { %v1426_v47 = vmul.f32 %v2414_v22, %v1425_v31  ;;  %v1547_v30 = vsub.f32 1.0, %v1522_v37  ;;  %v1549_v3 = vmul.f32 %v1522_v37, %v3358_v10 }
 0x421   :  { %v1428_v0 = vadd.f32 %v1427_v57, %v1426_v47 }
 0x423   :  { %v3413_v34 = vsel %vm1433_vm4, %v1428_v0, %v3335_v60  ;;  %v2416_v1 = vpop.eup %2415  ;;  %v1554_v60 = vpop.permute.xlu2 %1553 }
 0x424   :  { %2254 = vmatmul.msk.f32.vlgmr.msrb.gmra.mxu0 %vm59_vm1, %v3413_v34  ;;  %2255 = vmatmul.msk.f32.vlgmr.msrb.gmra.mxu1 %vm59_vm1, %v3413_v34  ;;  %v1548_v2 = vmul.f32 %v2416_v1, %v1547_v30  ;;  %vm1555_vm5 = vcmp.eq.s32.totalorder %v1554_v60, 1 }
 0x425   :  { %2258 = vmatmul.msk.f32.vlgmr.msrb.gmra.mxu2 %vm59_vm1, %v3413_v34  ;;  %1906 = vmatpush.msrb.mxu0 %v3215_v48 }
 0x426   :  { %1948 = vmatpush.msrb.mxu1 %v3062_v61  ;;  %1968 = vmatpush.msrb.mxu2 %v3069_v39  ;;  %v1550_v5 = vadd.f32 %v1549_v3, %v1548_v2  ;;  %v2250_v61 = vld [vmem:[%s3560_s1 + $0x24] sm:$0x3]  ;;  %v2251_v39 = vld [vmem:[%s3560_s1 + $0x26] sm:$0x3] }
 0x427   :  { %1907 = vmatpush.msrb.mxu0 %v3223_v15 }
 0x428   :  { %1949 = vmatpush.msrb.mxu1 %v3075_v58  ;;  %1969 = vmatpush.msrb.mxu2 %v3233_v21  ;;  %v3430_v48 = vsel %vm1555_vm5, %v1550_v5, %v3358_v10  ;;  %v2260_v21 = vld [vmem:[%s3561_s2 + $0x26] sm:$0x3] }
 0x429   :  { %1908 = vmatpush.msrb.mxu0 %v3241_v32  ;;  %2263 = vmatmul.msk.f32.vlgmr.msrb.gmra.mxu3 %vm59_vm1, %v3430_v48 }
 0x42a   :  { %1950 = vmatpush.msrb.mxu1 %v3083_v55  ;;  %1970 = vmatpush.msrb.mxu2 %v3091_v42 }
 0x42b   :  { %1909 = vmatpush.msrb.mxu0 %v3249_v24  ;;  %2028 = vmatpush.msrb.mxu3 %v3114_v36 }
 0x42c   :  { %2264 = vmatmul.msk.f32.vlgmr.msra.gmra.mxu0 %vm59_vm1, %v3430_v48  ;;  %2267 = vmatmul.msk.f32.vlgmr.msra.gmra.mxu1 %vm59_vm1, %v3430_v48 }
 0x42d   :  { %1951 = vmatpush.msrb.mxu1 %v3097_v17  ;;  %1971 = vmatpush.msrb.mxu2 %v3267_v29 }
 0x42e   :  { %2029 = vmatpush.msrb.mxu3 %v3260_v46 }
 0x430   :  { %2030 = vmatpush.msrb.mxu3 %v3274_v56 }
 0x432   :  { %2031 = vmatpush.msrb.mxu3 %v3282_v38 }
 0x4a1   :  { %v1585_v58 = vpop.f32.mrf.mxu0  ;;  %v1605_v55 = vpop.f32.mrf.mxu1 }
 0x4a2   :  { %v1608_v42 = vadd.f32 %v2250_v61, %v1585_v58  ;;  %v1628_v17 = vadd.f32 %v2251_v39, %v1605_v55 }
 0x4a4   :  { %v2256_v36 = vmul.f32 -1.442695, %v1608_v42  ;;  %v2257_v15 = vmul.f32 -1.442695, %v1628_v17 }
 0x4a6   :  { %2417 = vpow2.f32 %v2256_v36  ;;  %v1678_v36 = vpop.permute.xlu0 %1677 }
 0x4a7   :  { %2419 = vpow2.f32 %v2257_v15  ;;  %vm1679_vm4 = vcmp.eq.s32.totalorder %v1678_v36, 1 }
 0x4a8   :  { %v1665_v54 = vpop.f32.mrf.mxu2 }
 0x4a9   :  { %v1727_v32 = vpop.f32.mrf.mxu0  ;;  %v1666_v18 = vadd.f32 %v3310_v62, %v1665_v54  ;;  %v1787_v39 = vpop.f32.mrf.mxu1 }
 0x4aa   :  { %v1750_v24 = vadd.f32 %v2260_v21, %v1727_v32  ;;  %v1788_v21 = vadd.f32 %v3322_v63, %v1787_v39 }
 0x4ac   :  { %v2418_v46 = vpop.eup %2417  ;;  %v2266_v29 = vmul.f32 -1.442695, %v1750_v24  ;;  %v1707_v25 = vpop.f32.mrf.mxu3 }
 0x4ad   :  { %v2420_v56 = vpop.eup %2419  ;;  %v1612_v38 = vadd.f32 1.0, %v2418_v46  ;;  %v1730_v27 = vadd.f32 %v2259_v4, %v1707_v25  ;;  %v2261_v46 = vld [vmem:[%s3561_s2 + $0x28] sm:$0x3] }
 0x4ae   :  { %v1632_v10 = vadd.f32 1.0, %v2420_v56  ;;  %2421 = vpow2.f32 %v2266_v29 }
 0x4af   :  { %2423 = vrcp.f32 %v1612_v38  ;;  %v2265_v44 = vmul.f32 -1.442695, %v1730_v27  ;;  %v1624_v11 = vand.u32 2147483648, %v1612_v38  ;;  %v1622_v49 = vand.u32 2147483647, %v1612_v38 }
 0x4b0   :  { %2425 = vrcp.f32 %v1632_v10  ;;  %vm1618_vm7 = vweird.f32 %v1612_v38  ;;  %v1644_v20 = vand.u32 2147483648, %v1632_v10  ;;  %vm1638_vm11 = vweird.f32 %v1632_v10 }
 0x4b1   :  { %2427 = vpow2.f32 %v2265_v44  ;;  %v1625_v13 = vor.u32 1.1754944e-38, %v1624_v11  ;;  %vm1623_vm9 = vcmp.eq.f32.partialorder %v1622_v49, 8.507059e+37  ;;  %v1642_v22 = vand.u32 2147483647, %v1632_v10  ;;  %v2269_v11 = vld [vmem:[%s3560_s1 + $0x2c] sm:$0x3] }
 0x4b2   :  { %v1645_v51 = vor.u32 1.1754944e-38, %v1644_v20 }
 0x4b3   :  { %vm1643_vm13 = vcmp.eq.f32.partialorder %v1642_v22, 8.507059e+37 }
 0x4b4   :  { %v2422_v59 = vpop.eup %2421 }
 0x4b5   :  { %v2424_v9 = vpop.eup %2423  ;;  %v3459_v26 = vadd.f32 1.0, %v2422_v59 }
 0x4b6   :  { %v2426_v7 = vpop.eup %2425  ;;  %v1614_v43 = vmul.f32 %v2424_v9, %v1612_v38  ;;  %vm1619_vm6 = vweird.f32 %v2424_v9 }
 0x4b7   :  { %v1634_v28 = vmul.f32 %v2426_v7, %v1632_v10  ;;  %2429 = vrcp.f32 %v3459_v26  ;;  %v2428_v14 = vpop.eup %2427  ;;  %vm1620_vm8 = vmor %vm1618_vm7, %vm1619_vm6  ;;  %vm1639_vm10 = vweird.f32 %v2426_v7  ;;  %v1766_v56 = vand.u32 2147483648, %v3459_v26 }
 0x4b8   :  { %v1615_v45 = vsub.f32 1.0, %v1614_v43  ;;  %v1734_v33 = vadd.f32 1.0, %v2428_v14  ;;  %vm1640_vm12 = vmor %vm1638_vm11, %vm1639_vm10  ;;  %vm1760_vm6 = vweird.f32 %v3459_v26  ;;  %v1764_v4 = vand.u32 2147483647, %v3459_v26 }
 0x4b9   :  { %v1635_v8 = vsub.f32 1.0, %v1634_v28  ;;  %v1767_v44 = vor.u32 1.1754944e-38, %v1766_v56 }
 0x4ba   :  { %v1616_v12 = vmul.f32 %v2424_v9, %v1615_v45  ;;  %2431 = vrcp.f32 %v1734_v33  ;;  %v1746_v1 = vand.u32 2147483648, %v1734_v33  ;;  %v1744_v60 = vand.u32 2147483647, %v1734_v33 }
 0x4bb   :  { %v1636_v23 = vmul.f32 %v2426_v7, %v1635_v8  ;;  %vm1740_vm15 = vweird.f32 %v1734_v33  ;;  %v2268_v8 = vld [vmem:[%s3560_s1 + $0x2a] sm:$0x3] }
 0x4bc   :  { %v1617_v6 = vadd.f32 %v2424_v9, %v1616_v12  ;;  %v1747_v17 = vor.u32 1.1754944e-38, %v1746_v1  ;;  %vm1745_vm3 = vcmp.eq.f32.partialorder %v1744_v60, 8.507059e+37 }
 0x4bd   :  { %v2430_v53 = vpop.eup %2429  ;;  %v1637_v50 = vadd.f32 %v2426_v7, %v1636_v23 }
 0x4be   :  { %v1621_v19 = vsel %vm1620_vm8, %v2424_v9, %v1617_v6  ;;  %v1756_v47 = vmul.f32 %v2430_v53, %v3459_v26  ;;  %vm1761_vm5 = vweird.f32 %v2430_v53  ;;  %vm1765_vm8 = vcmp.eq.f32.partialorder %v1764_v4, 8.507059e+37  ;;  %v2277_v6 = vld [vmem:[%s3561_s2 + $0x2a] sm:$0x3] }
 0x4bf   :  { %v1626_v52 = vsel %vm1623_vm9, %v1625_v13, %v1621_v19  ;;  %v1641_v57 = vsel %vm1640_vm12, %v2426_v7, %v1637_v50  ;;  %vm1762_vm7 = vmor %vm1760_vm6, %vm1761_vm5  ;;  %v1800_v7 = vpop.permute.xlu1 %1799 }
 0x4c0   :  { %v1668_v31 = vmul.f32 %v1666_v18, %v1626_v52  ;;  %v2432_v40 = vpop.eup %2431  ;;  %v1646_v0 = vsel %vm1643_vm13, %v1645_v51, %v1641_v57  ;;  %v1757_v37 = vsub.f32 1.0, %v1756_v47  ;;  %vm1801_vm9 = vcmp.eq.s32.totalorder %v1800_v7, 1  ;;  %v2278_v52 = vld [vmem:[%s3561_s2 + $0x2c] sm:$0x3]  ;;  %v2058_v47 = vld [vmem:[%s3566_s7 + $0x18] sm:$0xff] }
 0x4c1   :  { %v1736_v41 = vmul.f32 %v2432_v40, %v1734_v33  ;;  %v1671_v2 = vsub.f32 1.0, %v1646_v0  ;;  %vm1741_vm14 = vweird.f32 %v2432_v40  ;;  %v1673_v42 = vmul.f32 %v1646_v0, %v3413_v34  ;;  %2101 = vmatpush.msra.mxu1 %v2058_v47  ;;  %v2057_v0 = vld [vmem:[%s3566_s7 + $0x10] sm:$0xff] }
 0x4c2   :  { %v1669_v16 = vadd.f32 %v2252_v35, %v1668_v31  ;;  %v1758_v61 = vmul.f32 %v2430_v53, %v1757_v37  ;;  %vm1742_vm2 = vmor %vm1740_vm15, %vm1741_vm14  ;;  %v2060_v37 = vld [vmem:[%s3567_s8 + $0x8] sm:$0xff] }
 0x4c3   :  { %v1737_v30 = vsub.f32 1.0, %v1736_v41  ;;  %v2061_v41 = vld [vmem:[%s3567_s8 + $0x10] sm:$0xff]  ;;  %2102 = vmatpush.msra.mxu1 %v2057_v0 }
 0x4c4   :  { %2433 = vtanh.f32 %v1669_v16  ;;  %v1759_v24 = vadd.f32 %v2430_v53, %v1758_v61  ;;  %v2062_v16 = vld [vmem:[%s3567_s8 + $0x18] sm:$0xff]  ;;  %v2055_v61 = vld [vmem:[%s3566_s7] sm:$0xff] }
 0x4c5   :  { %v1738_v3 = vmul.f32 %v2432_v40, %v1737_v30  ;;  %2078 = vmatpush.msra.mxu0 %v2062_v16 }
 0x4c6   :  { %v1763_v27 = vsel %vm1762_vm7, %v2430_v53, %v1759_v24 }
 0x4c7   :  { %v1739_v55 = vadd.f32 %v2432_v40, %v1738_v3  ;;  %2079 = vmatpush.msra.mxu0 %v2061_v41 }
 0x4c9   :  { %v1743_v15 = vsel %vm1742_vm2, %v2432_v40, %v1739_v55  ;;  %2080 = vmatpush.msra.mxu0 %v2060_v37 }
 0x4ca   :  { %v2434_v5 = vpop.eup %2433  ;;  %v1748_v29 = vsel %vm1745_vm3, %v1747_v17, %v1743_v15 }
 0x4cb   :  { %v1672_v58 = vmul.f32 %v2434_v5, %v1671_v2  ;;  %v1790_v38 = vmul.f32 %v1788_v21, %v1748_v29  ;;  %v2056_v2 = vld [vmem:[%s3566_s7 + $0x8] sm:$0xff]  ;;  %v2059_v5 = vld [vmem:[%s3567_s8] sm:$0xff] }
 0x4cc   :  { %2103 = vmatpush.msra.mxu1 %v2056_v2  ;;  %2081 = vmatpush.msra.mxu0 %v2059_v5 }
 0x4cd   :  { %v1674_v32 = vadd.f32 %v1673_v42, %v1672_v58  ;;  %v1791_v25 = vadd.f32 %v2261_v46, %v1790_v38  ;;  %v2270_v38 = vld [vmem:[%s3560_s1 + $0x2e] sm:$0x3] }
 0x4ce   :  { %2104 = vmatpush.msra.mxu1 %v2055_v61 }
 0x4cf   :  { %v3474_v10 = vsel %vm1679_vm4, %v1674_v32, %v3413_v34  ;;  %2435 = vtanh.f32 %v1791_v25  ;;  %v1768_v34 = vsel %vm1765_vm8, %v1767_v44, %v1763_v27 }
 0x4d0   :  { %2272 = vmatmul.msk.f32.vlgmr.msra.gmra.mxu2 %vm59_vm1, %v3474_v10  ;;  %2273 = vmatmul.msk.f32.vlgmr.msra.gmra.mxu3 %vm59_vm1, %v3474_v10  ;;  %v1793_v59 = vsub.f32 1.0, %v1768_v34  ;;  %v1795_v43 = vmul.f32 %v1768_v34, %v3430_v48 }
 0x4d1   :  { %2276 = vmatmul.msk.f32.vlgmr.msrb.gmra.mxu0 %vm59_vm1, %v3474_v10 }
 0x4d5   :  { %v2436_v9 = vpop.eup %2435 }
 0x4d6   :  { %v1794_v26 = vmul.f32 %v2436_v9, %v1793_v59 }
 0x4d8   :  { %v1796_v28 = vadd.f32 %v1795_v43, %v1794_v26 }
 0x4da   :  { %v3486_v45 = vsel %vm1801_vm9, %v1796_v28, %v3430_v48 }
 0x4db   :  { %2281 = vmatmul.msk.f32.vlgmr.msrb.gmra.mxu1 %vm59_vm1, %v3486_v45  ;;  %2282 = vmatmul.msk.f32.vlgmr.msrb.gmra.mxu2 %vm59_vm1, %v3486_v45 }
 0x4dc   :  { %2285 = vmatmul.msk.f32.vlgmr.msrb.gmra.mxu3 %vm59_vm1, %v3486_v45 }
 0x54e   :  { %v1911_v36 = vpop.f32.mrf.mxu0 }
 0x54f   :  { %v1912_v46 = vadd.f32 %v3310_v62, %v1911_v36 }
 0x553   :  { %v1831_v12 = vpop.f32.mrf.mxu2  ;;  %v1851_v48 = vpop.f32.mrf.mxu3 }
 0x554   :  { %v1854_v49 = vadd.f32 %v2268_v8, %v1831_v12  ;;  %v1874_v14 = vadd.f32 %v2269_v11, %v1851_v48 }
 0x556   :  { %v2274_v23 = vmul.f32 -1.442695, %v1854_v49  ;;  %v2275_v54 = vmul.f32 -1.442695, %v1874_v14 }
 0x558   :  { %2437 = vpow2.f32 %v2274_v23  ;;  %v1953_v33 = vpop.f32.mrf.mxu1 }
 0x559   :  { %2439 = vpow2.f32 %v2275_v54  ;;  %v1976_v13 = vadd.f32 %v2277_v6, %v1953_v33 }
 0x55b   :  { %v2283_v50 = vmul.f32 -1.442695, %v1976_v13 }
 0x55e   :  { %v2438_v19 = vpop.eup %2437  ;;  %v1973_v20 = vpop.f32.mrf.mxu2 }
 0x55f   :  { %v2440_v18 = vpop.eup %2439  ;;  %v1858_v53 = vadd.f32 1.0, %v2438_v19  ;;  %v1996_v31 = vadd.f32 %v2278_v52, %v1973_v20  ;;  %v2033_v48 = vpop.f32.mrf.mxu3 }
 0x560   :  { %v3503_v35 = vadd.f32 1.0, %v2440_v18  ;;  %v2034_v33 = vadd.f32 %v3322_v63, %v2033_v48  ;;  %v1924_v20 = vpop.permute.xlu2 %1923 }
 0x561   :  { %2441 = vrcp.f32 %v1858_v53  ;;  %v2284_v22 = vmul.f32 -1.442695, %v1996_v31  ;;  %v1870_v39 = vand.u32 2147483648, %v1858_v53  ;;  %v1868_v42 = vand.u32 2147483647, %v1858_v53 }
 0x562   :  { %2443 = vrcp.f32 %v3503_v35  ;;  %vm1864_vm11 = vweird.f32 %v1858_v53  ;;  %v1890_v44 = vand.u32 2147483648, %v3503_v35  ;;  %vm1884_vm15 = vweird.f32 %v3503_v35 }
 0x563   :  { %2445 = vpow2.f32 %v2283_v50  ;;  %v1871_v24 = vor.u32 1.1754944e-38, %v1870_v39  ;;  %vm1869_vm13 = vcmp.eq.f32.partialorder %v1868_v42, 8.507059e+37  ;;  %v1888_v34 = vand.u32 2147483647, %v3503_v35 }
 0x564   :  { %2447 = vpow2.f32 %v2284_v22  ;;  %v1891_v43 = vor.u32 1.1754944e-38, %v1890_v44 }
 0x565   :  { %vm1889_vm4 = vcmp.eq.f32.partialorder %v1888_v34, 8.507059e+37 }
 0x567   :  { %v2442_v57 = vpop.eup %2441 }
 0x568   :  { %v2444_v40 = vpop.eup %2443  ;;  %v1860_v51 = vmul.f32 %v2442_v57, %v1858_v53  ;;  %vm1865_vm10 = vweird.f32 %v2442_v57 }
 0x569   :  { %v2446_v30 = vpop.eup %2445  ;;  %v1880_v1 = vmul.f32 %v2444_v40, %v3503_v35  ;;  %vm1866_vm12 = vmor %vm1864_vm11, %vm1865_vm10  ;;  %vm1885_vm14 = vweird.f32 %v2444_v40  ;;  %v2279_v35 = vld [vmem:[%s3561_s2 + $0x2e] sm:$0x3]  ;;  %vm1925_vm11 = vcmp.eq.s32.totalorder %v1924_v20, 1 }
 0x56a   :  { %v1861_v3 = vsub.f32 1.0, %v1860_v51  ;;  %v1980_v60 = vadd.f32 1.0, %v2446_v30  ;;  %v2448_v17 = vpop.eup %2447  ;;  %vm1886_vm2 = vmor %vm1884_vm15, %vm1885_vm14  ;;  %vm2114_vm14 = vcmask 25600  }
 0x56b   :  { %v1881_v58 = vsub.f32 1.0, %v1880_v1  ;;  %v2000_v32 = vadd.f32 1.0, %v2448_v17  ;;  %v2046_v1 = vpop.permute.xlu0 %2045 }
 0x56c   :  { %v1862_v55 = vmul.f32 %v2442_v57, %v1861_v3  ;;  %2449 = vrcp.f32 %v1980_v60  ;;  %v1990_v28 = vand.u32 2147483647, %v1980_v60  ;;  %v1992_v8 = vand.u32 2147483648, %v1980_v60 }
 0x56d   :  { %v1882_v15 = vmul.f32 %v2444_v40, %v1881_v58  ;;  %2451 = vrcp.f32 %v2000_v32  ;;  %vm1986_vm5 = vweird.f32 %v1980_v60  ;;  %v2012_v54 = vand.u32 2147483648, %v2000_v32 }
 0x56e   :  { %v1863_v21 = vadd.f32 %v2442_v57, %v1862_v55  ;;  %vm1991_vm7 = vcmp.eq.f32.partialorder %v1990_v28, 8.507059e+37  ;;  %v1993_v6 = vor.u32 1.1754944e-38, %v1992_v8  ;;  %vm2006_vm9 = vweird.f32 %v2000_v32 }
 0x56f   :  { %v1883_v4 = vadd.f32 %v2444_v40, %v1882_v15  ;;  %v2010_v50 = vand.u32 2147483647, %v2000_v32  ;;  %v2013_v63 = vor.u32 1.1754944e-38, %v2012_v54 }
 0x570   :  { %v1867_v29 = vsel %vm1866_vm12, %v2442_v57, %v1863_v21 }
 0x571   :  { %v1872_v56 = vsel %vm1869_vm13, %v1871_v24, %v1867_v29  ;;  %v1887_v7 = vsel %vm1886_vm2, %v2444_v40, %v1883_v4  ;;  %vm2011_vm12 = vcmp.eq.f32.partialorder %v2010_v50, 8.507059e+37  ;;  %vm2047_vm13 = vcmp.eq.s32.totalorder %v2046_v1, 1 }
 0x572   :  { %v2450_v25 = vpop.eup %2449  ;;  %v1914_v27 = vmul.f32 %v1912_v46, %v1872_v56  ;;  %v1892_v49 = vsel %vm1889_vm4, %v1891_v43, %v1887_v7 }
 0x573   :  { %v1982_v59 = vmul.f32 %v2450_v25, %v1980_v60  ;;  %v2452_v26 = vpop.eup %2451  ;;  %vm1987_vm3 = vweird.f32 %v2450_v25  ;;  %v1917_v18 = vsub.f32 1.0, %v1892_v49  ;;  %v1919_v47 = vmul.f32 %v1892_v49, %v3474_v10 }
 0x574   :  { %v1915_v62 = vadd.f32 %v2270_v38, %v1914_v27  ;;  %v2002_v11 = vmul.f32 %v2452_v26, %v2000_v32  ;;  %vm1988_vm6 = vmor %vm1986_vm5, %vm1987_vm3  ;;  %vm2007_vm8 = vweird.f32 %v2452_v26 }
 0x575   :  { %v1983_v9 = vsub.f32 1.0, %v1982_v59  ;;  %vm2008_vm10 = vmor %vm2006_vm9, %vm2007_vm8 }
 0x576   :  { %2453 = vtanh.f32 %v1915_v62  ;;  %v2003_v14 = vsub.f32 1.0, %v2002_v11 }
 0x577   :  { %v1984_v12 = vmul.f32 %v2450_v25, %v1983_v9 }
 0x578   :  { %v2004_v13 = vmul.f32 %v2452_v26, %v2003_v14 }
 0x579   :  { %v1985_v23 = vadd.f32 %v2450_v25, %v1984_v12 }
 0x57a   :  { %v2005_v31 = vadd.f32 %v2452_v26, %v2004_v13 }
 0x57b   :  { %v1989_v19 = vsel %vm1988_vm6, %v2450_v25, %v1985_v23 }
 0x57c   :  { %v2454_v53 = vpop.eup %2453  ;;  %v1994_v52 = vsel %vm1991_vm7, %v1993_v6, %v1989_v19  ;;  %v2009_v57 = vsel %vm2008_vm10, %v2452_v26, %v2005_v31 }
 0x57d   :  { %v2036_v22 = vmul.f32 %v2034_v33, %v1994_v52  ;;  %v1918_v16 = vmul.f32 %v2454_v53, %v1917_v18  ;;  %v2014_v41 = vsel %vm2011_vm12, %v2013_v63, %v2009_v57 }
 0x57e   :  { %v2039_v37 = vsub.f32 1.0, %v2014_v41  ;;  %v2041_v3 = vmul.f32 %v2014_v41, %v3486_v45 }
 0x57f   :  { %v2037_v40 = vadd.f32 %v2279_v35, %v2036_v22  ;;  %v1920_v51 = vadd.f32 %v1919_v47, %v1918_v16 }
 0x581   :  { %2455 = vtanh.f32 %v2037_v40  ;;  %v1926_v0 = vsel %vm1925_vm11, %v1920_v51, %v3474_v10  ;;  %v2296_v10 = vld [vmem:[%s3568_s9] ss:$0 sm:$0xff] }
 0x582   :  { %2050 = vst.msk [vmem:[#allocation2] sm:$0x3] %vm40_vm0, %v1926_v0  ;;  %2287 = vmatmul.msk.f32.vlgmr.msra.gmra.mxu1 %vm59_vm1, %v1926_v0 }
 0x587   :  { %v2456_v30 = vpop.eup %2455 }
 0x588   :  { %v2040_v2 = vmul.f32 %v2456_v30, %v2039_v37 }
 0x58a   :  { %v2042_v60 = vadd.f32 %v2041_v3, %v2040_v2 }
 0x58c   :  { %v2048_v5 = vsel %vm2047_vm13, %v2042_v60, %v3486_v45 }
 0x58d   :  { %2051 = vst.msk [vmem:[#allocation3] sm:$0x3] %vm40_vm0, %v2048_v5  ;;  %2286 = vmatmul.msk.f32.vlgmr.msra.gmra.mxu0 %vm59_vm1, %v2048_v5 }
 0x5ff   :  { %v2106_v61 = vpop.f32.mrf.mxu1 }
 0x60a   :  { %v2083_v39 = vpop.f32.mrf.mxu0 }
 0x60b   :  { %v2107_v58 = vadd.f32 %v2106_v61, %v2083_v39 }
 0x60d   :  { %v2113_v55 = vadd.f32 %v2296_v10, %v2107_v58 }
 0x60f   :  { %2115 = vst.msk [vmem:[#allocation4] sm:$0x3] %vm2114_vm14, %v2113_v55 }
 0x610   :  { %2126 = dma.vmem_to_hbm [thread:$0]  %s2122_s29, 32, %s2124_s11, [#allocation5]  }
 0x611   :  { %2507 = dma.done.wait [#allocation5], 32  }
 0x612   :  { %2508 = vsyncadd [#allocation5], 4294967264 }
 0x613   :  { %2131 = vsyncpa [#allocation5], 1 }

</bundles_post_ra>
